<compile_context>
chip_gen: v7x
topology: tpu7x:2x2x1
jax: 0.10.0
libtpu: 0.0.40
codegen_flags: <defaults>
</compile_context>

<pallas_src>
import functools
import math

import jax
import jax.numpy as jnp
from jax.experimental import pallas as pl
from jax.experimental.pallas import tpu as pltpu

# ---- small synthetic "bert-base-uncased"-like config ----
VOCAB = 100
HIDDEN = 32
NUM_HEADS = 4
HEAD_DIM = HIDDEN // NUM_HEADS
INTERMEDIATE = 64
NUM_LAYERS = 2
MAX_POS = 32
TYPE_VOCAB = 2
LN_EPS = 1e-12
VEC_W = 128          # lane-dense packing width for small vectors


# ---------------- in-kernel helpers ----------------

def _layernorm(x, gamma, beta, eps):
    mean = jnp.mean(x, axis=-1, keepdims=True)
    cent = x - mean
    var = jnp.mean(cent * cent, axis=-1, keepdims=True)
    return cent * jax.lax.rsqrt(var + eps) * gamma + beta


def _gelu_tanh(x):
    # tanh-approximate GELU (original BERT formulation), f32 on the VPU/EUP.
    c = math.sqrt(2.0 / math.pi)
    return 0.5 * x * (1.0 + jnp.tanh(c * (x + 0.044715 * x * x * x)))


# ---------------- fused BERT encoder kernel ----------------
#
# One invocation, no grid.  Everything (activations ~tens of KB, weights
# ~70 KB) is resident in VMEM for the whole forward.
#
#   emb_ref  : (B*S, H)      summed word+pos+type embeddings (pre-LayerNorm)
#   bias_ref : (B, 1, S)     additive attention mask (-1e9 at padded keys)
#   wqkv_ref : (L, H, 3H)    fused Q/K/V projection weights
#   wo_ref   : (L, H, H)     attention output projection
#   w1_ref   : (L, H, I)     FFN in
#   w2_ref   : (L, I, H)     FFN out
#   vec_ref  : (2+L*8, 128)  packed [emb_ln_g, emb_ln_b] + per layer
#                            [bqkv, bo, ln1_g, ln1_b, b1, b2, ln2_g, ln2_b]
#   o_ref    : (B*S, H)      last hidden state

def _fused_bert_kernel(emb_ref, bias_ref, wqkv_ref, wo_ref, w1_ref, w2_ref,
                       vec_ref, o_ref, *, num_layers, num_heads, head_dim, eps):
    B = bias_ref.shape[0]
    S = bias_ref.shape[2]
    NH, D = num_heads, head_dim
    H = NH * D
    I = w1_ref.shape[2]
    scale = 1.0 / math.sqrt(D)

    vecs = vec_ref[...]                                   # (2+L*8, 128)

    def vrow(r, width):                                   # static (1, width) slice
        return vecs[r:r + 1, :width]

    # Embedding LayerNorm, fused (no separate launch / HBM round-trip).
    x = _layernorm(emb_ref[...], vrow(0, H), vrow(1, H), eps)          # (B*S, H)

    # Attention bias replicated per head ONCE (layer-invariant, hoisted).
    # Combined leading index is h*B + b, matching q/k/v below.
    bias_all = jnp.concatenate([bias_ref[...]] * NH, axis=0)           # (NH*B, 1, S)

    for l in range(num_layers):                                        # static unroll
        base = 2 + l * 8
        bqkv = vrow(base + 0, 3 * H)
        bo   = vrow(base + 1, H)
        ln1g = vrow(base + 2, H)
        ln1b = vrow(base + 3, H)
        b1   = vrow(base + 4, I)
        b2   = vrow(base + 5, H)
        ln2g = vrow(base + 6, H)
        ln2b = vrow(base + 7, H)

        # Fused Q/K/V projection: one MXU pass, 3H-wide lanes.
        qkv = jnp.dot(x, wqkv_ref[l],
                      preferred_element_type=jnp.float32) + bqkv       # (B*S, 3H)
        qkv3 = qkv.reshape(B, S, 3 * H)

        # Fold heads into the leading (batch) dim of a single batched matmul.
        # NOTE: contraction dim is head_dim=8 (tiny MXU utilisation) —
        # acceptable at toy sizes; pad/pack heads for production shapes.
        q_all = jnp.concatenate(
            [qkv3[:, :, h * D:(h + 1) * D] for h in range(NH)], axis=0)            # (NH*B, S, D)
        k_all = jnp.concatenate(
            [qkv3[:, :, H + h * D:H + (h + 1) * D] for h in range(NH)], axis=0)
        v_all = jnp.concatenate(
            [qkv3[:, :, 2 * H + h * D:2 * H + (h + 1) * D] for h in range(NH)], axis=0)

        s = jnp.einsum('bqd,bkd->bqk', q_all, k_all,
                       preferred_element_type=jnp.float32)             # (NH*B, S, S)
        s = s * scale + bias_all

        # One softmax pass over all heads & batch elements.
        m = jnp.max(s, axis=-1, keepdims=True)
        p = jnp.exp(s - m)
        denom = jnp.sum(p, axis=-1, keepdims=True)
        p = p * pl.reciprocal(denom, approx=True)                      # EUP, not VPU divide

        ctx = jnp.einsum('bqk,bkd->bqd', p, v_all,
                         preferred_element_type=jnp.float32)           # (NH*B, S, D)

        # Per-head output projection as one head-batched matmul; heads are
        # summed, never concatenated / transposed.
        ctx_h = ctx.reshape(NH, B * S, D)
        wo_h = wo_ref[l].reshape(NH, D, H)
        attn = jnp.einsum('hnd,hdo->hno', ctx_h, wo_h,
                          preferred_element_type=jnp.float32)          # (NH, B*S, H)
        attn = jnp.sum(attn, axis=0) + bo                              # (B*S, H)

        # Add & LayerNorm 1
        y = _layernorm(attn + x, ln1g, ln1b, eps)

        # FFN: GELU(y W1 + b1) W2 + b2
        ff = jnp.dot(y, w1_ref[l], preferred_element_type=jnp.float32) + b1
        ff = _gelu_tanh(ff)
        ff = jnp.dot(ff, w2_ref[l], preferred_element_type=jnp.float32) + b2

        # Add & LayerNorm 2
        x = _layernorm(ff + y, ln2g, ln2b, eps)

    o_ref[...] = x


# ---------------- kernel wrapper ----------------

def pallas_bert_encoder(emb_flat, bias, params):
    N, H = emb_flat.shape
    kern = functools.partial(_fused_bert_kernel, num_layers=NUM_LAYERS,
                             num_heads=NUM_HEADS, head_dim=HEAD_DIM, eps=LN_EPS)
    # Gridless call: every operand is a single full-array VMEM block.
    return pl.pallas_call(
        kern,
        out_shape=jax.ShapeDtypeStruct((N, H), jnp.float32),
        compiler_params=pltpu.CompilerParams(vmem_limit_bytes=16 * 1024 * 1024),
    )(emb_flat, bias, params["wqkv"], params["wo"],
      params["w1"], params["w2"], params["vec"])


# ---------------- synthetic BERT parameters ----------------

def init_params(key):
    def normal(k, shape):
        return 0.02 * jax.random.normal(k, shape, dtype=jnp.float32)

    H, I = HIDDEN, INTERMEDIATE
    keys = jax.random.split(key, 3 + NUM_LAYERS)

    wqkv_l, wo_l, w1_l, w2_l = [], [], [], []
    # packed small vectors: rows 0-1 = embedding LN gamma/beta
    vec_rows = [jnp.ones((H,), jnp.float32), jnp.zeros((H,), jnp.float32)]
    for li in range(NUM_LAYERS):
        lk = jax.random.split(keys[3 + li], 6)
        wq, wk, wv = normal(lk[0], (H, H)), normal(lk[1], (H, H)), normal(lk[2], (H, H))
        wqkv_l.append(jnp.concatenate([wq, wk, wv], axis=1))   # fused (H, 3H)
        wo_l.append(normal(lk[3], (H, H)))
        w1_l.append(normal(lk[4], (H, I)))
        w2_l.append(normal(lk[5], (I, H)))
        vec_rows += [
            jnp.zeros((3 * H,), jnp.float32),   # bqkv
            jnp.zeros((H,), jnp.float32),       # bo
            jnp.ones((H,), jnp.float32),        # ln1_g
            jnp.zeros((H,), jnp.float32),       # ln1_b
            jnp.zeros((I,), jnp.float32),       # b1
            jnp.zeros((H,), jnp.float32),       # b2
            jnp.ones((H,), jnp.float32),        # ln2_g
            jnp.zeros((H,), jnp.float32),       # ln2_b
        ]
    vec_pack = jnp.stack([jnp.pad(r, (0, VEC_W - r.shape[0])) for r in vec_rows], axis=0)

    return {
        "word_emb": normal(keys[0], (VOCAB, H)),
        "pos_emb": normal(keys[1], (MAX_POS, H)),
        "type_emb": normal(keys[2], (TYPE_VOCAB, H)),
        "wqkv": jnp.stack(wqkv_l),      # (L, H, 3H)
        "wo": jnp.stack(wo_l),          # (L, H, H)
        "w1": jnp.stack(w1_l),          # (L, H, I)
        "w2": jnp.stack(w2_l),          # (L, I, H)
        "vec": vec_pack,                # (2 + L*8, 128)
    }


# ---------------- BertEmbedding.forward equivalent ----------------

def bert_embedding_forward(params, bert_input, bert_attend_mask, bert_valid_mask,
                           lengths, L):
    del lengths  # L already encodes the max; empty slots come out zero below.
    B, S = bert_input.shape
    H = HIDDEN

    # BERT embeddings (gather is plain-JAX glue); LayerNorm happens in-kernel.
    emb = (jnp.take(params["word_emb"], bert_input, axis=0)
           + params["pos_emb"][None, :S, :]
           + params["type_emb"][0][None, None, :]).astype(jnp.float32)

    # additive attention bias from the attend mask (per-head broadcast in-kernel)
    bias = ((1.0 - bert_attend_mask.astype(jnp.float32)) * (-1e9)).reshape(B, 1, S)

    # Fused: embedding LayerNorm + all encoder layers in ONE pallas_call.
    # NOTE: query rows at fully-masked positions see a uniform softmax and
    # produce meaningless context; they are discarded by the valid-mask
    # repacking below (matches the reference module's behaviour).
    hidden = pallas_bert_encoder(emb.reshape(B * S, H), bias, params)
    bert_hiddens = hidden.reshape(B, S, H)      # == outputs[0] (last hidden state)

    # valid_hiddens = bert_hiddens[bert_valid_mask.bool()] followed by
    # unflatten_with_lengths(valid_hiddens, lengths, L): per-row stable
    # compaction of valid positions, zero-padded to L.  Implemented with a
    # cumsum + one-hot gather (no per-row argsort).
    valid = bert_valid_mask.astype(jnp.int32)                     # (B, S)
    slot = jnp.cumsum(valid, axis=1) - 1                          # output slot per valid token
    sel = (slot[:, None, :] == jnp.arange(L)[None, :, None]) & (valid[:, None, :] > 0)
    return jnp.einsum('bls,bsh->blh', sel.astype(bert_hiddens.dtype), bert_hiddens)


if __name__ == "__main__":
    key = jax.random.PRNGKey(0)
    pkey, ikey = jax.random.split(key)
    params = init_params(pkey)

    B, S = 2, 16
    bert_input = jax.random.randint(ikey, (B, S), 0, VOCAB, dtype=jnp.int32)

    # actual wordpiece lengths per sentence (incl. [CLS]/[SEP])
    wp_lens = jnp.array([12, 9], dtype=jnp.int32)
    pos = jnp.arange(S)[None, :]
    bert_attend_mask = (pos < wp_lens[:, None]).astype(jnp.int32)            # (B, S)
    # valid tokens: everything attended except [CLS] (pos 0) and [SEP] (last)
    bert_valid_mask = ((pos >= 1) & (pos < (wp_lens - 1)[:, None])).astype(jnp.int32)
    lengths = bert_valid_mask.sum(axis=1).astype(jnp.int32)                  # [10, 7]
    L = int(lengths.max())                                                   # static

    forward = jax.jit(bert_embedding_forward, static_argnames=("L",))
    out = forward(params, bert_input, bert_attend_mask, bert_valid_mask,
                  lengths, L=L)
    out = jax.block_until_ready(out)
    assert out.shape == (B, L, HIDDEN), out.shape
    assert jnp.all(jnp.isfinite(out))
    print("KERNEL_OK")
</pallas_src>

<mosaic_0001>
module attributes {stable_mosaic.version = 11 : i64} {
  func.func @_fused_bert_kernel(%arg0: memref<32x32xf32, #tpu.memory_space<vmem>>, %arg1: memref<2x1x16xf32, #tpu.memory_space<vmem>>, %arg2: memref<2x32x96xf32, #tpu.memory_space<vmem>>, %arg3: memref<2x32x32xf32, #tpu.memory_space<vmem>>, %arg4: memref<2x32x64xf32, #tpu.memory_space<vmem>>, %arg5: memref<2x64x32xf32, #tpu.memory_space<vmem>>, %arg6: memref<18x128xf32, #tpu.memory_space<vmem>>, %arg7: memref<32x32xf32, #tpu.memory_space<vmem>>) attributes {dimension_semantics = [], scalar_prefetch = 0 : i64, scratch_operands = 0 : i64, tpu.core_type = #tpu.core_type<tc>} {
    %c0 = arith.constant 0 : index
    %c0_0 = arith.constant 0 : index
    %0 = vector.load %arg6[%c0, %c0_0] : memref<18x128xf32, #tpu.memory_space<vmem>>, vector<18x128xf32>
    %c0_1 = arith.constant 0 : index
    %c0_2 = arith.constant 0 : index
    %1 = vector.load %arg0[%c0_1, %c0_2] : memref<32x32xf32, #tpu.memory_space<vmem>>, vector<32x32xf32>
    %2 = vector.extract_strided_slice %0 {offsets = [0, 0], sizes = [1, 32], strides = [1, 1]} : vector<18x128xf32> to vector<1x32xf32>
    %3 = vector.extract_strided_slice %0 {offsets = [1, 0], sizes = [1, 32], strides = [1, 1]} : vector<18x128xf32> to vector<1x32xf32>
    %cst = arith.constant dense<0.000000e+00> : vector<32xf32>
    %4 = vector.multi_reduction <add>, %1, %cst [1] : vector<32x32xf32> to vector<32xf32>
    %5 = vector.shape_cast %4 : vector<32xf32> to vector<32x1xf32>
    %cst_3 = arith.constant 3.200000e+01 : f32
    %6 = vector.broadcast %cst_3 : f32 to vector<32x1xf32>
    %7 = arith.divf %5, %6 : vector<32x1xf32>
    %8 = vector.broadcast %7 : vector<32x1xf32> to vector<32x32xf32>
    %9 = arith.subf %1, %8 : vector<32x32xf32>
    %10 = arith.mulf %9, %9 : vector<32x32xf32>
    %cst_4 = arith.constant dense<0.000000e+00> : vector<32xf32>
    %11 = vector.multi_reduction <add>, %10, %cst_4 [1] : vector<32x32xf32> to vector<32xf32>
    %12 = vector.shape_cast %11 : vector<32xf32> to vector<32x1xf32>
    %cst_5 = arith.constant 3.200000e+01 : f32
    %13 = vector.broadcast %cst_5 : f32 to vector<32x1xf32>
    %14 = arith.divf %12, %13 : vector<32x1xf32>
    %cst_6 = arith.constant 9.99999996E-13 : f32
    %15 = vector.broadcast %cst_6 : f32 to vector<32x1xf32>
    %16 = arith.addf %14, %15 : vector<32x1xf32>
    %17 = math.rsqrt %16 : vector<32x1xf32>
    %18 = vector.broadcast %17 : vector<32x1xf32> to vector<32x32xf32>
    %19 = arith.mulf %9, %18 : vector<32x32xf32>
    %20 = vector.broadcast %2 : vector<1x32xf32> to vector<32x32xf32>
    %21 = arith.mulf %19, %20 : vector<32x32xf32>
    %22 = vector.broadcast %3 : vector<1x32xf32> to vector<32x32xf32>
    %23 = arith.addf %21, %22 : vector<32x32xf32>
    %c0_7 = arith.constant 0 : index
    %c0_8 = arith.constant 0 : index
    %c0_9 = arith.constant 0 : index
    %24 = vector.load %arg1[%c0_7, %c0_8, %c0_9] : memref<2x1x16xf32, #tpu.memory_space<vmem>>, vector<2x1x16xf32>
    %25 = tpu.concatenate %24, %24, %24, %24 in 0 : vector<2x1x16xf32>, vector<2x1x16xf32>, vector<2x1x16xf32>, vector<2x1x16xf32> -> vector<8x1x16xf32>
    %26 = vector.extract_strided_slice %0 {offsets = [2, 0], sizes = [1, 96], strides = [1, 1]} : vector<18x128xf32> to vector<1x96xf32>
    %27 = vector.extract_strided_slice %0 {offsets = [3, 0], sizes = [1, 32], strides = [1, 1]} : vector<18x128xf32> to vector<1x32xf32>
    %28 = vector.extract_strided_slice %0 {offsets = [4, 0], sizes = [1, 32], strides = [1, 1]} : vector<18x128xf32> to vector<1x32xf32>
    %29 = vector.extract_strided_slice %0 {offsets = [5, 0], sizes = [1, 32], strides = [1, 1]} : vector<18x128xf32> to vector<1x32xf32>
    %30 = vector.extract_strided_slice %0 {offsets = [6, 0], sizes = [1, 64], strides = [1, 1]} : vector<18x128xf32> to vector<1x64xf32>
    %31 = vector.extract_strided_slice %0 {offsets = [7, 0], sizes = [1, 32], strides = [1, 1]} : vector<18x128xf32> to vector<1x32xf32>
    %32 = vector.extract_strided_slice %0 {offsets = [8, 0], sizes = [1, 32], strides = [1, 1]} : vector<18x128xf32> to vector<1x32xf32>
    %33 = vector.extract_strided_slice %0 {offsets = [9, 0], sizes = [1, 32], strides = [1, 1]} : vector<18x128xf32> to vector<1x32xf32>
    %c0_10 = arith.constant 0 : index
    %c0_11 = arith.constant 0 : index
    %c0_12 = arith.constant 0 : index
    %34 = vector.load %arg2[%c0_10, %c0_11, %c0_12] : memref<2x32x96xf32, #tpu.memory_space<vmem>>, vector<1x32x96xf32>
    %35 = vector.shape_cast %34 : vector<1x32x96xf32> to vector<32x96xf32>
    %cst_13 = arith.constant dense<0.000000e+00> : vector<32x96xf32>
    %36 = tpu.matmul %23, %35, %cst_13 {dimension_numbers = #tpu.dot_dimension_numbers<[1], [0], [0], [1], [0, 0, 1, 1], [], []>} : vector<32x32xf32>, vector<32x96xf32>, vector<32x96xf32> -> vector<32x96xf32>
    %37 = vector.broadcast %26 : vector<1x96xf32> to vector<32x96xf32>
    %38 = arith.addf %36, %37 : vector<32x96xf32>
    %39 = vector.shape_cast %38 : vector<32x96xf32> to vector<2x16x96xf32>
    %40 = vector.extract_strided_slice %39 {offsets = [0, 0, 0], sizes = [2, 16, 8], strides = [1, 1, 1]} : vector<2x16x96xf32> to vector<2x16x8xf32>
    %41 = vector.extract_strided_slice %39 {offsets = [0, 0, 8], sizes = [2, 16, 8], strides = [1, 1, 1]} : vector<2x16x96xf32> to vector<2x16x8xf32>
    %42 = vector.extract_strided_slice %39 {offsets = [0, 0, 16], sizes = [2, 16, 8], strides = [1, 1, 1]} : vector<2x16x96xf32> to vector<2x16x8xf32>
    %43 = vector.extract_strided_slice %39 {offsets = [0, 0, 24], sizes = [2, 16, 8], strides = [1, 1, 1]} : vector<2x16x96xf32> to vector<2x16x8xf32>
    %44 = tpu.concatenate %40, %41, %42, %43 in 0 : vector<2x16x8xf32>, vector<2x16x8xf32>, vector<2x16x8xf32>, vector<2x16x8xf32> -> vector<8x16x8xf32>
    %45 = vector.extract_strided_slice %39 {offsets = [0, 0, 32], sizes = [2, 16, 8], strides = [1, 1, 1]} : vector<2x16x96xf32> to vector<2x16x8xf32>
    %46 = vector.extract_strided_slice %39 {offsets = [0, 0, 40], sizes = [2, 16, 8], strides = [1, 1, 1]} : vector<2x16x96xf32> to vector<2x16x8xf32>
    %47 = vector.extract_strided_slice %39 {offsets = [0, 0, 48], sizes = [2, 16, 8], strides = [1, 1, 1]} : vector<2x16x96xf32> to vector<2x16x8xf32>
    %48 = vector.extract_strided_slice %39 {offsets = [0, 0, 56], sizes = [2, 16, 8], strides = [1, 1, 1]} : vector<2x16x96xf32> to vector<2x16x8xf32>
    %49 = tpu.concatenate %45, %46, %47, %48 in 0 : vector<2x16x8xf32>, vector<2x16x8xf32>, vector<2x16x8xf32>, vector<2x16x8xf32> -> vector<8x16x8xf32>
    %50 = vector.extract_strided_slice %39 {offsets = [0, 0, 64], sizes = [2, 16, 8], strides = [1, 1, 1]} : vector<2x16x96xf32> to vector<2x16x8xf32>
    %51 = vector.extract_strided_slice %39 {offsets = [0, 0, 72], sizes = [2, 16, 8], strides = [1, 1, 1]} : vector<2x16x96xf32> to vector<2x16x8xf32>
    %52 = vector.extract_strided_slice %39 {offsets = [0, 0, 80], sizes = [2, 16, 8], strides = [1, 1, 1]} : vector<2x16x96xf32> to vector<2x16x8xf32>
    %53 = vector.extract_strided_slice %39 {offsets = [0, 0, 88], sizes = [2, 16, 8], strides = [1, 1, 1]} : vector<2x16x96xf32> to vector<2x16x8xf32>
    %54 = tpu.concatenate %50, %51, %52, %53 in 0 : vector<2x16x8xf32>, vector<2x16x8xf32>, vector<2x16x8xf32>, vector<2x16x8xf32> -> vector<8x16x8xf32>
    "tpu.trace_start"() <{level = 10 : i32, message = "bqd,bkd->bqk"}> : () -> ()
    %cst_14 = arith.constant dense<0.000000e+00> : vector<8x16x16xf32>
    %55 = tpu.matmul %44, %49, %cst_14 {dimension_numbers = #tpu.dot_dimension_numbers<[2], [2], [1], [1], [0, 0, 0, 1, 1, 1], [0], [0]>} : vector<8x16x8xf32>, vector<8x16x8xf32>, vector<8x16x16xf32> -> vector<8x16x16xf32>
    "tpu.trace_stop"() : () -> ()
    %cst_15 = arith.constant 0.353553385 : f32
    %56 = vector.broadcast %cst_15 : f32 to vector<8x16x16xf32>
    %57 = arith.mulf %55, %56 : vector<8x16x16xf32>
    %58 = vector.broadcast %25 : vector<8x1x16xf32> to vector<8x16x16xf32>
    %59 = arith.addf %57, %58 : vector<8x16x16xf32>
    %cst_16 = arith.constant dense<0xFF800000> : vector<8x16xf32>
    %60 = vector.multi_reduction <maximumf>, %59, %cst_16 [2] : vector<8x16x16xf32> to vector<8x16xf32>
    %61 = vector.shape_cast %60 : vector<8x16xf32> to vector<8x16x1xf32>
    %62 = vector.broadcast %61 : vector<8x16x1xf32> to vector<8x16x16xf32>
    %63 = arith.subf %59, %62 : vector<8x16x16xf32>
    %64 = math.exp %63 : vector<8x16x16xf32>
    %cst_17 = arith.constant dense<0.000000e+00> : vector<8x16xf32>
    %65 = vector.multi_reduction <add>, %64, %cst_17 [2] : vector<8x16x16xf32> to vector<8x16xf32>
    %66 = vector.shape_cast %65 : vector<8x16xf32> to vector<8x16x1xf32>
    %67 = tpu.reciprocal %66 {approx = true} : vector<8x16x1xf32> -> vector<8x16x1xf32>
    %68 = vector.broadcast %67 : vector<8x16x1xf32> to vector<8x16x16xf32>
    %69 = arith.mulf %64, %68 : vector<8x16x16xf32>
    "tpu.trace_start"() <{level = 10 : i32, message = "bqk,bkd->bqd"}> : () -> ()
    %cst_18 = arith.constant dense<0.000000e+00> : vector<8x16x8xf32>
    %70 = tpu.matmul %69, %54, %cst_18 {dimension_numbers = #tpu.dot_dimension_numbers<[2], [1], [1], [2], [0, 0, 0, 1, 1, 2], [0], [0]>} : vector<8x16x16xf32>, vector<8x16x8xf32>, vector<8x16x8xf32> -> vector<8x16x8xf32>
    "tpu.trace_stop"() : () -> ()
    %71 = vector.shape_cast %70 : vector<8x16x8xf32> to vector<4x32x8xf32>
    %c0_19 = arith.constant 0 : index
    %c0_20 = arith.constant 0 : index
    %c0_21 = arith.constant 0 : index
    %72 = vector.load %arg3[%c0_19, %c0_20, %c0_21] : memref<2x32x32xf32, #tpu.memory_space<vmem>>, vector<1x32x32xf32>
    %73 = vector.shape_cast %72 : vector<1x32x32xf32> to vector<32x32xf32>
    %74 = vector.shape_cast %73 : vector<32x32xf32> to vector<4x8x32xf32>
    "tpu.trace_start"() <{level = 10 : i32, message = "hnd,hdo->hno"}> : () -> ()
    %cst_22 = arith.constant dense<0.000000e+00> : vector<4x32x32xf32>
    %75 = tpu.matmul %71, %74, %cst_22 {dimension_numbers = #tpu.dot_dimension_numbers<[2], [1], [1], [2], [0, 0, 0, 1, 1, 2], [0], [0]>} : vector<4x32x8xf32>, vector<4x8x32xf32>, vector<4x32x32xf32> -> vector<4x32x32xf32>
    "tpu.trace_stop"() : () -> ()
    %cst_23 = arith.constant dense<0.000000e+00> : vector<32x32xf32>
    %76 = vector.multi_reduction <add>, %75, %cst_23 [0] : vector<4x32x32xf32> to vector<32x32xf32>
    %77 = vector.broadcast %27 : vector<1x32xf32> to vector<32x32xf32>
    %78 = arith.addf %76, %77 : vector<32x32xf32>
    %79 = arith.addf %78, %23 : vector<32x32xf32>
    %cst_24 = arith.constant dense<0.000000e+00> : vector<32xf32>
    %80 = vector.multi_reduction <add>, %79, %cst_24 [1] : vector<32x32xf32> to vector<32xf32>
    %81 = vector.shape_cast %80 : vector<32xf32> to vector<32x1xf32>
    %cst_25 = arith.constant 3.200000e+01 : f32
    %82 = vector.broadcast %cst_25 : f32 to vector<32x1xf32>
    %83 = arith.divf %81, %82 : vector<32x1xf32>
    %84 = vector.broadcast %83 : vector<32x1xf32> to vector<32x32xf32>
    %85 = arith.subf %79, %84 : vector<32x32xf32>
    %86 = arith.mulf %85, %85 : vector<32x32xf32>
    %cst_26 = arith.constant dense<0.000000e+00> : vector<32xf32>
    %87 = vector.multi_reduction <add>, %86, %cst_26 [1] : vector<32x32xf32> to vector<32xf32>
    %88 = vector.shape_cast %87 : vector<32xf32> to vector<32x1xf32>
    %cst_27 = arith.constant 3.200000e+01 : f32
    %89 = vector.broadcast %cst_27 : f32 to vector<32x1xf32>
    %90 = arith.divf %88, %89 : vector<32x1xf32>
    %cst_28 = arith.constant 9.99999996E-13 : f32
    %91 = vector.broadcast %cst_28 : f32 to vector<32x1xf32>
    %92 = arith.addf %90, %91 : vector<32x1xf32>
    %93 = math.rsqrt %92 : vector<32x1xf32>
    %94 = vector.broadcast %93 : vector<32x1xf32> to vector<32x32xf32>
    %95 = arith.mulf %85, %94 : vector<32x32xf32>
    %96 = vector.broadcast %28 : vector<1x32xf32> to vector<32x32xf32>
    %97 = arith.mulf %95, %96 : vector<32x32xf32>
    %98 = vector.broadcast %29 : vector<1x32xf32> to vector<32x32xf32>
    %99 = arith.addf %97, %98 : vector<32x32xf32>
    %c0_29 = arith.constant 0 : index
    %c0_30 = arith.constant 0 : index
    %c0_31 = arith.constant 0 : index
    %100 = vector.load %arg4[%c0_29, %c0_30, %c0_31] : memref<2x32x64xf32, #tpu.memory_space<vmem>>, vector<1x32x64xf32>
    %101 = vector.shape_cast %100 : vector<1x32x64xf32> to vector<32x64xf32>
    %cst_32 = arith.constant dense<0.000000e+00> : vector<32x64xf32>
    %102 = tpu.matmul %99, %101, %cst_32 {dimension_numbers = #tpu.dot_dimension_numbers<[1], [0], [0], [1], [0, 0, 1, 1], [], []>} : vector<32x32xf32>, vector<32x64xf32>, vector<32x64xf32> -> vector<32x64xf32>
    %103 = vector.broadcast %30 : vector<1x64xf32> to vector<32x64xf32>
    %104 = arith.addf %102, %103 : vector<32x64xf32>
    %cst_33 = arith.constant 5.000000e-01 : f32
    %105 = vector.broadcast %cst_33 : f32 to vector<32x64xf32>
    %106 = arith.mulf %105, %104 : vector<32x64xf32>
    %cst_34 = arith.constant 4.471500e-02 : f32
    %107 = vector.broadcast %cst_34 : f32 to vector<32x64xf32>
    %108 = arith.mulf %107, %104 : vector<32x64xf32>
    %109 = arith.mulf %108, %104 : vector<32x64xf32>
    %110 = arith.mulf %109, %104 : vector<32x64xf32>
    %111 = arith.addf %104, %110 : vector<32x64xf32>
    %cst_35 = arith.constant 0.797884583 : f32
    %112 = vector.broadcast %cst_35 : f32 to vector<32x64xf32>
    %113 = arith.mulf %112, %111 : vector<32x64xf32>
    %114 = math.tanh %113 : vector<32x64xf32>
    %cst_36 = arith.constant 1.000000e+00 : f32
    %115 = vector.broadcast %cst_36 : f32 to vector<32x64xf32>
    %116 = arith.addf %115, %114 : vector<32x64xf32>
    %117 = arith.mulf %106, %116 : vector<32x64xf32>
    %c0_37 = arith.constant 0 : index
    %c0_38 = arith.constant 0 : index
    %c0_39 = arith.constant 0 : index
    %118 = vector.load %arg5[%c0_37, %c0_38, %c0_39] : memref<2x64x32xf32, #tpu.memory_space<vmem>>, vector<1x64x32xf32>
    %119 = vector.shape_cast %118 : vector<1x64x32xf32> to vector<64x32xf32>
    %cst_40 = arith.constant dense<0.000000e+00> : vector<32x32xf32>
    %120 = tpu.matmul %117, %119, %cst_40 {dimension_numbers = #tpu.dot_dimension_numbers<[1], [0], [0], [1], [0, 0, 1, 1], [], []>} : vector<32x64xf32>, vector<64x32xf32>, vector<32x32xf32> -> vector<32x32xf32>
    %121 = vector.broadcast %31 : vector<1x32xf32> to vector<32x32xf32>
    %122 = arith.addf %120, %121 : vector<32x32xf32>
    %123 = arith.addf %122, %99 : vector<32x32xf32>
    %cst_41 = arith.constant dense<0.000000e+00> : vector<32xf32>
    %124 = vector.multi_reduction <add>, %123, %cst_41 [1] : vector<32x32xf32> to vector<32xf32>
    %125 = vector.shape_cast %124 : vector<32xf32> to vector<32x1xf32>
    %cst_42 = arith.constant 3.200000e+01 : f32
    %126 = vector.broadcast %cst_42 : f32 to vector<32x1xf32>
    %127 = arith.divf %125, %126 : vector<32x1xf32>
    %128 = vector.broadcast %127 : vector<32x1xf32> to vector<32x32xf32>
    %129 = arith.subf %123, %128 : vector<32x32xf32>
    %130 = arith.mulf %129, %129 : vector<32x32xf32>
    %cst_43 = arith.constant dense<0.000000e+00> : vector<32xf32>
    %131 = vector.multi_reduction <add>, %130, %cst_43 [1] : vector<32x32xf32> to vector<32xf32>
    %132 = vector.shape_cast %131 : vector<32xf32> to vector<32x1xf32>
    %cst_44 = arith.constant 3.200000e+01 : f32
    %133 = vector.broadcast %cst_44 : f32 to vector<32x1xf32>
    %134 = arith.divf %132, %133 : vector<32x1xf32>
    %cst_45 = arith.constant 9.99999996E-13 : f32
    %135 = vector.broadcast %cst_45 : f32 to vector<32x1xf32>
    %136 = arith.addf %134, %135 : vector<32x1xf32>
    %137 = math.rsqrt %136 : vector<32x1xf32>
    %138 = vector.broadcast %137 : vector<32x1xf32> to vector<32x32xf32>
    %139 = arith.mulf %129, %138 : vector<32x32xf32>
    %140 = vector.broadcast %32 : vector<1x32xf32> to vector<32x32xf32>
    %141 = arith.mulf %139, %140 : vector<32x32xf32>
    %142 = vector.broadcast %33 : vector<1x32xf32> to vector<32x32xf32>
    %143 = arith.addf %141, %142 : vector<32x32xf32>
    %144 = vector.extract_strided_slice %0 {offsets = [10, 0], sizes = [1, 96], strides = [1, 1]} : vector<18x128xf32> to vector<1x96xf32>
    %145 = vector.extract_strided_slice %0 {offsets = [11, 0], sizes = [1, 32], strides = [1, 1]} : vector<18x128xf32> to vector<1x32xf32>
    %146 = vector.extract_strided_slice %0 {offsets = [12, 0], sizes = [1, 32], strides = [1, 1]} : vector<18x128xf32> to vector<1x32xf32>
    %147 = vector.extract_strided_slice %0 {offsets = [13, 0], sizes = [1, 32], strides = [1, 1]} : vector<18x128xf32> to vector<1x32xf32>
    %148 = vector.extract_strided_slice %0 {offsets = [14, 0], sizes = [1, 64], strides = [1, 1]} : vector<18x128xf32> to vector<1x64xf32>
    %149 = vector.extract_strided_slice %0 {offsets = [15, 0], sizes = [1, 32], strides = [1, 1]} : vector<18x128xf32> to vector<1x32xf32>
    %150 = vector.extract_strided_slice %0 {offsets = [16, 0], sizes = [1, 32], strides = [1, 1]} : vector<18x128xf32> to vector<1x32xf32>
    %151 = vector.extract_strided_slice %0 {offsets = [17, 0], sizes = [1, 32], strides = [1, 1]} : vector<18x128xf32> to vector<1x32xf32>
    %c1 = arith.constant 1 : index
    %c0_46 = arith.constant 0 : index
    %c0_47 = arith.constant 0 : index
    %152 = vector.load %arg2[%c1, %c0_46, %c0_47] : memref<2x32x96xf32, #tpu.memory_space<vmem>>, vector<1x32x96xf32>
    %153 = vector.shape_cast %152 : vector<1x32x96xf32> to vector<32x96xf32>
    %cst_48 = arith.constant dense<0.000000e+00> : vector<32x96xf32>
    %154 = tpu.matmul %143, %153, %cst_48 {dimension_numbers = #tpu.dot_dimension_numbers<[1], [0], [0], [1], [0, 0, 1, 1], [], []>} : vector<32x32xf32>, vector<32x96xf32>, vector<32x96xf32> -> vector<32x96xf32>
    %155 = vector.broadcast %144 : vector<1x96xf32> to vector<32x96xf32>
    %156 = arith.addf %154, %155 : vector<32x96xf32>
    %157 = vector.shape_cast %156 : vector<32x96xf32> to vector<2x16x96xf32>
    %158 = vector.extract_strided_slice %157 {offsets = [0, 0, 0], sizes = [2, 16, 8], strides = [1, 1, 1]} : vector<2x16x96xf32> to vector<2x16x8xf32>
    %159 = vector.extract_strided_slice %157 {offsets = [0, 0, 8], sizes = [2, 16, 8], strides = [1, 1, 1]} : vector<2x16x96xf32> to vector<2x16x8xf32>
    %160 = vector.extract_strided_slice %157 {offsets = [0, 0, 16], sizes = [2, 16, 8], strides = [1, 1, 1]} : vector<2x16x96xf32> to vector<2x16x8xf32>
    %161 = vector.extract_strided_slice %157 {offsets = [0, 0, 24], sizes = [2, 16, 8], strides = [1, 1, 1]} : vector<2x16x96xf32> to vector<2x16x8xf32>
    %162 = tpu.concatenate %158, %159, %160, %161 in 0 : vector<2x16x8xf32>, vector<2x16x8xf32>, vector<2x16x8xf32>, vector<2x16x8xf32> -> vector<8x16x8xf32>
    %163 = vector.extract_strided_slice %157 {offsets = [0, 0, 32], sizes = [2, 16, 8], strides = [1, 1, 1]} : vector<2x16x96xf32> to vector<2x16x8xf32>
    %164 = vector.extract_strided_slice %157 {offsets = [0, 0, 40], sizes = [2, 16, 8], strides = [1, 1, 1]} : vector<2x16x96xf32> to vector<2x16x8xf32>
    %165 = vector.extract_strided_slice %157 {offsets = [0, 0, 48], sizes = [2, 16, 8], strides = [1, 1, 1]} : vector<2x16x96xf32> to vector<2x16x8xf32>
    %166 = vector.extract_strided_slice %157 {offsets = [0, 0, 56], sizes = [2, 16, 8], strides = [1, 1, 1]} : vector<2x16x96xf32> to vector<2x16x8xf32>
    %167 = tpu.concatenate %163, %164, %165, %166 in 0 : vector<2x16x8xf32>, vector<2x16x8xf32>, vector<2x16x8xf32>, vector<2x16x8xf32> -> vector<8x16x8xf32>
    %168 = vector.extract_strided_slice %157 {offsets = [0, 0, 64], sizes = [2, 16, 8], strides = [1, 1, 1]} : vector<2x16x96xf32> to vector<2x16x8xf32>
    %169 = vector.extract_strided_slice %157 {offsets = [0, 0, 72], sizes = [2, 16, 8], strides = [1, 1, 1]} : vector<2x16x96xf32> to vector<2x16x8xf32>
    %170 = vector.extract_strided_slice %157 {offsets = [0, 0, 80], sizes = [2, 16, 8], strides = [1, 1, 1]} : vector<2x16x96xf32> to vector<2x16x8xf32>
    %171 = vector.extract_strided_slice %157 {offsets = [0, 0, 88], sizes = [2, 16, 8], strides = [1, 1, 1]} : vector<2x16x96xf32> to vector<2x16x8xf32>
    %172 = tpu.concatenate %168, %169, %170, %171 in 0 : vector<2x16x8xf32>, vector<2x16x8xf32>, vector<2x16x8xf32>, vector<2x16x8xf32> -> vector<8x16x8xf32>
    "tpu.trace_start"() <{level = 10 : i32, message = "bqd,bkd->bqk"}> : () -> ()
    %cst_49 = arith.constant dense<0.000000e+00> : vector<8x16x16xf32>
    %173 = tpu.matmul %162, %167, %cst_49 {dimension_numbers = #tpu.dot_dimension_numbers<[2], [2], [1], [1], [0, 0, 0, 1, 1, 1], [0], [0]>} : vector<8x16x8xf32>, vector<8x16x8xf32>, vector<8x16x16xf32> -> vector<8x16x16xf32>
    "tpu.trace_stop"() : () -> ()
    %cst_50 = arith.constant 0.353553385 : f32
    %174 = vector.broadcast %cst_50 : f32 to vector<8x16x16xf32>
    %175 = arith.mulf %173, %174 : vector<8x16x16xf32>
    %176 = vector.broadcast %25 : vector<8x1x16xf32> to vector<8x16x16xf32>
    %177 = arith.addf %175, %176 : vector<8x16x16xf32>
    %cst_51 = arith.constant dense<0xFF800000> : vector<8x16xf32>
    %178 = vector.multi_reduction <maximumf>, %177, %cst_51 [2] : vector<8x16x16xf32> to vector<8x16xf32>
    %179 = vector.shape_cast %178 : vector<8x16xf32> to vector<8x16x1xf32>
    %180 = vector.broadcast %179 : vector<8x16x1xf32> to vector<8x16x16xf32>
    %181 = arith.subf %177, %180 : vector<8x16x16xf32>
    %182 = math.exp %181 : vector<8x16x16xf32>
    %cst_52 = arith.constant dense<0.000000e+00> : vector<8x16xf32>
    %183 = vector.multi_reduction <add>, %182, %cst_52 [2] : vector<8x16x16xf32> to vector<8x16xf32>
    %184 = vector.shape_cast %183 : vector<8x16xf32> to vector<8x16x1xf32>
    %185 = tpu.reciprocal %184 {approx = true} : vector<8x16x1xf32> -> vector<8x16x1xf32>
    %186 = vector.broadcast %185 : vector<8x16x1xf32> to vector<8x16x16xf32>
    %187 = arith.mulf %182, %186 : vector<8x16x16xf32>
    "tpu.trace_start"() <{level = 10 : i32, message = "bqk,bkd->bqd"}> : () -> ()
    %cst_53 = arith.constant dense<0.000000e+00> : vector<8x16x8xf32>
    %188 = tpu.matmul %187, %172, %cst_53 {dimension_numbers = #tpu.dot_dimension_numbers<[2], [1], [1], [2], [0, 0, 0, 1, 1, 2], [0], [0]>} : vector<8x16x16xf32>, vector<8x16x8xf32>, vector<8x16x8xf32> -> vector<8x16x8xf32>
    "tpu.trace_stop"() : () -> ()
    %189 = vector.shape_cast %188 : vector<8x16x8xf32> to vector<4x32x8xf32>
    %c1_54 = arith.constant 1 : index
    %c0_55 = arith.constant 0 : index
    %c0_56 = arith.constant 0 : index
    %190 = vector.load %arg3[%c1_54, %c0_55, %c0_56] : memref<2x32x32xf32, #tpu.memory_space<vmem>>, vector<1x32x32xf32>
    %191 = vector.shape_cast %190 : vector<1x32x32xf32> to vector<32x32xf32>
    %192 = vector.shape_cast %191 : vector<32x32xf32> to vector<4x8x32xf32>
    "tpu.trace_start"() <{level = 10 : i32, message = "hnd,hdo->hno"}> : () -> ()
    %cst_57 = arith.constant dense<0.000000e+00> : vector<4x32x32xf32>
    %193 = tpu.matmul %189, %192, %cst_57 {dimension_numbers = #tpu.dot_dimension_numbers<[2], [1], [1], [2], [0, 0, 0, 1, 1, 2], [0], [0]>} : vector<4x32x8xf32>, vector<4x8x32xf32>, vector<4x32x32xf32> -> vector<4x32x32xf32>
    "tpu.trace_stop"() : () -> ()
    %cst_58 = arith.constant dense<0.000000e+00> : vector<32x32xf32>
    %194 = vector.multi_reduction <add>, %193, %cst_58 [0] : vector<4x32x32xf32> to vector<32x32xf32>
    %195 = vector.broadcast %145 : vector<1x32xf32> to vector<32x32xf32>
    %196 = arith.addf %194, %195 : vector<32x32xf32>
    %197 = arith.addf %196, %143 : vector<32x32xf32>
    %cst_59 = arith.constant dense<0.000000e+00> : vector<32xf32>
    %198 = vector.multi_reduction <add>, %197, %cst_59 [1] : vector<32x32xf32> to vector<32xf32>
    %199 = vector.shape_cast %198 : vector<32xf32> to vector<32x1xf32>
    %cst_60 = arith.constant 3.200000e+01 : f32
    %200 = vector.broadcast %cst_60 : f32 to vector<32x1xf32>
    %201 = arith.divf %199, %200 : vector<32x1xf32>
    %202 = vector.broadcast %201 : vector<32x1xf32> to vector<32x32xf32>
    %203 = arith.subf %197, %202 : vector<32x32xf32>
    %204 = arith.mulf %203, %203 : vector<32x32xf32>
    %cst_61 = arith.constant dense<0.000000e+00> : vector<32xf32>
    %205 = vector.multi_reduction <add>, %204, %cst_61 [1] : vector<32x32xf32> to vector<32xf32>
    %206 = vector.shape_cast %205 : vector<32xf32> to vector<32x1xf32>
    %cst_62 = arith.constant 3.200000e+01 : f32
    %207 = vector.broadcast %cst_62 : f32 to vector<32x1xf32>
    %208 = arith.divf %206, %207 : vector<32x1xf32>
    %cst_63 = arith.constant 9.99999996E-13 : f32
    %209 = vector.broadcast %cst_63 : f32 to vector<32x1xf32>
    %210 = arith.addf %208, %209 : vector<32x1xf32>
    %211 = math.rsqrt %210 : vector<32x1xf32>
    %212 = vector.broadcast %211 : vector<32x1xf32> to vector<32x32xf32>
    %213 = arith.mulf %203, %212 : vector<32x32xf32>
    %214 = vector.broadcast %146 : vector<1x32xf32> to vector<32x32xf32>
    %215 = arith.mulf %213, %214 : vector<32x32xf32>
    %216 = vector.broadcast %147 : vector<1x32xf32> to vector<32x32xf32>
    %217 = arith.addf %215, %216 : vector<32x32xf32>
    %c1_64 = arith.constant 1 : index
    %c0_65 = arith.constant 0 : index
    %c0_66 = arith.constant 0 : index
    %218 = vector.load %arg4[%c1_64, %c0_65, %c0_66] : memref<2x32x64xf32, #tpu.memory_space<vmem>>, vector<1x32x64xf32>
    %219 = vector.shape_cast %218 : vector<1x32x64xf32> to vector<32x64xf32>
    %cst_67 = arith.constant dense<0.000000e+00> : vector<32x64xf32>
    %220 = tpu.matmul %217, %219, %cst_67 {dimension_numbers = #tpu.dot_dimension_numbers<[1], [0], [0], [1], [0, 0, 1, 1], [], []>} : vector<32x32xf32>, vector<32x64xf32>, vector<32x64xf32> -> vector<32x64xf32>
    %221 = vector.broadcast %148 : vector<1x64xf32> to vector<32x64xf32>
    %222 = arith.addf %220, %221 : vector<32x64xf32>
    %cst_68 = arith.constant 5.000000e-01 : f32
    %223 = vector.broadcast %cst_68 : f32 to vector<32x64xf32>
    %224 = arith.mulf %223, %222 : vector<32x64xf32>
    %cst_69 = arith.constant 4.471500e-02 : f32
    %225 = vector.broadcast %cst_69 : f32 to vector<32x64xf32>
    %226 = arith.mulf %225, %222 : vector<32x64xf32>
    %227 = arith.mulf %226, %222 : vector<32x64xf32>
    %228 = arith.mulf %227, %222 : vector<32x64xf32>
    %229 = arith.addf %222, %228 : vector<32x64xf32>
    %cst_70 = arith.constant 0.797884583 : f32
    %230 = vector.broadcast %cst_70 : f32 to vector<32x64xf32>
    %231 = arith.mulf %230, %229 : vector<32x64xf32>
    %232 = math.tanh %231 : vector<32x64xf32>
    %cst_71 = arith.constant 1.000000e+00 : f32
    %233 = vector.broadcast %cst_71 : f32 to vector<32x64xf32>
    %234 = arith.addf %233, %232 : vector<32x64xf32>
    %235 = arith.mulf %224, %234 : vector<32x64xf32>
    %c1_72 = arith.constant 1 : index
    %c0_73 = arith.constant 0 : index
    %c0_74 = arith.constant 0 : index
    %236 = vector.load %arg5[%c1_72, %c0_73, %c0_74] : memref<2x64x32xf32, #tpu.memory_space<vmem>>, vector<1x64x32xf32>
    %237 = vector.shape_cast %236 : vector<1x64x32xf32> to vector<64x32xf32>
    %cst_75 = arith.constant dense<0.000000e+00> : vector<32x32xf32>
    %238 = tpu.matmul %235, %237, %cst_75 {dimension_numbers = #tpu.dot_dimension_numbers<[1], [0], [0], [1], [0, 0, 1, 1], [], []>} : vector<32x64xf32>, vector<64x32xf32>, vector<32x32xf32> -> vector<32x32xf32>
    %239 = vector.broadcast %149 : vector<1x32xf32> to vector<32x32xf32>
    %240 = arith.addf %238, %239 : vector<32x32xf32>
    %241 = arith.addf %240, %217 : vector<32x32xf32>
    %cst_76 = arith.constant dense<0.000000e+00> : vector<32xf32>
    %242 = vector.multi_reduction <add>, %241, %cst_76 [1] : vector<32x32xf32> to vector<32xf32>
    %243 = vector.shape_cast %242 : vector<32xf32> to vector<32x1xf32>
    %cst_77 = arith.constant 3.200000e+01 : f32
    %244 = vector.broadcast %cst_77 : f32 to vector<32x1xf32>
    %245 = arith.divf %243, %244 : vector<32x1xf32>
    %246 = vector.broadcast %245 : vector<32x1xf32> to vector<32x32xf32>
    %247 = arith.subf %241, %246 : vector<32x32xf32>
    %248 = arith.mulf %247, %247 : vector<32x32xf32>
    %cst_78 = arith.constant dense<0.000000e+00> : vector<32xf32>
    %249 = vector.multi_reduction <add>, %248, %cst_78 [1] : vector<32x32xf32> to vector<32xf32>
    %250 = vector.shape_cast %249 : vector<32xf32> to vector<32x1xf32>
    %cst_79 = arith.constant 3.200000e+01 : f32
    %251 = vector.broadcast %cst_79 : f32 to vector<32x1xf32>
    %252 = arith.divf %250, %251 : vector<32x1xf32>
    %cst_80 = arith.constant 9.99999996E-13 : f32
    %253 = vector.broadcast %cst_80 : f32 to vector<32x1xf32>
    %254 = arith.addf %252, %253 : vector<32x1xf32>
    %255 = math.rsqrt %254 : vector<32x1xf32>
    %256 = vector.broadcast %255 : vector<32x1xf32> to vector<32x32xf32>
    %257 = arith.mulf %247, %256 : vector<32x32xf32>
    %258 = vector.broadcast %150 : vector<1x32xf32> to vector<32x32xf32>
    %259 = arith.mulf %257, %258 : vector<32x32xf32>
    %260 = vector.broadcast %151 : vector<1x32xf32> to vector<32x32xf32>
    %261 = arith.addf %259, %260 : vector<32x32xf32>
    %c0_81 = arith.constant 0 : index
    %c0_82 = arith.constant 0 : index
    %262 = vector.load %arg7[%c0_81, %c0_82] : memref<32x32xf32, #tpu.memory_space<vmem>>, vector<32x32xf32>
    tpu.vector_store %arg7[%c0_81, %c0_82], %261 {strides = array<i32>} : memref<32x32xf32, #tpu.memory_space<vmem>>, vector<32x32xf32>,
    return
  }
}

</mosaic_0001>

<bundles_post_ra>
// kernel: bert_embedding_forward.1
= control target key start
LH: loop header
LB: loop body
LE: loop exit
PB: predicated region body
PF: predicated region fallthrough
CT: control target
= control target key end

     0   :  { %vm33_vm0 = vcmask 261120   ;;  %v87_v28 = vlaneseq  ;;  %vm242_vm1 = vcmask 64512   ;;  %s6606_s20 = smov 120   ;;  %s6607_s21 = smov 112   ;;  %vm979_vm3 = vcmask 130048   ;;  %s7746_s0 = inlined_call_operand.vmem [shape: f32[32,32], index: 0, kind: input, shape index: {}]   ;;  %s7747_s2 = inlined_call_operand.vmem [shape: f32[2,32,96], index: 2, kind: input, shape index: {}]   ;;  %s7748_s6 = inlined_call_operand.vmem [shape: f32[18,128], index: 6, kind: input, shape index: {}]   ;;  %s7749_s1 = inlined_call_operand.vmem [shape: f32[2,1,16], index: 1, kind: input, shape index: {}]   ;;  %s7750_s3 = inlined_call_operand.vmem [shape: f32[2,32,32], index: 3, kind: input, shape index: {}]   ;;  %s7751_s4 = inlined_call_operand.vmem [shape: f32[2,32,64], index: 4, kind: input, shape index: {}]   ;;  %s7752_s5 = inlined_call_operand.vmem [shape: f32[2,64,32], index: 5, kind: input, shape index: {}]   ;;  %s7753_s7 = inlined_call_operand.vmem [shape: f32[32,32], index: 7, kind: output, shape index: {}]  }
   0x1   :  { %v29_v0 = vld [vmem:[%s7746_s0] sm:$0xff]  ;;  %v31_v1 = vld [vmem:[%s7746_s0 + $0x10] sm:$0xff]  ;;  %v30_v2 = vld [vmem:[%s7746_s0 + $0x8] sm:$0xff]  ;;  %s6608_s22 = smov 104   ;;  %s6609_s23 = smov 96   ;;  %vm2505_vm4 = vcmask 523264  }
   0x2   :  { %v34_v3 = vsel %vm33_vm0, %v29_v0, 0.0  ;;  %v40_v4 = vsel %vm33_vm0, %v31_v1, 0.0  ;;  %v32_v5 = vld [vmem:[%s7746_s0 + $0x18] sm:$0xff]  ;;  %v37_v6 = vsel %vm33_vm0, %v30_v2, 0.0  ;;  %v105_v29 = vld [vmem:[%s7747_s2] sm:$0xff]  ;;  %v106_v30 = vld [vmem:[%s7747_s2 + $0x8] sm:$0xff] }
   0x3   :  { %35 = vadd.xlane.f32.xlu0 %v34_v3  ;;  %41 = vadd.xlane.f32.xlu1 %v40_v4  ;;  %v43_v7 = vsel %vm33_vm0, %v32_v5, 0.0  ;;  %v107_v31 = vld [vmem:[%s7747_s2 + $0x10] sm:$0xff]  ;;  %v6028_v32 = vpack.c.bf16 %v106_v30, %v105_v29  ;;  %v108_v33 = vld [vmem:[%s7747_s2 + $0x18] sm:$0xff]  ;;  %v6687_v35 = vshrl.u32 %v87_v28, 7  ;;  %v26_v51 = vld [vmem:[%s7748_s6] sm:$0xff]  ;;  %s6610_s24 = smov 64  }
   0x4   :  { %v6032_v34 = vpack.c.bf16 %v108_v33, %v107_v31  ;;  %v28_v36 = vld [vmem:[%s7748_s6 + $0x10] sm:$0x3]  ;;  %vm6790_vm2 = vmpackc.low %vm242_vm1, %vm242_vm1 }
   0x5   :  { %6029 = vmatprep.subr.bf16.mxu0 %v6028_v32  ;;  %v6693_v37 = vsub.s32 0, %v6687_v35  ;;  %v6702_v52 = vsub.s32 1, %v6687_v35 }
   0x6   :  { %6031 = vmatpush3.bf16.msra.mxu0 %v6028_v32 }
   0x7   :  { %38 = vadd.xlane.f32.xlu0 %v37_v6  ;;  %44 = vadd.xlane.f32.xlu1 %v43_v7  ;;  %v6696_v38 = vrot.slane %v28_v36, %v6693_v37  ;;  %v90_v53 = vrot.slane %v26_v51, %v6693_v37  ;;  %v98_v56 = vrot.slane %v26_v51, %v6702_v52  ;;  %v111_v7 = vsub.s32 2, %v6687_v35 }
   0x8   :  { %6033 = vmatprep.subr.bf16.mxu0 %v6032_v34 }
   0xa   :  { %6035 = vmatpush3.bf16.msra.mxu0 %v6032_v34 }
  0x90   :  { %v36_v8 = vpop.xlane.xlu0 %35  ;;  %v42_v9 = vpop.xlane.xlu1 %41 }
  0x91   :  { %v47_v10 = vmul.f32 0.03125, %v36_v8  ;;  %v49_v11 = vmul.f32 0.03125, %v42_v9  ;;  %v112_v8 = vrot.slane %v26_v51, %v111_v7 }
  0x93   :  { %v51_v12 = vsub.f32 %v29_v0, %v47_v10  ;;  %v6667_v13 = vsub.f32 %v31_v1, %v49_v11 }
  0x94   :  { %v39_v14 = vpop.xlane.xlu0 %38  ;;  %v45_v15 = vpop.xlane.xlu1 %44 }
  0x95   :  { %v48_v16 = vmul.f32 0.03125, %v39_v14  ;;  %v50_v17 = vmul.f32 0.03125, %v45_v15  ;;  %v55_v18 = vmul.f32 %v51_v12, %v51_v12  ;;  %v57_v19 = vmul.f32 %v6667_v13, %v6667_v13 }
  0x97   :  { %v52_v20 = vsub.f32 %v30_v2, %v48_v16  ;;  %v54_v21 = vsub.f32 %v32_v5, %v50_v17  ;;  %v59_v22 = vsel %vm33_vm0, %v55_v18, 0.0  ;;  %v65_v23 = vsel %vm33_vm0, %v57_v19, 0.0 }
  0x98   :  { %60 = vadd.xlane.f32.xlu0 %v59_v22 }
  0x99   :  { %v56_v24 = vmul.f32 %v52_v20, %v52_v20  ;;  %v58_v25 = vmul.f32 %v54_v21, %v54_v21 }
  0x9b   :  { %v62_v26 = vsel %vm33_vm0, %v56_v24, 0.0  ;;  %v68_v27 = vsel %vm33_vm0, %v58_v25, 0.0 }
  0x9c   :  { %66 = vadd.xlane.f32.xlu0 %v65_v23  ;;  %63 = vadd.xlane.f32.xlu1 %v62_v26 }
  0xa0   :  { %69 = vadd.xlane.f32.xlu1 %v68_v27 }
 0x125   :  { %v61_v39 = vpop.xlane.xlu0 %60 }
 0x126   :  { %v71_v40 = vmul.f32 0.03125, %v61_v39 }
 0x128   :  { %v75_v41 = vadd.f32 1e-12, %v71_v40 }
 0x129   :  { %v64_v42 = vpop.xlane.xlu1 %63  ;;  %v67_v43 = vpop.xlane.xlu0 %66 }
 0x12a   :  { %6417 = vrsqrt.f32 %v75_v41  ;;  %v72_v44 = vmul.f32 0.03125, %v64_v42  ;;  %v73_v45 = vmul.f32 0.03125, %v67_v43 }
 0x12c   :  { %v76_v46 = vadd.f32 1e-12, %v72_v44  ;;  %v77_v47 = vadd.f32 1e-12, %v73_v45 }
 0x12d   :  { %v70_v48 = vpop.xlane.xlu1 %69 }
 0x12e   :  { %6419 = vrsqrt.f32 %v76_v46  ;;  %v74_v49 = vmul.f32 0.03125, %v70_v48 }
 0x12f   :  { %6421 = vrsqrt.f32 %v77_v47 }
 0x130   :  { %v78_v50 = vadd.f32 1e-12, %v74_v49 }
 0x132   :  { %6423 = vrsqrt.f32 %v78_v50 }
 0x134   :  { %v6418_v54 = vpop.eup %6417 }
 0x135   :  { %v83_v55 = vmul.f32 %v6418_v54, %v51_v12 }
 0x137   :  { %v91_v57 = vmul.f32 %v90_v53, %v83_v55 }
 0x138   :  { %v6420_v58 = vpop.eup %6419 }
 0x139   :  { %v6422_v59 = vpop.eup %6421  ;;  %v6706_v60 = vadd.f32 %v98_v56, %v91_v57  ;;  %v84_v61 = vmul.f32 %v6420_v58, %v52_v20 }
 0x13a   :  { %v85_v62 = vmul.f32 %v6422_v59, %v6667_v13 }
 0x13b   :  { %5648 = vmatprep.mubr.msk.f32.mxu0 %vm33_vm0, %v6706_v60  ;;  %v92_v63 = vmul.f32 %v90_v53, %v84_v61 }
 0x13c   :  { %v6424_v0 = vpop.eup %6423  ;;  %v93_v1 = vmul.f32 %v90_v53, %v85_v62 }
 0x13d   :  { %v6711_v2 = vadd.f32 %v98_v56, %v92_v63  ;;  %v86_v3 = vmul.f32 %v6424_v0, %v54_v21 }
 0x13e   :  { %v6713_v4 = vadd.f32 %v98_v56, %v93_v1 }
 0x13f   :  { %5649 = vmatmul.mubr.msk.f32.vlgmr.msra.gmra.mrb[0].mxu0 %vm33_vm0, %v6711_v2  ;;  %v94_v5 = vmul.f32 %v90_v53, %v86_v3 }
 0x140   :  { %5651 = vmatprep.mubr.msk.f32.mxu0 %vm33_vm0, %v6713_v4 }
 0x141   :  { %v6719_v6 = vadd.f32 %v98_v56, %v94_v5 }
 0x143   :  { %5652 = vmatmul.mubr.msk.f32.gmra.mrb[2].mxu0 %vm33_vm0, %v6719_v6 }
 0x212   :  { %v5650_v9 = vpop.f32.mrb[0].mxu0 }
 0x213   :  { %v6726_v10 = vadd.f32 %v5650_v9, %v112_v8  ;;  %v191_v11 = vpop.f32.mrb[1].mxu0 }
 0x214   :  { %v192_v12 = vadd.f32 %v191_v11, %v112_v8 }
 0x215   :  { %216 = vrot.lane.b32.xlu1 %v6726_v10, %s6606_s20 }
 0x216   :  { %214 = vrot.lane.b32.xlu0 %v192_v12, %s6606_s20  ;;  %v5653_v13 = vpop.f32.mrb[2].mxu0  ;;  %5658 = vmatprep.mubr.msk.f32.mxu1 %vm242_vm1, %v192_v12  ;;  %v6257_v17 = vpack.i.bf16 %v6726_v10, %v192_v12 }
 0x217   :  { %v6732_v14 = vadd.f32 %v5653_v13, %v112_v8  ;;  %v201_v15 = vpop.f32.mrb[3].mxu0 }
 0x218   :  { %v202_v16 = vadd.f32 %v201_v15, %v112_v8 }
 0x219   :  { %220 = vrot.lane.b32.xlu1 %v6732_v14, %s6606_s20 }
 0x21a   :  { %222 = vrot.lane.b32.xlu0 %v192_v12, %s6607_s21  ;;  %5665 = vmatprep.mubr.msk.f32.mxu0 %vm242_vm1, %v202_v16  ;;  %v6262_v18 = vpack.i.bf16 %v6732_v14, %v202_v16 }
 0x21d   :  { %218 = vrot.lane.b32.xlu1 %v202_v16, %s6606_s20 }
 0x21e   :  { %226 = vrot.lane.b32.xlu0 %v202_v16, %s6607_s21 }
 0x221   :  { %224 = vrot.lane.b32.xlu1 %v6726_v10, %s6607_s21 }
 0x222   :  { %230 = vrot.lane.b32.xlu0 %v192_v12, %s6608_s22 }
 0x225   :  { %228 = vrot.lane.b32.xlu1 %v6732_v14, %s6607_s21 }
 0x226   :  { %234 = vrot.lane.b32.xlu0 %v202_v16, %s6608_s22 }
 0x229   :  { %232 = vrot.lane.b32.xlu1 %v6726_v10, %s6608_s22 }
 0x22a   :  { %6258 = vrot.lane.b32.xlu0 %v6257_v17, %s6609_s23 }
 0x22d   :  { %236 = vrot.lane.b32.xlu1 %v6732_v14, %s6608_s22 }
 0x231   :  { %6263 = vrot.lane.b32.xlu1 %v6262_v18, %s6609_s23 }
 0x287   :  { %v217_v19 = vpop.permute.xlu1 %216 }
 0x288   :  { %v215_v20 = vpop.permute.xlu0 %214 }
 0x289   :  { %v6267_v21 = vpack.i.bf16 %v217_v19, %v215_v20 }
 0x28b   :  { %v6754_v22 = vpop.permute.xlu1 %220  ;;  %6268 = vrot.lane.b32.xlu0 %v6267_v21, %s6609_s23 }
 0x28c   :  { %v223_v23 = vpop.permute.xlu0 %222 }
 0x28f   :  { %v219_v24 = vpop.permute.xlu1 %218 }
 0x290   :  { %v6757_v25 = vpop.permute.xlu0 %226  ;;  %v6272_v26 = vpack.i.bf16 %v6754_v22, %v219_v24 }
 0x292   :  { %6273 = vrot.lane.b32.xlu1 %v6272_v26, %s6609_s23 }
 0x293   :  { %v6761_v27 = vpop.permute.xlu1 %224 }
 0x294   :  { %v6763_v28 = vpop.permute.xlu0 %230  ;;  %v6766_v29 = vpack.i.bf16 %v6761_v27, %v223_v23 }
 0x296   :  { %6278 = vrot.lane.b32.xlu0 %v6766_v29, %s6609_s23 }
 0x297   :  { %v6770_v30 = vpop.permute.xlu1 %228 }
 0x298   :  { %v6772_v31 = vpop.permute.xlu0 %234  ;;  %v6776_v32 = vpack.i.bf16 %v6770_v30, %v6757_v25 }
 0x29a   :  { %6283 = vrot.lane.b32.xlu1 %v6776_v32, %s6609_s23 }
 0x29b   :  { %v6780_v33 = vpop.permute.xlu1 %232 }
 0x29c   :  { %v6259_v34 = vpop.permute.xlu0 %6258  ;;  %v6784_v36 = vpack.i.bf16 %v6780_v33, %v6763_v28 }
 0x29d   :  { %v6261_v39 = vunpack.i.h.bf16 %v6259_v34  ;;  %v6260_v40 = vunpack.i.l.bf16 %v6259_v34 }
 0x29e   :  { %6288 = vrot.lane.b32.xlu0 %v6784_v36, %s6609_s23 }
 0x29f   :  { %v6794_v42 = vpop.permute.xlu1 %236  ;;  %v6036_v43 = vpack.c.bf16 %v6261_v39, %v6260_v40 }
 0x2a0   :  { %v6798_v44 = vpack.i.bf16 %v6794_v42, %v6772_v31 }
 0x2a1   :  { %6038 = vmatprep.subr.msk.bf16.mxu1 %vm6790_vm2, %v6036_v43 }
 0x2a2   :  { %6298 = vrot.lane.b32.xlu0 %v6257_v17, %s6610_s24  ;;  %6293 = vrot.lane.b32.xlu1 %v6798_v44, %s6609_s23 }
 0x2a3   :  { %6041 = vmatpush3.bf16.xpose.msk.msra.mxu1 %vm6790_vm2, %v6036_v43  ;;  %v6264_v45 = vpop.permute.xlu1 %6263 }
 0x2a4   :  { %v6266_v46 = vunpack.i.h.bf16 %v6264_v45  ;;  %v6265_v47 = vunpack.i.l.bf16 %v6264_v45 }
 0x2a6   :  { %v6042_v48 = vpack.c.bf16 %v6266_v46, %v6265_v47  ;;  %6303 = vrot.lane.b32.xlu1 %v6262_v18, %s6610_s24 }
 0x2a8   :  { %6044 = vmatprep.subr.msk.bf16.mxu0 %vm6790_vm2, %v6042_v48 }
 0x2a9   :  { %6047 = vmatpush3.bf16.xpose.msk.msra.mxu0 %vm6790_vm2, %v6042_v48 }
 0x2aa   :  { %5659 = vmatmul.mubr.msk.f32.vlgmr.msra.gmra.mrb[0].mxu1 %vm242_vm1, %v6726_v10  ;;  %6308 = vrot.lane.b32.xlu1 %v6267_v21, %s6610_s24 }
 0x2ab   :  { %5672 = vmatprep.mubr.msk.f32.mxu1 %vm242_vm1, %v215_v20 }
 0x2ae   :  { %6313 = vrot.lane.b32.xlu1 %v6272_v26, %s6610_s24 }
 0x2b0   :  { %5666 = vmatmul.mubr.msk.f32.vlgmr.msra.gmra.mrb[4].mxu0 %vm242_vm1, %v6732_v14 }
 0x2b1   :  { %5679 = vmatprep.mubr.msk.f32.mxu0 %vm242_vm1, %v219_v24 }
 0x2fd   :  { %v6269_v49 = vpop.permute.xlu0 %6268 }
 0x2fe   :  { %v6271_v50 = vunpack.i.h.bf16 %v6269_v49  ;;  %v6270_v51 = vunpack.i.l.bf16 %v6269_v49  ;;  %v6886_v49 = vld [vmem:[%s7749_s1 + $0x1] ss:$0 sm:$0xff] }
 0x300   :  { %v6048_v53 = vpack.c.bf16 %v6271_v50, %v6270_v51 }
 0x302   :  { %6050 = vmatprep.subr.msk.bf16.mxu1 %vm6790_vm2, %v6048_v53 }
 0x303   :  { %6053 = vmatpush3.bf16.xpose.msk.msra.mxu1 %vm6790_vm2, %v6048_v53 }
 0x304   :  { %v6274_v54 = vpop.permute.xlu1 %6273 }
 0x305   :  { %v6276_v55 = vunpack.i.h.bf16 %v6274_v54  ;;  %v6275_v56 = vunpack.i.l.bf16 %v6274_v54 }
 0x307   :  { %v6054_v57 = vpack.c.bf16 %v6276_v55, %v6275_v56 }
 0x308   :  { %v6279_v58 = vpop.permute.xlu0 %6278 }
 0x309   :  { %v6281_v59 = vunpack.i.h.bf16 %v6279_v58  ;;  %v6280_v61 = vunpack.i.l.bf16 %v6279_v58  ;;  %6056 = vmatprep.subr.msk.bf16.mxu0 %vm6790_vm2, %v6054_v57 }
 0x30a   :  { %5673 = vmatmul.mubr.msk.f32.vlgmr.msra.gmra.mrb[2].mxu1 %vm242_vm1, %v217_v19  ;;  %6059 = vmatpush3.bf16.xpose.msk.msra.mxu0 %vm6790_vm2, %v6054_v57 }
 0x30b   :  { %v6060_v62 = vpack.c.bf16 %v6281_v59, %v6280_v61  ;;  %5686 = vmatprep.mubr.msk.f32.mxu1 %vm242_vm1, %v223_v23 }
 0x30c   :  { %v6284_v63 = vpop.permute.xlu1 %6283 }
 0x30d   :  { %v6286_v0 = vunpack.i.h.bf16 %v6284_v63  ;;  %v6285_v1 = vunpack.i.l.bf16 %v6284_v63  ;;  %6062 = vmatprep.subr.msk.bf16.mxu1 %vm6790_vm2, %v6060_v62 }
 0x30e   :  { %6065 = vmatpush3.bf16.xpose.msk.msra.mxu1 %vm6790_vm2, %v6060_v62 }
 0x30f   :  { %v6066_v3 = vpack.c.bf16 %v6286_v0, %v6285_v1 }
 0x310   :  { %v6289_v5 = vpop.permute.xlu0 %6288 }
 0x311   :  { %v6291_v8 = vunpack.i.h.bf16 %v6289_v5  ;;  %v6290_v9 = vunpack.i.l.bf16 %v6289_v5  ;;  %5680 = vmatmul.mubr.msk.f32.vlgmr.msra.gmra.mrb[6].mxu0 %vm242_vm1, %v6754_v22  ;;  %6068 = vmatprep.subr.msk.bf16.mxu0 %vm6790_vm2, %v6066_v3 }
 0x312   :  { %6071 = vmatpush3.bf16.xpose.msk.msra.mxu0 %vm6790_vm2, %v6066_v3  ;;  %5693 = vmatprep.mubr.msk.f32.mxu0 %vm242_vm1, %v6757_v25 }
 0x313   :  { %v6072_v10 = vpack.c.bf16 %v6291_v8, %v6290_v9 }
 0x314   :  { %v6294_v11 = vpop.permute.xlu1 %6293  ;;  %v6299_v12 = vpop.permute.xlu0 %6298 }
 0x315   :  { %v6296_v13 = vunpack.i.h.bf16 %v6294_v11  ;;  %v6295_v14 = vunpack.i.l.bf16 %v6294_v11  ;;  %v6301_v15 = vunpack.i.h.bf16 %v6299_v12  ;;  %v6300_v16 = vunpack.i.l.bf16 %v6299_v12  ;;  %5687 = vmatmul.mubr.msk.f32.vlgmr.msra.gmra.mrb[4].mxu1 %vm242_vm1, %v6761_v27  ;;  %6074 = vmatprep.subr.msk.bf16.mxu1 %vm6790_vm2, %v6072_v10 }
 0x316   :  { %6077 = vmatpush3.bf16.xpose.msk.msra.mxu1 %vm6790_vm2, %v6072_v10  ;;  %5700 = vmatprep.mubr.msk.f32.mxu1 %vm242_vm1, %v6763_v28 }
 0x317   :  { %v6078_v17 = vpack.c.bf16 %v6296_v13, %v6295_v14  ;;  %v6084_v21 = vpack.c.bf16 %v6301_v15, %v6300_v16 }
 0x318   :  { %v6304_v18 = vpop.permute.xlu1 %6303 }
 0x319   :  { %v6306_v19 = vunpack.i.h.bf16 %v6304_v18  ;;  %v6305_v20 = vunpack.i.l.bf16 %v6304_v18  ;;  %5694 = vmatmul.mubr.msk.f32.vlgmr.msra.gmra.mrb[8].mxu0 %vm242_vm1, %v6770_v30  ;;  %6080 = vmatprep.subr.msk.bf16.mxu0 %vm6790_vm2, %v6078_v17 }
 0x31a   :  { %6083 = vmatpush3.bf16.xpose.msk.msra.mxu0 %vm6790_vm2, %v6078_v17  ;;  %5707 = vmatprep.mubr.msk.f32.mxu0 %vm242_vm1, %v6772_v31 }
 0x31b   :  { %6085 = vmatprep.subr.bf16.mxu0 %v6084_v21  ;;  %v6088_v22 = vpack.c.bf16 %v6306_v19, %v6305_v20 }
 0x31c   :  { %v6309_v23 = vpop.permute.xlu1 %6308 }
 0x31d   :  { %v6311_v24 = vunpack.i.h.bf16 %v6309_v23  ;;  %v6310_v25 = vunpack.i.l.bf16 %v6309_v23  ;;  %5701 = vmatmul.mubr.msk.f32.vlgmr.msra.gmra.mrb[6].mxu1 %vm242_vm1, %v6780_v33  ;;  %6089 = vmatprep.subr.bf16.mxu1 %v6088_v22  ;;  %v6871_v33 = vld [vmem:[%s7749_s1] ss:$0 sm:$0xff] }
 0x31e   :  { %6091 = vmatpush3.bf16.msra.mxu1 %v6088_v22 }
 0x31f   :  { %v6862_v30 = vpack.c.bf16 %v6311_v24, %v6310_v25 }
 0x320   :  { %v6314_v26 = vpop.permute.xlu1 %6313 }
 0x321   :  { %v6316_v27 = vunpack.i.h.bf16 %v6314_v26  ;;  %v6315_v28 = vunpack.i.l.bf16 %v6314_v26  ;;  %5708 = vmatmul.mubr.msk.f32.vlgmr.msra.gmra.mrb[10].mxu0 %vm242_vm1, %v6794_v42 }
 0x322   :  { %6087 = vmatpush3.bf16.msra.mxu0 %v6084_v21 }
 0x323   :  { %6093 = vmatprep.subr.bf16.mxu0 %v6862_v30  ;;  %v6865_v31 = vpack.c.bf16 %v6316_v27, %v6315_v28 }
 0x325   :  { %6097 = vmatprep.subr.bf16.mxu1 %v6865_v31 }
 0x37d   :  { %v5660_v34 = vpop.f32.mrb[0].mxu1 }
 0x37e   :  { %v936_v39 = vmul.f32 0.35355338, %v5660_v34  ;;  %v317_v40 = vpop.f32.mrb[1].mxu1 }
 0x37f   :  { %v935_v43 = vmul.f32 0.35355338, %v317_v40 }
 0x380   :  { %v6874_v42 = vadd.f32 %v6871_v33, %v936_v39 }
 0x381   :  { %v6877_v45 = vadd.f32 %v6871_v33, %v935_v43 }
 0x382   :  { %v983_v46 = vsel %vm979_vm3, %v6874_v42, -inf }
 0x383   :  { %984 = vmax.xlane.f32.xlu1 %v983_v46  ;;  %v5667_v47 = vpop.f32.mrb[4].mxu0  ;;  %v980_v48 = vsel %vm979_vm3, %v6877_v45, -inf }
 0x384   :  { %v938_v50 = vmul.f32 0.35355338, %v5667_v47  ;;  %981 = vmax.xlane.f32.xlu0 %v980_v48  ;;  %v404_v51 = vpop.f32.mrb[5].mxu0 }
 0x385   :  { %v937_v53 = vmul.f32 0.35355338, %v404_v51 }
 0x386   :  { %v6889_v54 = vadd.f32 %v6886_v49, %v938_v50 }
 0x387   :  { %v6894_v56 = vadd.f32 %v6886_v49, %v937_v53 }
 0x388   :  { %v989_v55 = vsel %vm979_vm3, %v6889_v54, -inf }
 0x389   :  { %990 = vmax.xlane.f32.xlu0 %v989_v55  ;;  %v986_v57 = vsel %vm979_vm3, %v6894_v56, -inf }
 0x38d   :  { %987 = vmax.xlane.f32.xlu0 %v986_v57 }
 0x3dd   :  { %v5674_v58 = vpop.f32.mrb[2].mxu1 }
 0x3de   :  { %v940_v59 = vmul.f32 0.35355338, %v5674_v58  ;;  %v491_v61 = vpop.f32.mrb[3].mxu1 }
 0x3df   :  { %v939_v62 = vmul.f32 0.35355338, %v491_v61 }
 0x3e0   :  { %v6899_v63 = vadd.f32 %v6871_v33, %v940_v59 }
 0x3e1   :  { %v6902_v0 = vadd.f32 %v6871_v33, %v939_v62 }
 0x3e2   :  { %v995_v1 = vsel %vm979_vm3, %v6899_v63, -inf }
 0x3e3   :  { %996 = vmax.xlane.f32.xlu1 %v995_v1  ;;  %v992_v3 = vsel %vm979_vm3, %v6902_v0, -inf }
 0x3e4   :  { %v5681_v5 = vpop.f32.mrb[6].mxu0  ;;  %993 = vmax.xlane.f32.xlu0 %v992_v3 }
 0x3e5   :  { %v942_v8 = vmul.f32 0.35355338, %v5681_v5  ;;  %v578_v9 = vpop.f32.mrb[7].mxu0 }
 0x3e6   :  { %v941_v10 = vmul.f32 0.35355338, %v578_v9 }
 0x3e7   :  { %v6909_v11 = vadd.f32 %v6886_v49, %v942_v8 }
 0x3e8   :  { %v5688_v12 = vpop.f32.mrb[4].mxu1  ;;  %v6914_v16 = vadd.f32 %v6886_v49, %v941_v10 }
 0x3e9   :  { %v944_v13 = vmul.f32 0.35355338, %v5688_v12  ;;  %v665_v14 = vpop.f32.mrb[5].mxu1  ;;  %v1001_v15 = vsel %vm979_vm3, %v6909_v11, -inf }
 0x3ea   :  { %v943_v17 = vmul.f32 0.35355338, %v665_v14  ;;  %1002 = vmax.xlane.f32.xlu0 %v1001_v15  ;;  %v998_v22 = vsel %vm979_vm3, %v6914_v16, -inf }
 0x3eb   :  { %v6917_v18 = vadd.f32 %v6871_v33, %v944_v13 }
 0x3ec   :  { %v5695_v19 = vpop.f32.mrb[8].mxu0  ;;  %v6924_v24 = vadd.f32 %v6871_v33, %v943_v17 }
 0x3ed   :  { %v946_v20 = vmul.f32 0.35355338, %v5695_v19  ;;  %v752_v21 = vpop.f32.mrb[9].mxu0  ;;  %v1007_v23 = vsel %vm979_vm3, %v6917_v18, -inf }
 0x3ee   :  { %v945_v25 = vmul.f32 0.35355338, %v752_v21  ;;  %999 = vmax.xlane.f32.xlu0 %v998_v22  ;;  %1008 = vmax.xlane.f32.xlu1 %v1007_v23  ;;  %v1004_v40 = vsel %vm979_vm3, %v6924_v24, -inf }
 0x3ef   :  { %v6927_v26 = vadd.f32 %v6886_v49, %v946_v20 }
 0x3f0   :  { %v5702_v27 = vpop.f32.mrb[6].mxu1  ;;  %v6934_v43 = vadd.f32 %v6886_v49, %v945_v25 }
 0x3f1   :  { %v948_v28 = vmul.f32 0.35355338, %v5702_v27  ;;  %v839_v34 = vpop.f32.mrb[7].mxu1  ;;  %v1013_v39 = vsel %vm979_vm3, %v6927_v26, -inf }
 0x3f2   :  { %v947_v46 = vmul.f32 0.35355338, %v839_v34  ;;  %1014 = vmax.xlane.f32.xlu0 %v1013_v39  ;;  %1005 = vmax.xlane.f32.xlu1 %v1004_v40  ;;  %v1010_v53 = vsel %vm979_vm3, %v6934_v43, -inf }
 0x3f3   :  { %v6937_v47 = vadd.f32 %v6871_v33, %v948_v28 }
 0x3f4   :  { %v5709_v48 = vpop.f32.mrb[10].mxu0  ;;  %v6944_v57 = vadd.f32 %v6871_v33, %v947_v46 }
 0x3f5   :  { %v950_v50 = vmul.f32 0.35355338, %v5709_v48  ;;  %v926_v51 = vpop.f32.mrb[11].mxu0  ;;  %v1019_v55 = vsel %vm979_vm3, %v6937_v47, -inf }
 0x3f6   :  { %v949_v58 = vmul.f32 0.35355338, %v926_v51  ;;  %1011 = vmax.xlane.f32.xlu0 %v1010_v53  ;;  %1020 = vmax.xlane.f32.xlu1 %v1019_v55  ;;  %v1016_v61 = vsel %vm979_vm3, %v6944_v57, -inf }
 0x3f7   :  { %v6952_v62 = vadd.f32 %v6886_v49, %v950_v50 }
 0x3f8   :  { %v6947_v59 = vadd.f32 %v6886_v49, %v949_v58 }
 0x3f9   :  { %v1025_v33 = vsel %vm979_vm3, %v6952_v62, -inf }
 0x3fa   :  { %1017 = vmax.xlane.f32.xlu1 %v1016_v61  ;;  %v1022_v1 = vsel %vm979_vm3, %v6947_v59, -inf }
 0x3fb   :  { %1023 = vmax.xlane.f32.xlu0 %v1022_v1 }
 0x3fe   :  { %1026 = vmax.xlane.f32.xlu1 %v1025_v33 }
 0x40f   :  { %6323 = vrot.lane.b32.xlu1 %v6776_v32, %s6610_s24 }
 0x410   :  { %v985_v8 = vpop.xlane.xlu1 %984 }
 0x411   :  { %6318 = vrot.lane.b32.xlu0 %v6766_v29, %s6610_s24  ;;  %v982_v3 = vpop.xlane.xlu0 %981  ;;  %v1029_v9 = vsub.f32 %v6874_v42, %v985_v8 }
 0x412   :  { %v1028_v49 = vsub.f32 %v6877_v45, %v982_v3 }
 0x413   :  { %v1046_v14 = vmul.f32 1.442695, %v1029_v9 }
 0x414   :  { %v1044_v10 = vmul.f32 1.442695, %v1028_v49 }
 0x416   :  { %v991_v5 = vpop.xlane.xlu0 %990  ;;  %6425 = vpow2.f32 %v1044_v10 }
 0x417   :  { %v1031_v12 = vsub.f32 %v6889_v54, %v991_v5  ;;  %6427 = vpow2.f32 %v1046_v14 }
 0x419   :  { %v1050_v15 = vmul.f32 1.442695, %v1031_v12 }
 0x41a   :  { %v988_v13 = vpop.xlane.xlu0 %987 }
 0x41b   :  { %v1030_v17 = vsub.f32 %v6894_v56, %v988_v13  ;;  %6429 = vpow2.f32 %v1050_v15 }
 0x41d   :  { %v1048_v32 = vmul.f32 1.442695, %v1030_v17 }
 0x41f   :  { %6431 = vpow2.f32 %v1048_v32 }
 0x420   :  { %v6966_v29 = vpop.eup %6425 }
 0x421   :  { %v6968_v19 = vpop.eup %6427  ;;  %v1076_v42 = vsel %vm979_vm3, %v6966_v29, 0.0 }
 0x422   :  { %v1079_v54 = vsel %vm979_vm3, %v6968_v19, 0.0 }
 0x425   :  { %v6972_v45 = vpop.eup %6429 }
 0x426   :  { %v1085_v56 = vsel %vm979_vm3, %v6972_v45, 0.0 }
 0x429   :  { %v6978_v20 = vpop.eup %6431 }
 0x42a   :  { %v1082_v21 = vsel %vm979_vm3, %v6978_v20, 0.0 }
 0x430   :  { %1077 = vadd.xlane.f32.xlu0 %v1076_v42 }
 0x433   :  { %1080 = vadd.xlane.f32.xlu1 %v1079_v54 }
 0x434   :  { %1086 = vadd.xlane.f32.xlu0 %v1085_v56 }
 0x438   :  { %1083 = vadd.xlane.f32.xlu0 %v1082_v21 }
 0x470   :  { %v997_v22 = vpop.xlane.xlu1 %996 }
 0x471   :  { %v1033_v23 = vsub.f32 %v6899_v63, %v997_v22  ;;  %v994_v25 = vpop.xlane.xlu0 %993 }
 0x472   :  { %v1032_v27 = vsub.f32 %v6902_v0, %v994_v25 }
 0x473   :  { %v1054_v28 = vmul.f32 1.442695, %v1033_v23 }
 0x474   :  { %v1052_v34 = vmul.f32 1.442695, %v1032_v27 }
 0x475   :  { %6433 = vpow2.f32 %v1054_v28 }
 0x476   :  { %6435 = vpow2.f32 %v1052_v34 }
 0x477   :  { %v1003_v39 = vpop.xlane.xlu0 %1002 }
 0x478   :  { %v1035_v40 = vsub.f32 %v6909_v11, %v1003_v39 }
 0x47a   :  { %v1058_v46 = vmul.f32 1.442695, %v1035_v40 }
 0x47b   :  { %v1000_v48 = vpop.xlane.xlu0 %999  ;;  %v1009_v50 = vpop.xlane.xlu1 %1008 }
 0x47c   :  { %6437 = vpow2.f32 %v1058_v46  ;;  %v1034_v51 = vsub.f32 %v6914_v16, %v1000_v48  ;;  %v1037_v53 = vsub.f32 %v6917_v18, %v1009_v50 }
 0x47e   :  { %v1056_v55 = vmul.f32 1.442695, %v1034_v51  ;;  %v1062_v63 = vmul.f32 1.442695, %v1037_v53 }
 0x47f   :  { %v6987_v58 = vpop.eup %6433  ;;  %v1015_v0 = vpop.xlane.xlu0 %1014 }
 0x480   :  { %v1006_v61 = vpop.xlane.xlu1 %1005  ;;  %6439 = vpow2.f32 %v1056_v55  ;;  %v1039_v1 = vsub.f32 %v6927_v26, %v1015_v0  ;;  %v1091_v11 = vsel %vm979_vm3, %v6987_v58, 0.0  ;;  %v6993_v3 = vpop.eup %6435 }
 0x481   :  { %v1036_v33 = vsub.f32 %v6924_v24, %v1006_v61  ;;  %6441 = vpow2.f32 %v1062_v63  ;;  %1092 = vadd.xlane.f32.xlu1 %v1091_v11  ;;  %v1088_v26 = vsel %vm979_vm3, %v6993_v3, 0.0 }
 0x482   :  { %v1066_v16 = vmul.f32 1.442695, %v1039_v1 }
 0x483   :  { %v1060_v18 = vmul.f32 1.442695, %v1036_v33  ;;  %v1012_v5 = vpop.xlane.xlu0 %1011 }
 0x484   :  { %v1021_v8 = vpop.xlane.xlu1 %1020  ;;  %6443 = vpow2.f32 %v1066_v16  ;;  %v1038_v49 = vsub.f32 %v6934_v43, %v1012_v5 }
 0x485   :  { %v1041_v9 = vsub.f32 %v6937_v47, %v1021_v8  ;;  %6445 = vpow2.f32 %v1060_v18  ;;  %1089 = vadd.xlane.f32.xlu1 %v1088_v26 }
 0x486   :  { %v6999_v24 = vpop.eup %6437  ;;  %v1064_v10 = vmul.f32 1.442695, %v1038_v49 }
 0x487   :  { %v1070_v12 = vmul.f32 1.442695, %v1041_v9  ;;  %v1097_v14 = vsel %vm979_vm3, %v6999_v24, 0.0 }
 0x488   :  { %v1018_v13 = vpop.xlane.xlu1 %1017  ;;  %6447 = vpow2.f32 %v1064_v10  ;;  %1098 = vadd.xlane.f32.xlu0 %v1097_v14  ;;  %v1024_v43 = vpop.xlane.xlu0 %1023 }
 0x489   :  { %v1040_v15 = vsub.f32 %v6944_v57, %v1018_v13  ;;  %6449 = vpow2.f32 %v1070_v12  ;;  %v1042_v47 = vsub.f32 %v6947_v59, %v1024_v43 }
 0x48a   :  { %v7005_v17 = vpop.eup %6439 }
 0x48b   :  { %v1068_v32 = vmul.f32 1.442695, %v1040_v15  ;;  %v7007_v42 = vpop.eup %6441  ;;  %v1072_v54 = vmul.f32 1.442695, %v1042_v47  ;;  %v1094_v21 = vsel %vm979_vm3, %v7005_v17, 0.0 }
 0x48c   :  { %v1027_v56 = vpop.xlane.xlu1 %1026  ;;  %1095 = vadd.xlane.f32.xlu0 %v1094_v21  ;;  %v1103_v57 = vsel %vm979_vm3, %v7007_v42, 0.0  ;;  %v6319_v63 = vpop.permute.xlu0 %6318 }
 0x48d   :  { %6451 = vpow2.f32 %v1068_v32  ;;  %v1043_v22 = vsub.f32 %v6952_v62, %v1027_v56  ;;  %1104 = vadd.xlane.f32.xlu1 %v1103_v57  ;;  %v6321_v5 = vunpack.i.h.bf16 %v6319_v63  ;;  %v6320_v8 = vunpack.i.l.bf16 %v6319_v63 }
 0x48e   :  { %6453 = vpow2.f32 %v1072_v54  ;;  %v7014_v59 = vpop.eup %6443 }
 0x48f   :  { %v1074_v23 = vmul.f32 1.442695, %v1043_v22  ;;  %v7016_v25 = vpop.eup %6445  ;;  %v1109_v27 = vsel %vm979_vm3, %v7014_v59, 0.0 }
 0x490   :  { %1110 = vadd.xlane.f32.xlu0 %v1109_v27  ;;  %v1100_v28 = vsel %vm979_vm3, %v7016_v25, 0.0  ;;  %v6324_v0 = vpop.permute.xlu1 %6323 }
 0x491   :  { %6455 = vpow2.f32 %v1074_v23  ;;  %1101 = vadd.xlane.f32.xlu1 %v1100_v28  ;;  %v6326_v10 = vunpack.i.h.bf16 %v6324_v0  ;;  %v6325_v12 = vunpack.i.l.bf16 %v6324_v0 }
 0x492   :  { %v7022_v62 = vpop.eup %6447 }
 0x493   :  { %v7024_v34 = vpop.eup %6449  ;;  %v1106_v39 = vsel %vm979_vm3, %v7022_v62, 0.0  ;;  %v6104_v14 = vpack.c.bf16 %v6326_v10, %v6325_v12 }
 0x494   :  { %1107 = vadd.xlane.f32.xlu0 %v1106_v39  ;;  %v1115_v40 = vsel %vm979_vm3, %v7024_v34, 0.0 }
 0x495   :  { %1116 = vadd.xlane.f32.xlu1 %v1115_v40 }
 0x497   :  { %v7030_v46 = vpop.eup %6451 }
 0x498   :  { %v7032_v48 = vpop.eup %6453  ;;  %v1112_v50 = vsel %vm979_vm3, %v7030_v46, 0.0 }
 0x499   :  { %v1118_v51 = vsel %vm979_vm3, %v7032_v48, 0.0  ;;  %1113 = vadd.xlane.f32.xlu1 %v1112_v50 }
 0x49a   :  { %1119 = vadd.xlane.f32.xlu0 %v1118_v51 }
 0x49b   :  { %v7038_v53 = vpop.eup %6455 }
 0x49c   :  { %v1121_v55 = vsel %vm979_vm3, %v7038_v53, 0.0 }
 0x49d   :  { %1122 = vadd.xlane.f32.xlu1 %v1121_v55 }
 0x4ae   :  { %6333 = vrot.lane.b32.xlu1 %v6798_v44, %s6610_s24  ;;  %v6100_v44 = vpack.c.bf16 %v6321_v5, %v6320_v8 }
 0x4b0   :  { %6328 = vrot.lane.b32.xlu0 %v6784_v36, %s6610_s24 }
 0x4bd   :  { %v1078_v61 = vpop.xlane.xlu0 %1077 }
 0x4be   :  { %6457 = vrcp.f32 %v1078_v61 }
 0x4c0   :  { %v1081_v1 = vpop.xlane.xlu1 %1080 }
 0x4c1   :  { %6459 = vrcp.f32 %v1081_v1  ;;  %v1087_v33 = vpop.xlane.xlu0 %1086 }
 0x4c2   :  { %6461 = vrcp.f32 %v1087_v33 }
 0x4c5   :  { %v1084_v11 = vpop.xlane.xlu0 %1083 }
 0x4c6   :  { %6463 = vrcp.f32 %v1084_v11 }
 0x4c8   :  { %v6458_v16 = vpop.eup %6457 }
 0x4c9   :  { %v1140_v18 = vmul.f32 %v6458_v16, %v6966_v29 }
 0x4cb   :  { %v6460_v49 = vpop.eup %6459  ;;  %5714 = vmatprep.mubr.msk.f32.mxu0 %vm979_vm3, %v1140_v18 }
 0x4cc   :  { %v1141_v36 = vmul.f32 %v6460_v49, %v6968_v19  ;;  %v6462_v9 = vpop.eup %6461 }
 0x4cd   :  { %v1143_v29 = vmul.f32 %v6462_v9, %v6972_v45 }
 0x4ce   :  { %5715 = vmatmul.mubr.msk.f32.vlgmr.msra.gmra.mrb[12].mxu0 %vm979_vm3, %v1141_v36 }
 0x4cf   :  { %6095 = vmatpush3.bf16.msra.mxu0 %v6862_v30 }
 0x4d0   :  { %v6464_v26 = vpop.eup %6463  ;;  %6101 = vmatprep.subr.bf16.mxu0 %v6100_v44 }
 0x4d1   :  { %v1142_v13 = vmul.f32 %v6464_v26, %v6978_v20 }
 0x4d3   :  { %5721 = vmatprep.mubr.msk.f32.mxu1 %vm979_vm3, %v1142_v13 }
 0x4d4   :  { %5722 = vmatmul.mubr.msk.f32.vlgmr.msra.gmra.mrb[8].mxu1 %vm979_vm3, %v1143_v29 }
 0x4d5   :  { %6099 = vmatpush3.bf16.msra.mxu1 %v6865_v31 }
 0x4d6   :  { %6105 = vmatprep.subr.bf16.mxu1 %v6104_v14 }
 0x50e   :  { %v1093_v19 = vpop.xlane.xlu1 %1092 }
 0x50f   :  { %6465 = vrcp.f32 %v1093_v19 }
 0x512   :  { %v1090_v15 = vpop.xlane.xlu1 %1089 }
 0x513   :  { %6467 = vrcp.f32 %v1090_v15 }
 0x515   :  { %v1099_v30 = vpop.xlane.xlu0 %1098 }
 0x516   :  { %6469 = vrcp.f32 %v1099_v30 }
 0x519   :  { %v1096_v43 = vpop.xlane.xlu0 %1095  ;;  %v6466_v20 = vpop.eup %6465 }
 0x51a   :  { %6471 = vrcp.f32 %v1096_v43  ;;  %v1105_v47 = vpop.xlane.xlu1 %1104  ;;  %v1145_v31 = vmul.f32 %v6466_v20, %v6987_v58 }
 0x51b   :  { %6473 = vrcp.f32 %v1105_v47 }
 0x51d   :  { %v6468_v32 = vpop.eup %6467  ;;  %v1111_v45 = vpop.xlane.xlu0 %1110 }
 0x51e   :  { %v1102_v54 = vpop.xlane.xlu1 %1101  ;;  %v1144_v56 = vmul.f32 %v6468_v32, %v6993_v3 }
 0x51f   :  { %6475 = vrcp.f32 %v1102_v54 }
 0x520   :  { %5728 = vmatprep.mubr.msk.f32.mxu0 %vm979_vm3, %v1144_v56  ;;  %6477 = vrcp.f32 %v1111_v45  ;;  %v6470_v57 = vpop.eup %6469 }
 0x521   :  { %v1108_v21 = vpop.xlane.xlu0 %1107  ;;  %5729 = vmatmul.mubr.msk.f32.vlgmr.msra.gmra.mrb[14].mxu0 %vm979_vm3, %v1145_v31  ;;  %v1147_v3 = vmul.f32 %v6470_v57, %v6999_v24 }
 0x522   :  { %6479 = vrcp.f32 %v1108_v21  ;;  %6103 = vmatpush3.bf16.msra.mxu0 %v6100_v44  ;;  %v1117_v22 = vpop.xlane.xlu1 %1116 }
 0x523   :  { %6481 = vrcp.f32 %v1117_v22 }
 0x524   :  { %v6472_v23 = vpop.eup %6471 }
 0x525   :  { %v1146_v27 = vmul.f32 %v6472_v23, %v7005_v17  ;;  %v6474_v58 = vpop.eup %6473 }
 0x526   :  { %v1114_v28 = vpop.xlane.xlu1 %1113  ;;  %v1149_v61 = vmul.f32 %v6474_v58, %v7007_v42 }
 0x527   :  { %v1120_v39 = vpop.xlane.xlu0 %1119  ;;  %6483 = vrcp.f32 %v1114_v28  ;;  %5735 = vmatprep.mubr.msk.f32.mxu1 %vm979_vm3, %v1146_v27 }
 0x528   :  { %6485 = vrcp.f32 %v1120_v39  ;;  %5736 = vmatmul.mubr.msk.f32.vlgmr.msra.gmra.mrb[10].mxu1 %vm979_vm3, %v1147_v3 }
 0x529   :  { %v6476_v40 = vpop.eup %6475  ;;  %6107 = vmatpush3.bf16.msra.mxu1 %v6104_v14 }
 0x52a   :  { %v1123_v50 = vpop.xlane.xlu1 %1122  ;;  %v1148_v55 = vmul.f32 %v6476_v40, %v7016_v25  ;;  %v6478_v63 = vpop.eup %6477  ;;  %v1852_v25 = vld [vmem:[%s7750_s3] sm:$0xff] }
 0x52b   :  { %v6329_v51 = vpop.permute.xlu0 %6328  ;;  %6487 = vrcp.f32 %v1123_v50  ;;  %v1151_v16 = vmul.f32 %v6478_v63, %v7014_v59 }
 0x52c   :  { %v6331_v17 = vunpack.i.h.bf16 %v6329_v51  ;;  %v6330_v0 = vunpack.i.l.bf16 %v6329_v51  ;;  %v6480_v24 = vpop.eup %6479  ;;  %5742 = vmatprep.mubr.msk.f32.mxu0 %vm979_vm3, %v1148_v55 }
 0x52d   :  { %5743 = vmatmul.mubr.msk.f32.vlgmr.msra.gmra.mrb[16].mxu0 %vm979_vm3, %v1149_v61  ;;  %v1150_v33 = vmul.f32 %v6480_v24, %v7022_v62  ;;  %v6482_v42 = vpop.eup %6481 }
 0x52e   :  { %v6108_v1 = vpack.c.bf16 %v6331_v17, %v6330_v0  ;;  %v6334_v11 = vpop.permute.xlu1 %6333  ;;  %v1153_v59 = vmul.f32 %v6482_v42, %v7024_v34  ;;  %v1853_v34 = vld [vmem:[%s7750_s3 + $0x8] sm:$0xff] }
 0x52f   :  { %v6336_v18 = vunpack.i.h.bf16 %v6334_v11  ;;  %v6335_v5 = vunpack.i.l.bf16 %v6334_v11  ;;  %5749 = vmatprep.mubr.msk.f32.mxu1 %vm979_vm3, %v1150_v33 }
 0x530   :  { %6109 = vmatprep.subr.bf16.mxu0 %v6108_v1  ;;  %5750 = vmatmul.mubr.msk.f32.vlgmr.msra.gmra.mrb[12].mxu1 %vm979_vm3, %v1151_v16 }
 0x531   :  { %6111 = vmatpush3.bf16.msra.mxu0 %v6108_v1  ;;  %v6484_v8 = vpop.eup %6483  ;;  %v6112_v49 = vpack.c.bf16 %v6336_v18, %v6335_v5 }
 0x532   :  { %5766 = vmatprep.subr.mxu0 %v1852_v25  ;;  %v6486_v62 = vpop.eup %6485  ;;  %v1152_v36 = vmul.f32 %v6484_v8, %v7030_v46  ;;  %v1854_v46 = vld [vmem:[%s7750_s3 + $0x10] sm:$0xff]  ;;  %v2274_v8 = vsub.s32 3, %v6687_v35 }
 0x533   :  { %6113 = vmatprep.subr.bf16.mxu1 %v6112_v49  ;;  %v1154_v44 = vmul.f32 %v6486_v62, %v7032_v48  ;;  %v1855_v48 = vld [vmem:[%s7750_s3 + $0x18] sm:$0xff] }
 0x534   :  { %5756 = vmatprep.mubr.msk.f32.mxu0 %vm979_vm3, %v1152_v36  ;;  %6115 = vmatpush3.bf16.msra.mxu1 %v6112_v49 }
 0x535   :  { %v6488_v9 = vpop.eup %6487  ;;  %5757 = vmatmul.mubr.msk.f32.vlgmr.msra.gmra.mrb[18].mxu0 %vm979_vm3, %v1153_v59  ;;  %5763 = vmatprep.mubr.msk.f32.mxu1 %vm979_vm3, %v1154_v44 }
 0x536   :  { %v1155_v26 = vmul.f32 %v6488_v9, %v7038_v53  ;;  %5767 = vmatpush3.msra.mxu0 %v1852_v25  ;;  %5774 = vmatprep.subr.mxu1 %v1853_v34 }
 0x537   :  { %5782 = vmatprep.subr.mxu0 %v1854_v46 }
 0x538   :  { %5764 = vmatmul.mubr.msk.f32.vlgmr.msra.gmra.mrb[14].mxu1 %vm979_vm3, %v1155_v26  ;;  %v7124_v26 = vld [vmem:[%s7748_s6] sm:$0xff] }
 0x539   :  { %5775 = vmatpush3.msra.mxu1 %v1853_v34  ;;  %v2275_v34 = vrot.slane %v7124_v26, %v2274_v8 }
 0x53a   :  { %5790 = vmatprep.subr.mxu1 %v1855_v48 }
 0x5a1   :  { %v5716_v53 = vpop.f32.mrb[12].mxu0 }
 0x5a2   :  { %v1234_v10 = vpop.f32.mrb[13].mxu0 }
 0x5a3   :  { %5768 = vmatprep.mubr.msk.f32.mxu0 %vm242_vm1, %v1234_v10 }
 0x5a4   :  { %5769 = vmatmul.mubr.msk.f32.vlgmr.msra.gmra.mrb[20].mxu0 %vm242_vm1, %v5716_v53 }
 0x5a5   :  { %5783 = vmatpush3.msra.mxu0 %v1854_v46 }
 0x5a7   :  { %v5723_v12 = vpop.f32.mrb[8].mxu1 }
 0x5a8   :  { %v1321_v13 = vpop.f32.mrb[9].mxu1 }
 0x5a9   :  { %5771 = vmatprep.mubr.msk.f32.mxu0 %vm242_vm1, %v1321_v13 }
 0x5aa   :  { %5772 = vmatmul.mubr.msk.f32.gmra.mrb[22].mxu0 %vm242_vm1, %v5723_v12 }
 0x5f4   :  { %v5730_v29 = vpop.f32.mrb[14].mxu0 }
 0x5f5   :  { %v1408_v14 = vpop.f32.mrb[15].mxu0 }
 0x5f6   :  { %5776 = vmatprep.mubr.msk.f32.mxu1 %vm242_vm1, %v1408_v14 }
 0x5f7   :  { %5777 = vmatmul.mubr.msk.f32.vlgmr.msra.gmra.mrb[16].mxu1 %vm242_vm1, %v5730_v29 }
 0x5f8   :  { %5791 = vmatpush3.msra.mxu1 %v1855_v48 }
 0x5fb   :  { %v5737_v19 = vpop.f32.mrb[10].mxu1 }
 0x5fc   :  { %v1495_v15 = vpop.f32.mrb[11].mxu1 }
 0x5fd   :  { %5779 = vmatprep.mubr.msk.f32.mxu1 %vm242_vm1, %v1495_v15 }
 0x5fe   :  { %5780 = vmatmul.mubr.msk.f32.gmra.mrb[18].mxu1 %vm242_vm1, %v5737_v19 }
 0x600   :  { %v5744_v30 = vpop.f32.mrb[16].mxu0 }
 0x601   :  { %v1582_v43 = vpop.f32.mrb[17].mxu0 }
 0x602   :  { %5784 = vmatprep.mubr.msk.f32.mxu0 %vm242_vm1, %v1582_v43 }
 0x603   :  { %5785 = vmatmul.mubr.msk.f32.vlgmr.msra.gmra.mrb[24].mxu0 %vm242_vm1, %v5744_v30  ;;  %v5751_v47 = vpop.f32.mrb[12].mxu1 }
 0x604   :  { %v1669_v20 = vpop.f32.mrb[13].mxu1 }
 0x605   :  { %5787 = vmatprep.mubr.msk.f32.mxu0 %vm242_vm1, %v1669_v20 }
 0x607   :  { %5788 = vmatmul.mubr.msk.f32.gmra.mrb[26].mxu0 %vm242_vm1, %v5751_v47 }
 0x608   :  { %v5758_v32 = vpop.f32.mrb[18].mxu0 }
 0x609   :  { %v1756_v45 = vpop.f32.mrb[19].mxu0 }
 0x60a   :  { %5792 = vmatprep.mubr.msk.f32.mxu1 %vm242_vm1, %v1756_v45 }
 0x60b   :  { %v5765_v54 = vpop.f32.mrb[14].mxu1  ;;  %5793 = vmatmul.mubr.msk.f32.vlgmr.msra.gmra.mrb[20].mxu1 %vm242_vm1, %v5758_v32 }
 0x60c   :  { %v1843_v56 = vpop.f32.mrb[15].mxu1 }
 0x60d   :  { %5795 = vmatprep.mubr.msk.f32.mxu1 %vm242_vm1, %v1843_v56 }
 0x60f   :  { %5796 = vmatmul.mubr.msk.f32.gmra.mrb[22].mxu1 %vm242_vm1, %v5765_v54 }
 0x677   :  { %v5770_v31 = vpop.f32.mrb[20].mxu0 }
 0x678   :  { %v1934_v21 = vpop.f32.mrb[21].mxu0  ;;  %v2251_v27 = vsel %vm33_vm0, %v5770_v31, 0.0 }
 0x679   :  { %v2244_v3 = vsel %vm33_vm0, %v1934_v21, 0.0 }
 0x67d   :  { %v5773_v22 = vpop.f32.mrb[22].mxu0 }
 0x67e   :  { %v1944_v57 = vpop.f32.mrb[23].mxu0  ;;  %v2265_v55 = vsel %vm33_vm0, %v5773_v22, 0.0 }
 0x67f   :  { %v2258_v0 = vsel %vm33_vm0, %v1944_v57, 0.0 }
 0x6ca   :  { %v5778_v23 = vpop.f32.mrb[16].mxu1 }
 0x6cb   :  { %v2252_v28 = vsel %vm33_vm0, %v5778_v23, 0.0  ;;  %v2031_v39 = vpop.f32.mrb[17].mxu1 }
 0x6cc   :  { %v2253_v58 = vadd.f32 %v2252_v28, %v2251_v27  ;;  %v2245_v40 = vsel %vm33_vm0, %v2031_v39, 0.0 }
 0x6cd   :  { %v2246_v50 = vadd.f32 %v2245_v40, %v2244_v3 }
 0x6d1   :  { %v5781_v51 = vpop.f32.mrb[18].mxu1 }
 0x6d2   :  { %v2266_v63 = vsel %vm33_vm0, %v5781_v51, 0.0  ;;  %v2041_v17 = vpop.f32.mrb[19].mxu1 }
 0x6d3   :  { %v2267_v61 = vadd.f32 %v2266_v63, %v2265_v55  ;;  %v2259_v24 = vsel %vm33_vm0, %v2041_v17, 0.0 }
 0x6d4   :  { %v2260_v1 = vadd.f32 %v2259_v24, %v2258_v0 }
 0x6d6   :  { %v5786_v33 = vpop.f32.mrb[24].mxu0 }
 0x6d7   :  { %v2254_v11 = vsel %vm33_vm0, %v5786_v33, 0.0  ;;  %v2128_v16 = vpop.f32.mrb[25].mxu0 }
 0x6d8   :  { %v2255_v25 = vadd.f32 %v2254_v11, %v2253_v58  ;;  %v2247_v18 = vsel %vm33_vm0, %v2128_v16, 0.0  ;;  %v2352_v11 = vld [vmem:[%s7751_s4] sm:$0xff]  ;;  %v2353_v16 = vld [vmem:[%s7751_s4 + $0x8] sm:$0xff] }
 0x6d9   :  { %v2248_v5 = vadd.f32 %v2247_v18, %v2246_v50  ;;  %v2354_v18 = vld [vmem:[%s7751_s4 + $0x10] sm:$0xff] }
 0x6da   :  { %v5789_v42 = vpop.f32.mrb[26].mxu0 }
 0x6db   :  { %v2268_v49 = vsel %vm33_vm0, %v5789_v42, 0.0  ;;  %v2138_v62 = vpop.f32.mrb[27].mxu0 }
 0x6dc   :  { %v2269_v36 = vadd.f32 %v2268_v49, %v2267_v61  ;;  %v2261_v59 = vsel %vm33_vm0, %v2138_v62, 0.0 }
 0x6dd   :  { %v2262_v44 = vadd.f32 %v2261_v59, %v2260_v1 }
 0x6de   :  { %v5794_v9 = vpop.f32.mrb[20].mxu1 }
 0x6df   :  { %v2256_v46 = vsel %vm33_vm0, %v5794_v9, 0.0  ;;  %v2225_v48 = vpop.f32.mrb[21].mxu1 }
 0x6e0   :  { %v2257_v53 = vadd.f32 %v2256_v46, %v2255_v25  ;;  %v2249_v10 = vsel %vm33_vm0, %v2225_v48, 0.0  ;;  %v6116_v25 = vpack.c.bf16 %v2353_v16, %v2352_v11 }
 0x6e1   :  { %v2250_v12 = vadd.f32 %v2249_v10, %v2248_v5  ;;  %v2355_v5 = vld [vmem:[%s7751_s4 + $0x18] sm:$0xff]  ;;  %v2338_v10 = vsub.s32 4, %v6687_v35 }
 0x6e2   :  { %v2277_v13 = vadd.f32 %v2275_v34, %v2257_v53  ;;  %v5797_v29 = vpop.f32.mrb[22].mxu1  ;;  %6117 = vmatprep.subr.bf16.mxu0 %v6116_v25  ;;  %v6120_v42 = vpack.c.bf16 %v2355_v5, %v2354_v18 }
 0x6e3   :  { %v2276_v14 = vadd.f32 %v2275_v34, %v2250_v12  ;;  %v2270_v19 = vsel %vm33_vm0, %v5797_v29, 0.0  ;;  %v2235_v15 = vpop.f32.mrb[23].mxu1  ;;  %6119 = vmatpush3.bf16.msra.mxu0 %v6116_v25  ;;  %v2346_v29 = vsub.s32 5, %v6687_v35 }
 0x6e4   :  { %v2271_v30 = vadd.f32 %v2270_v19, %v2269_v36  ;;  %v2263_v43 = vsel %vm33_vm0, %v2235_v15, 0.0  ;;  %v2281_v47 = vadd.f32 %v2277_v13, %v6711_v2  ;;  %6121 = vmatprep.subr.bf16.mxu0 %v6120_v42 }
 0x6e5   :  { %v2264_v20 = vadd.f32 %v2263_v43, %v2262_v44  ;;  %v2280_v32 = vadd.f32 %v2276_v14, %v6706_v60  ;;  %v2339_v14 = vrot.slane %v7124_v26, %v2338_v10 }
 0x6e6   :  { %v2287_v45 = vsel %vm33_vm0, %v2281_v47, 0.0  ;;  %v2279_v54 = vadd.f32 %v2275_v34, %v2271_v30 }
 0x6e7   :  { %v2278_v56 = vadd.f32 %v2275_v34, %v2264_v20  ;;  %2288 = vadd.xlane.f32.xlu1 %v2287_v45  ;;  %v2284_v31 = vsel %vm33_vm0, %v2280_v32, 0.0  ;;  %6123 = vmatpush3.bf16.msra.mxu0 %v6120_v42 }
 0x6e8   :  { %2285 = vadd.xlane.f32.xlu0 %v2284_v31  ;;  %v2283_v57 = vadd.f32 %v2279_v54, %v6719_v6 }
 0x6e9   :  { %v2282_v21 = vadd.f32 %v2278_v56, %v6713_v4 }
 0x6ea   :  { %v2293_v2 = vsel %vm33_vm0, %v2283_v57, 0.0 }
 0x6eb   :  { %v2290_v22 = vsel %vm33_vm0, %v2282_v21, 0.0 }
 0x6ec   :  { %2291 = vadd.xlane.f32.xlu0 %v2290_v22 }
 0x6f0   :  { %2294 = vadd.xlane.f32.xlu0 %v2293_v2 }
 0x774   :  { %v2289_v23 = vpop.xlane.xlu1 %2288 }
 0x775   :  { %v2297_v60 = vmul.f32 0.03125, %v2289_v23  ;;  %v2286_v27 = vpop.xlane.xlu0 %2285 }
 0x776   :  { %v2296_v28 = vmul.f32 0.03125, %v2286_v27  ;;  %v2493_v27 = vld [vmem:[%s7752_s5] sm:$0xff] }
 0x777   :  { %v2301_v39 = vsub.f32 %v2281_v47, %v2297_v60  ;;  %v2347_v47 = vrot.slane %v7124_v26, %v2346_v29 }
 0x778   :  { %v2300_v3 = vsub.f32 %v2280_v32, %v2296_v28  ;;  %v2494_v28 = vld [vmem:[%s7752_s5 + $0x8] sm:$0xff] }
 0x779   :  { %v2292_v58 = vpop.xlane.xlu0 %2291  ;;  %v2305_v40 = vmul.f32 %v2301_v39, %v2301_v39 }
 0x77a   :  { %v2298_v50 = vmul.f32 0.03125, %v2292_v58  ;;  %v2304_v51 = vmul.f32 %v2300_v3, %v2300_v3  ;;  %v2496_v58 = vld [vmem:[%s7752_s5 + $0x18] sm:$0xff] }
 0x77b   :  { %v2311_v4 = vsel %vm33_vm0, %v2305_v40, 0.0 }
 0x77c   :  { %v2302_v55 = vsub.f32 %v2282_v21, %v2298_v50  ;;  %2312 = vadd.xlane.f32.xlu1 %v2311_v4  ;;  %v2308_v6 = vsel %vm33_vm0, %v2304_v51, 0.0  ;;  %v2497_v50 = vld [vmem:[%s7752_s5 + $0x20] sm:$0xff]  ;;  %v2498_v51 = vld [vmem:[%s7752_s5 + $0x28] sm:$0xff] }
 0x77d   :  { %2309 = vadd.xlane.f32.xlu0 %v2308_v6  ;;  %v2295_v63 = vpop.xlane.xlu0 %2294  ;;  %v6132_v4 = vpack.c.bf16 %v2498_v51, %v2497_v50  ;;  %v2500_v6 = vld [vmem:[%s7752_s5 + $0x38] sm:$0xff] }
 0x77e   :  { %v2299_v17 = vmul.f32 0.03125, %v2295_v63  ;;  %v2306_v0 = vmul.f32 %v2302_v55, %v2302_v55 }
 0x780   :  { %v2303_v61 = vsub.f32 %v2283_v57, %v2299_v17  ;;  %v2314_v24 = vsel %vm33_vm0, %v2306_v0, 0.0  ;;  %v2358_v17 = vsub.s32 6, %v6687_v35 }
 0x781   :  { %2315 = vadd.xlane.f32.xlu0 %v2314_v24 }
 0x782   :  { %v2307_v1 = vmul.f32 %v2303_v61, %v2303_v61  ;;  %v2359_v0 = vrot.slane %v7124_v26, %v2358_v17 }
 0x784   :  { %v2317_v33 = vsel %vm33_vm0, %v2307_v1, 0.0 }
 0x785   :  { %2318 = vadd.xlane.f32.xlu1 %v2317_v33 }
 0x809   :  { %v2313_v49 = vpop.xlane.xlu1 %2312 }
 0x80a   :  { %v2321_v62 = vmul.f32 0.03125, %v2313_v49  ;;  %v2310_v36 = vpop.xlane.xlu0 %2309 }
 0x80b   :  { %v2320_v59 = vmul.f32 0.03125, %v2310_v36 }
 0x80c   :  { %v2325_v44 = vadd.f32 1e-12, %v2321_v62 }
 0x80d   :  { %v2324_v9 = vadd.f32 1e-12, %v2320_v59 }
 0x80e   :  { %6489 = vrsqrt.f32 %v2325_v44  ;;  %v2316_v34 = vpop.xlane.xlu0 %2315 }
 0x80f   :  { %6491 = vrsqrt.f32 %v2324_v9  ;;  %v2322_v46 = vmul.f32 0.03125, %v2316_v34 }
 0x811   :  { %v2326_v48 = vadd.f32 1e-12, %v2322_v46 }
 0x812   :  { %v2319_v53 = vpop.xlane.xlu1 %2318 }
 0x813   :  { %6493 = vrsqrt.f32 %v2326_v48  ;;  %v2323_v12 = vmul.f32 0.03125, %v2319_v53 }
 0x815   :  { %v2327_v13 = vadd.f32 1e-12, %v2323_v12 }
 0x817   :  { %6495 = vrsqrt.f32 %v2327_v13 }
 0x818   :  { %v6490_v19 = vpop.eup %6489 }
 0x819   :  { %v6492_v15 = vpop.eup %6491  ;;  %v2333_v30 = vmul.f32 %v6490_v19, %v2301_v39  ;;  %v6124_v39 = vpack.c.bf16 %v2494_v28, %v2493_v27 }
 0x81a   :  { %v2332_v43 = vmul.f32 %v6492_v15, %v2300_v3  ;;  %v2495_v3 = vld [vmem:[%s7752_s5 + $0x10] sm:$0xff] }
 0x81b   :  { %v2341_v20 = vmul.f32 %v2339_v14, %v2333_v30  ;;  %6125 = vmatprep.subr.bf16.mxu1 %v6124_v39  ;;  %v6128_v40 = vpack.c.bf16 %v2496_v58, %v2495_v3 }
 0x81c   :  { %v2340_v32 = vmul.f32 %v2339_v14, %v2332_v43  ;;  %6127 = vmatpush3.bf16.msra.mxu1 %v6124_v39 }
 0x81d   :  { %v6494_v45 = vpop.eup %6493  ;;  %v7167_v31 = vadd.f32 %v2347_v47, %v2341_v20  ;;  %6129 = vmatprep.subr.bf16.mxu1 %v6128_v40 }
 0x81e   :  { %v7165_v54 = vadd.f32 %v2347_v47, %v2340_v32  ;;  %v2334_v56 = vmul.f32 %v6494_v45, %v2302_v55  ;;  %v2499_v55 = vld [vmem:[%s7752_s5 + $0x30] sm:$0xff] }
 0x81f   :  { %v6136_v63 = vpack.c.bf16 %v2500_v6, %v2499_v55 }
 0x820   :  { %5806 = vmatprep.mubr.msk.f32.mxu0 %vm33_vm0, %v7165_v54  ;;  %v2342_v21 = vmul.f32 %v2339_v14, %v2334_v56  ;;  %6131 = vmatpush3.bf16.msra.mxu1 %v6128_v40 }
 0x821   :  { %v6496_v22 = vpop.eup %6495  ;;  %5807 = vmatmul.mubr.msk.f32.vlgmr.msra.gmra.mrb[28].mxu0 %vm33_vm0, %v7167_v31  ;;  %6133 = vmatprep.subr.bf16.mxu1 %v6132_v4 }
 0x822   :  { %v7173_v57 = vadd.f32 %v2347_v47, %v2342_v21  ;;  %v2335_v2 = vmul.f32 %v6496_v22, %v2303_v61 }
 0x824   :  { %5809 = vmatprep.mubr.msk.f32.mxu0 %vm33_vm0, %v7173_v57  ;;  %v2343_v23 = vmul.f32 %v2339_v14, %v2335_v2  ;;  %6135 = vmatpush3.bf16.msra.mxu1 %v6132_v4  ;;  %v2503_v4 = vsub.s32 7, %v6687_v35 }
 0x825   :  { %6137 = vmatprep.subr.bf16.mxu1 %v6136_v63 }
 0x826   :  { %v7177_v60 = vadd.f32 %v2347_v47, %v2343_v23  ;;  %v2504_v55 = vrot.slane %v7124_v26, %v2503_v4 }
 0x828   :  { %5810 = vmatmul.mubr.msk.f32.gmra.mrb[30].mxu0 %vm33_vm0, %v7177_v60  ;;  %6139 = vmatpush3.bf16.msra.mxu1 %v6136_v63 }
 0x8f4   :  { %v5808_v61 = vpop.f32.mrb[28].mxu0 }
 0x8f5   :  { %v2444_v24 = vadd.f32 %v5808_v61, %v2359_v0  ;;  %v2438_v1 = vpop.f32.mrb[29].mxu0 }
 0x8f6   :  { %v2439_v33 = vadd.f32 %v2438_v1, %v2359_v0 }
 0x8f7   :  { %v2462_v11 = vmul.f32 0.044715, %v2444_v24  ;;  %v2458_v22 = vmul.f32 0.5, %v2444_v24 }
 0x8f8   :  { %v2461_v16 = vmul.f32 0.044715, %v2439_v33  ;;  %v2457_v56 = vmul.f32 0.5, %v2439_v33 }
 0x8f9   :  { %v2466_v25 = vmul.f32 %v2462_v11, %v2444_v24 }
 0x8fa   :  { %v2465_v18 = vmul.f32 %v2461_v16, %v2439_v33 }
 0x8fb   :  { %v2470_v5 = vmul.f32 %v2466_v25, %v2444_v24  ;;  %v5811_v42 = vpop.f32.mrb[30].mxu0 }
 0x8fc   :  { %v2469_v49 = vmul.f32 %v2465_v18, %v2439_v33  ;;  %v2454_v62 = vadd.f32 %v5811_v42, %v2359_v0  ;;  %v2448_v36 = vpop.f32.mrb[31].mxu0 }
 0x8fd   :  { %v2474_v59 = vadd.f32 %v2470_v5, %v2444_v24  ;;  %v2449_v44 = vadd.f32 %v2448_v36, %v2359_v0 }
 0x8fe   :  { %v2473_v9 = vadd.f32 %v2469_v49, %v2439_v33  ;;  %v2464_v34 = vmul.f32 0.044715, %v2454_v62  ;;  %v2460_v40 = vmul.f32 0.5, %v2454_v62 }
 0x8ff   :  { %v2478_v46 = vmul.f32 0.7978846, %v2474_v59  ;;  %v2463_v48 = vmul.f32 0.044715, %v2449_v44  ;;  %v2459_v3 = vmul.f32 0.5, %v2449_v44 }
 0x900   :  { %v2468_v53 = vmul.f32 %v2464_v34, %v2454_v62  ;;  %v2477_v12 = vmul.f32 0.7978846, %v2473_v9 }
 0x901   :  { %6497 = vtanh.f32 %v2478_v46  ;;  %v2467_v13 = vmul.f32 %v2463_v48, %v2449_v44 }
 0x902   :  { %v2472_v14 = vmul.f32 %v2468_v53, %v2454_v62  ;;  %6499 = vtanh.f32 %v2477_v12 }
 0x903   :  { %v2471_v19 = vmul.f32 %v2467_v13, %v2449_v44 }
 0x904   :  { %v2476_v15 = vadd.f32 %v2472_v14, %v2454_v62 }
 0x905   :  { %v2475_v30 = vadd.f32 %v2471_v19, %v2449_v44 }
 0x906   :  { %v2480_v43 = vmul.f32 0.7978846, %v2476_v15 }
 0x907   :  { %v2479_v47 = vmul.f32 0.7978846, %v2475_v30 }
 0x908   :  { %6501 = vtanh.f32 %v2480_v43 }
 0x909   :  { %6503 = vtanh.f32 %v2479_v47 }
 0x90b   :  { %v6498_v20 = vpop.eup %6497 }
 0x90c   :  { %v6500_v32 = vpop.eup %6499  ;;  %v2486_v45 = vadd.f32 1.0, %v6498_v20  ;;  %v5320_v20 = vld [vmem:[%s7747_s2 + $0x20] sm:$0xff] }
 0x90d   :  { %v2485_v21 = vadd.f32 1.0, %v6500_v32  ;;  %v5321_v32 = vld [vmem:[%s7747_s2 + $0x28] sm:$0xff] }
 0x90e   :  { %v2490_v23 = vmul.f32 %v2486_v45, %v2458_v22  ;;  %v6140_v45 = vpack.c.bf16 %v5321_v32, %v5320_v20 }
 0x90f   :  { %v2489_v2 = vmul.f32 %v2485_v21, %v2457_v56  ;;  %v5322_v56 = vld [vmem:[%s7747_s2 + $0x30] sm:$0xff]  ;;  %v5323_v21 = vld [vmem:[%s7747_s2 + $0x38] sm:$0xff] }
 0x910   :  { %6141 = vmatprep.subr.bf16.mxu0 %v6140_v45  ;;  %v6144_v22 = vpack.c.bf16 %v5323_v21, %v5322_v56 }
 0x911   :  { %5828 = vmatprep.mubr.msk.f32.mxu1 %vm2505_vm4, %v2489_v2  ;;  %6143 = vmatpush3.bf16.msra.mxu0 %v6140_v45 }
 0x912   :  { %v6502_v27 = vpop.eup %6501  ;;  %5829 = vmatmul.mubr.msk.f32.vlgmr.msra.gmra.mrb[24].mxu1 %vm2505_vm4, %v2490_v23  ;;  %6145 = vmatprep.subr.bf16.mxu0 %v6144_v22 }
 0x913   :  { %v6504_v28 = vpop.eup %6503  ;;  %v2488_v39 = vadd.f32 1.0, %v6502_v27 }
 0x914   :  { %v2487_v58 = vadd.f32 1.0, %v6504_v28 }
 0x915   :  { %v2492_v51 = vmul.f32 %v2488_v39, %v2460_v40  ;;  %6147 = vmatpush3.bf16.msra.mxu0 %v6144_v22 }
 0x916   :  { %v2491_v50 = vmul.f32 %v2487_v58, %v2459_v3 }
 0x918   :  { %5831 = vmatprep.mubr.msk.f32.mxu1 %vm2505_vm4, %v2491_v50 }
 0x919   :  { %5832 = vmatmul.mubr.msk.f32.gmra.mrb[26].mxu1 %vm2505_vm4, %v2492_v51 }
 0x9e5   :  { %v5830_v6 = vpop.f32.mrb[24].mxu1 }
 0x9e6   :  { %v2590_v63 = vadd.f32 %v5830_v6, %v2504_v55  ;;  %v2584_v0 = vpop.f32.mrb[25].mxu1  ;;  %v27_v6 = vld [vmem:[%s7748_s6 + $0x8] sm:$0xff] }
 0x9e7   :  { %v2585_v61 = vadd.f32 %v2584_v0, %v2504_v55  ;;  %v2662_v0 = vrot.slane %v27_v6, %v6693_v37 }
 0x9e8   :  { %v2604_v24 = vadd.f32 %v2590_v63, %v7167_v31 }
 0x9e9   :  { %v2603_v1 = vadd.f32 %v2585_v61, %v7165_v54 }
 0x9ea   :  { %v2610_v33 = vsel %vm33_vm0, %v2604_v24, 0.0 }
 0x9eb   :  { %2611 = vadd.xlane.f32.xlu1 %v2610_v33  ;;  %v2607_v11 = vsel %vm33_vm0, %v2603_v1, 0.0 }
 0x9ec   :  { %2608 = vadd.xlane.f32.xlu0 %v2607_v11  ;;  %v5833_v16 = vpop.f32.mrb[26].mxu1  ;;  %v2670_v11 = vrot.slane %v27_v6, %v6702_v52 }
 0x9ed   :  { %v2600_v25 = vadd.f32 %v5833_v16, %v2504_v55  ;;  %v2594_v18 = vpop.f32.mrb[27].mxu1 }
 0x9ee   :  { %v2595_v5 = vadd.f32 %v2594_v18, %v2504_v55 }
 0x9ef   :  { %v2606_v26 = vadd.f32 %v2600_v25, %v7177_v60 }
 0x9f0   :  { %v2605_v42 = vadd.f32 %v2595_v5, %v7173_v57 }
 0x9f1   :  { %v2616_v49 = vsel %vm33_vm0, %v2606_v26, 0.0 }
 0x9f2   :  { %2617 = vadd.xlane.f32.xlu1 %v2616_v49  ;;  %v2613_v31 = vsel %vm33_vm0, %v2605_v42, 0.0 }
 0x9f3   :  { %2614 = vadd.xlane.f32.xlu0 %v2613_v31 }
 0xa78   :  { %v2612_v54 = vpop.xlane.xlu1 %2611 }
 0xa79   :  { %v2620_v62 = vmul.f32 0.03125, %v2612_v54  ;;  %v2609_v36 = vpop.xlane.xlu0 %2608 }
 0xa7a   :  { %v2619_v59 = vmul.f32 0.03125, %v2609_v36 }
 0xa7b   :  { %v2624_v44 = vsub.f32 %v2604_v24, %v2620_v62 }
 0xa7c   :  { %v2623_v9 = vsub.f32 %v2603_v1, %v2619_v59  ;;  %v2683_v59 = vrot.slane %v27_v6, %v111_v7 }
 0xa7d   :  { %v2628_v34 = vmul.f32 %v2624_v44, %v2624_v44 }
 0xa7e   :  { %v2627_v46 = vmul.f32 %v2623_v9, %v2623_v9 }
 0xa7f   :  { %v2618_v48 = vpop.xlane.xlu1 %2617  ;;  %v2634_v53 = vsel %vm33_vm0, %v2628_v34, 0.0 }
 0xa80   :  { %v2622_v60 = vmul.f32 0.03125, %v2618_v48  ;;  %2635 = vadd.xlane.f32.xlu1 %v2634_v53  ;;  %v2615_v57 = vpop.xlane.xlu0 %2614  ;;  %v2631_v12 = vsel %vm33_vm0, %v2627_v46, 0.0 }
 0xa81   :  { %v2621_v13 = vmul.f32 0.03125, %v2615_v57  ;;  %2632 = vadd.xlane.f32.xlu0 %v2631_v12 }
 0xa82   :  { %v2626_v14 = vsub.f32 %v2606_v26, %v2622_v60 }
 0xa83   :  { %v2625_v19 = vsub.f32 %v2605_v42, %v2621_v13 }
 0xa84   :  { %v2630_v15 = vmul.f32 %v2626_v14, %v2626_v14 }
 0xa85   :  { %v2629_v30 = vmul.f32 %v2625_v19, %v2625_v19 }
 0xa86   :  { %v2640_v43 = vsel %vm33_vm0, %v2630_v15, 0.0 }
 0xa87   :  { %2641 = vadd.xlane.f32.xlu1 %v2640_v43  ;;  %v2637_v47 = vsel %vm33_vm0, %v2629_v30, 0.0 }
 0xa88   :  { %2638 = vadd.xlane.f32.xlu0 %v2637_v47 }
 0xb0d   :  { %v2636_v2 = vpop.xlane.xlu1 %2635 }
 0xb0e   :  { %v2644_v23 = vmul.f32 0.03125, %v2636_v2  ;;  %v2633_v27 = vpop.xlane.xlu0 %2632 }
 0xb0f   :  { %v2643_v28 = vmul.f32 0.03125, %v2633_v27 }
 0xb10   :  { %v2648_v39 = vadd.f32 1e-12, %v2644_v23 }
 0xb11   :  { %v2647_v3 = vadd.f32 1e-12, %v2643_v28 }
 0xb12   :  { %6505 = vrsqrt.f32 %v2648_v39 }
 0xb13   :  { %6507 = vrsqrt.f32 %v2647_v3 }
 0xb14   :  { %v2642_v58 = vpop.xlane.xlu1 %2641 }
 0xb15   :  { %v2646_v40 = vmul.f32 0.03125, %v2642_v58  ;;  %v2639_v50 = vpop.xlane.xlu0 %2638 }
 0xb16   :  { %v2645_v51 = vmul.f32 0.03125, %v2639_v50 }
 0xb17   :  { %v2650_v55 = vadd.f32 1e-12, %v2646_v40 }
 0xb18   :  { %v2649_v63 = vadd.f32 1e-12, %v2645_v51 }
 0xb19   :  { %6509 = vrsqrt.f32 %v2650_v55 }
 0xb1a   :  { %6511 = vrsqrt.f32 %v2649_v63 }
 0xb1c   :  { %v6506_v61 = vpop.eup %6505 }
 0xb1d   :  { %v6508_v24 = vpop.eup %6507  ;;  %v2656_v1 = vmul.f32 %v6506_v61, %v2624_v44 }
 0xb1e   :  { %v2655_v33 = vmul.f32 %v6508_v24, %v2623_v9 }
 0xb1f   :  { %v2664_v16 = vmul.f32 %v2662_v0, %v2656_v1 }
 0xb20   :  { %v2663_v25 = vmul.f32 %v2662_v0, %v2655_v33 }
 0xb21   :  { %v7248_v26 = vadd.f32 %v2670_v11, %v2664_v16 }
 0xb22   :  { %v7246_v18 = vadd.f32 %v2670_v11, %v2663_v25 }
 0xb23   :  { %v6510_v5 = vpop.eup %6509 }
 0xb24   :  { %v6512_v42 = vpop.eup %6511  ;;  %5842 = vmatprep.mubr.msk.f32.mxu0 %vm33_vm0, %v7246_v18  ;;  %v2658_v49 = vmul.f32 %v6510_v5, %v2626_v14 }
 0xb25   :  { %5843 = vmatmul.mubr.msk.f32.vlgmr.msra.gmra.mrb[32].mxu0 %vm33_vm0, %v7248_v26  ;;  %v2657_v37 = vmul.f32 %v6512_v42, %v2625_v19 }
 0xb26   :  { %v2666_v31 = vmul.f32 %v2662_v0, %v2658_v49 }
 0xb27   :  { %v2665_v54 = vmul.f32 %v2662_v0, %v2657_v37 }
 0xb28   :  { %v7256_v36 = vadd.f32 %v2670_v11, %v2666_v31 }
 0xb29   :  { %v7254_v62 = vadd.f32 %v2670_v11, %v2665_v54 }
 0xb2b   :  { %5845 = vmatprep.mubr.msk.f32.mxu0 %vm33_vm0, %v7254_v62 }
 0xb2c   :  { %5846 = vmatmul.mubr.msk.f32.gmra.mrb[34].mxu0 %vm33_vm0, %v7256_v36 }
 0xbf8   :  { %v5844_v44 = vpop.f32.mrb[32].mxu0 }
 0xbf9   :  { %v2768_v9 = vadd.f32 %v5844_v44, %v2683_v59  ;;  %v2762_v34 = vpop.f32.mrb[33].mxu0 }
 0xbfa   :  { %v2763_v46 = vadd.f32 %v2762_v34, %v2683_v59 }
 0xbfb   :  { %2787 = vrot.lane.b32.xlu1 %v2768_v9, %s6606_s20 }
 0xbfc   :  { %2785 = vrot.lane.b32.xlu0 %v2763_v46, %s6606_s20  ;;  %5852 = vmatprep.mubr.msk.f32.mxu0 %vm242_vm1, %v2763_v46  ;;  %v6337_v7 = vpack.i.bf16 %v2768_v9, %v2763_v46 }
 0xbff   :  { %v5847_v48 = vpop.f32.mrb[34].mxu0 }
 0xc00   :  { %v2778_v53 = vadd.f32 %v5847_v48, %v2683_v59  ;;  %2793 = vrot.lane.b32.xlu0 %v2763_v46, %s6607_s21  ;;  %v2772_v60 = vpop.f32.mrb[35].mxu0 }
 0xc01   :  { %v2773_v57 = vadd.f32 %v2772_v60, %v2683_v59 }
 0xc02   :  { %2791 = vrot.lane.b32.xlu1 %v2778_v53, %s6606_s20 }
 0xc03   :  { %5859 = vmatprep.mubr.msk.f32.mxu1 %vm242_vm1, %v2773_v57  ;;  %v6342_v12 = vpack.i.bf16 %v2778_v53, %v2773_v57 }
 0xc04   :  { %2797 = vrot.lane.b32.xlu0 %v2773_v57, %s6607_s21 }
 0xc06   :  { %2789 = vrot.lane.b32.xlu1 %v2773_v57, %s6606_s20 }
 0xc08   :  { %2801 = vrot.lane.b32.xlu0 %v2763_v46, %s6608_s22 }
 0xc0a   :  { %2795 = vrot.lane.b32.xlu1 %v2768_v9, %s6607_s21 }
 0xc0c   :  { %2805 = vrot.lane.b32.xlu0 %v2773_v57, %s6608_s22 }
 0xc0e   :  { %2799 = vrot.lane.b32.xlu1 %v2778_v53, %s6607_s21 }
 0xc10   :  { %6338 = vrot.lane.b32.xlu0 %v6337_v7, %s6609_s23 }
 0xc12   :  { %2803 = vrot.lane.b32.xlu1 %v2768_v9, %s6608_s22 }
 0xc16   :  { %2807 = vrot.lane.b32.xlu1 %v2778_v53, %s6608_s22 }
 0xc1a   :  { %6343 = vrot.lane.b32.xlu1 %v6342_v12, %s6609_s23 }
 0xc6d   :  { %v2788_v13 = vpop.permute.xlu1 %2787 }
 0xc6e   :  { %v2786_v14 = vpop.permute.xlu0 %2785 }
 0xc6f   :  { %v6347_v19 = vpack.i.bf16 %v2788_v13, %v2786_v14 }
 0xc71   :  { %6348 = vrot.lane.b32.xlu0 %v6347_v19, %s6609_s23 }
 0xc72   :  { %v2794_v15 = vpop.permute.xlu0 %2793 }
 0xc74   :  { %v7281_v30 = vpop.permute.xlu1 %2791 }
 0xc76   :  { %v7283_v43 = vpop.permute.xlu0 %2797 }
 0xc78   :  { %v2790_v47 = vpop.permute.xlu1 %2789 }
 0xc79   :  { %v6352_v20 = vpack.i.bf16 %v7281_v30, %v2790_v47 }
 0xc7a   :  { %v7286_v32 = vpop.permute.xlu0 %2801 }
 0xc7b   :  { %6353 = vrot.lane.b32.xlu1 %v6352_v20, %s6609_s23 }
 0xc7c   :  { %v7289_v45 = vpop.permute.xlu1 %2795 }
 0xc7d   :  { %v7292_v56 = vpack.i.bf16 %v7289_v45, %v2794_v15 }
 0xc7e   :  { %v7294_v21 = vpop.permute.xlu0 %2805 }
 0xc7f   :  { %6358 = vrot.lane.b32.xlu0 %v7292_v56, %s6609_s23 }
 0xc80   :  { %v7298_v22 = vpop.permute.xlu1 %2799 }
 0xc81   :  { %v7302_v2 = vpack.i.bf16 %v7298_v22, %v7283_v43 }
 0xc82   :  { %v6339_v23 = vpop.permute.xlu0 %6338 }
 0xc83   :  { %v6341_v27 = vunpack.i.h.bf16 %v6339_v23  ;;  %v6340_v28 = vunpack.i.l.bf16 %v6339_v23  ;;  %6363 = vrot.lane.b32.xlu1 %v7302_v2, %s6609_s23 }
 0xc84   :  { %v7306_v39 = vpop.permute.xlu1 %2803 }
 0xc85   :  { %v6148_v3 = vpack.c.bf16 %v6341_v27, %v6340_v28  ;;  %v7310_v58 = vpack.i.bf16 %v7306_v39, %v7286_v32 }
 0xc87   :  { %6368 = vrot.lane.b32.xlu0 %v7310_v58, %s6609_s23  ;;  %6150 = vmatprep.subr.msk.bf16.mxu0 %vm6790_vm2, %v6148_v3 }
 0xc88   :  { %v7316_v40 = vpop.permute.xlu1 %2807  ;;  %6153 = vmatpush3.bf16.xpose.msk.msra.mxu0 %vm6790_vm2, %v6148_v3 }
 0xc89   :  { %v7322_v50 = vpack.i.bf16 %v7316_v40, %v7294_v21 }
 0xc8b   :  { %6378 = vrot.lane.b32.xlu0 %v6337_v7, %s6610_s24  ;;  %6373 = vrot.lane.b32.xlu1 %v7322_v50, %s6609_s23 }
 0xc8c   :  { %v6344_v51 = vpop.permute.xlu1 %6343 }
 0xc8d   :  { %v6346_v55 = vunpack.i.h.bf16 %v6344_v51  ;;  %v6345_v6 = vunpack.i.l.bf16 %v6344_v51 }
 0xc8f   :  { %v6154_v63 = vpack.c.bf16 %v6346_v55, %v6345_v6  ;;  %6383 = vrot.lane.b32.xlu1 %v6342_v12, %s6610_s24  ;;  %5853 = vmatmul.mubr.msk.f32.vlgmr.msra.gmra.mrb[36].mxu0 %vm242_vm1, %v2768_v9  ;;  %v6602_v55 = vld [vmem:[%s7749_s1] ss:$0 sm:$0xff] }
 0xc90   :  { %5866 = vmatprep.mubr.msk.f32.mxu0 %vm242_vm1, %v2786_v14 }
 0xc91   :  { %6156 = vmatprep.subr.msk.bf16.mxu1 %vm6790_vm2, %v6154_v63 }
 0xc92   :  { %6159 = vmatpush3.bf16.xpose.msk.msra.mxu1 %vm6790_vm2, %v6154_v63 }
 0xc93   :  { %6388 = vrot.lane.b32.xlu1 %v6347_v19, %s6610_s24 }
 0xc97   :  { %6393 = vrot.lane.b32.xlu1 %v6352_v20, %s6610_s24 }
 0xc99   :  { %5860 = vmatmul.mubr.msk.f32.vlgmr.msra.gmra.mrb[28].mxu1 %vm242_vm1, %v2778_v53 }
 0xc9a   :  { %5873 = vmatprep.mubr.msk.f32.mxu1 %vm242_vm1, %v2790_v47 }
 0xce3   :  { %v6349_v0 = vpop.permute.xlu0 %6348 }
 0xce4   :  { %v6351_v61 = vunpack.i.h.bf16 %v6349_v0  ;;  %v6350_v24 = vunpack.i.l.bf16 %v6349_v0 }
 0xce6   :  { %v6160_v1 = vpack.c.bf16 %v6351_v61, %v6350_v24 }
 0xce8   :  { %6162 = vmatprep.subr.msk.bf16.mxu0 %vm6790_vm2, %v6160_v1 }
 0xce9   :  { %6165 = vmatpush3.bf16.xpose.msk.msra.mxu0 %vm6790_vm2, %v6160_v1 }
 0xced   :  { %v6354_v33 = vpop.permute.xlu1 %6353 }
 0xcee   :  { %v6356_v11 = vunpack.i.h.bf16 %v6354_v33  ;;  %v6355_v16 = vunpack.i.l.bf16 %v6354_v33 }
 0xcf0   :  { %v6166_v25 = vpack.c.bf16 %v6356_v11, %v6355_v16  ;;  %5867 = vmatmul.mubr.msk.f32.vlgmr.msra.gmra.mrb[38].mxu0 %vm242_vm1, %v2788_v13  ;;  %v6603_v11 = vld [vmem:[%s7749_s1 + $0x1] ss:$0 sm:$0xff] }
 0xcf1   :  { %v6359_v5 = vpop.permute.xlu0 %6358  ;;  %5880 = vmatprep.mubr.msk.f32.mxu0 %vm242_vm1, %v2794_v15 }
 0xcf2   :  { %v6361_v42 = vunpack.i.h.bf16 %v6359_v5  ;;  %v6360_v49 = vunpack.i.l.bf16 %v6359_v5  ;;  %6168 = vmatprep.subr.msk.bf16.mxu1 %vm6790_vm2, %v6166_v25 }
 0xcf3   :  { %6171 = vmatpush3.bf16.xpose.msk.msra.mxu1 %vm6790_vm2, %v6166_v25 }
 0xcf4   :  { %v6172_v37 = vpack.c.bf16 %v6361_v42, %v6360_v49 }
 0xcf5   :  { %v6364_v31 = vpop.permute.xlu1 %6363 }
 0xcf6   :  { %v6366_v54 = vunpack.i.h.bf16 %v6364_v31  ;;  %v6365_v59 = vunpack.i.l.bf16 %v6364_v31  ;;  %6174 = vmatprep.subr.msk.bf16.mxu0 %vm6790_vm2, %v6172_v37 }
 0xcf7   :  { %6177 = vmatpush3.bf16.xpose.msk.msra.mxu0 %vm6790_vm2, %v6172_v37 }
 0xcf8   :  { %v6178_v44 = vpack.c.bf16 %v6366_v54, %v6365_v59 }
 0xcf9   :  { %v6369_v9 = vpop.permute.xlu0 %6368 }
 0xcfa   :  { %v6371_v34 = vunpack.i.h.bf16 %v6369_v9  ;;  %v6370_v46 = vunpack.i.l.bf16 %v6369_v9  ;;  %5874 = vmatmul.mubr.msk.f32.vlgmr.msra.gmra.mrb[30].mxu1 %vm242_vm1, %v7281_v30  ;;  %6180 = vmatprep.subr.msk.bf16.mxu1 %vm6790_vm2, %v6178_v44 }
 0xcfb   :  { %6183 = vmatpush3.bf16.xpose.msk.msra.mxu1 %vm6790_vm2, %v6178_v44  ;;  %5887 = vmatprep.mubr.msk.f32.mxu1 %vm242_vm1, %v7283_v43 }
 0xcfc   :  { %v6184_v48 = vpack.c.bf16 %v6371_v34, %v6370_v46 }
 0xcfd   :  { %v6374_v53 = vpop.permute.xlu1 %6373  ;;  %v6379_v60 = vpop.permute.xlu0 %6378 }
 0xcfe   :  { %v6376_v57 = vunpack.i.h.bf16 %v6374_v53  ;;  %v6375_v7 = vunpack.i.l.bf16 %v6374_v53  ;;  %v6381_v12 = vunpack.i.h.bf16 %v6379_v60  ;;  %v6380_v13 = vunpack.i.l.bf16 %v6379_v60  ;;  %5881 = vmatmul.mubr.msk.f32.vlgmr.msra.gmra.mrb[40].mxu0 %vm242_vm1, %v7289_v45  ;;  %6186 = vmatprep.subr.msk.bf16.mxu0 %vm6790_vm2, %v6184_v48 }
 0xcff   :  { %6189 = vmatpush3.bf16.xpose.msk.msra.mxu0 %vm6790_vm2, %v6184_v48  ;;  %5894 = vmatprep.mubr.msk.f32.mxu0 %vm242_vm1, %v7286_v32 }
 0xd00   :  { %v6190_v14 = vpack.c.bf16 %v6376_v57, %v6375_v7  ;;  %v6196_v19 = vpack.c.bf16 %v6381_v12, %v6380_v13 }
 0xd01   :  { %v6384_v15 = vpop.permute.xlu1 %6383 }
 0xd02   :  { %v6386_v30 = vunpack.i.h.bf16 %v6384_v15  ;;  %v6385_v43 = vunpack.i.l.bf16 %v6384_v15  ;;  %5888 = vmatmul.mubr.msk.f32.vlgmr.msra.gmra.mrb[32].mxu1 %vm242_vm1, %v7298_v22  ;;  %6192 = vmatprep.subr.msk.bf16.mxu1 %vm6790_vm2, %v6190_v14 }
 0xd03   :  { %6197 = vmatprep.subr.bf16.mxu0 %v6196_v19  ;;  %6195 = vmatpush3.bf16.xpose.msk.msra.mxu1 %vm6790_vm2, %v6190_v14 }
 0xd04   :  { %v6200_v47 = vpack.c.bf16 %v6386_v30, %v6385_v43  ;;  %5901 = vmatprep.mubr.msk.f32.mxu1 %vm242_vm1, %v7294_v21 }
 0xd05   :  { %v6389_v20 = vpop.permute.xlu1 %6388 }
 0xd06   :  { %v6391_v32 = vunpack.i.h.bf16 %v6389_v20  ;;  %v6390_v45 = vunpack.i.l.bf16 %v6389_v20  ;;  %5895 = vmatmul.mubr.msk.f32.vlgmr.msra.gmra.mrb[42].mxu0 %vm242_vm1, %v7306_v39  ;;  %6201 = vmatprep.subr.bf16.mxu1 %v6200_v47 }
 0xd07   :  { %6199 = vmatpush3.bf16.msra.mxu0 %v6196_v19 }
 0xd08   :  { %v7378_v22 = vpack.c.bf16 %v6391_v32, %v6390_v45 }
 0xd09   :  { %v6394_v23 = vpop.permute.xlu1 %6393 }
 0xd0a   :  { %v6396_v27 = vunpack.i.h.bf16 %v6394_v23  ;;  %v6395_v28 = vunpack.i.l.bf16 %v6394_v23  ;;  %5902 = vmatmul.mubr.msk.f32.vlgmr.msra.gmra.mrb[34].mxu1 %vm242_vm1, %v7316_v40  ;;  %6205 = vmatprep.subr.bf16.mxu0 %v7378_v22 }
 0xd0b   :  { %6203 = vmatpush3.bf16.msra.mxu1 %v6200_v47 }
 0xd0c   :  { %v7383_v41 = vpack.c.bf16 %v6396_v27, %v6395_v28 }
 0xd0e   :  { %6209 = vmatprep.subr.bf16.mxu1 %v7383_v41 }
 0xd62   :  { %v5854_v21 = vpop.f32.mrb[36].mxu0 }
 0xd63   :  { %v3506_v3 = vmul.f32 0.35355338, %v5854_v21  ;;  %v2887_v39 = vpop.f32.mrb[37].mxu0 }
 0xd64   :  { %v3505_v51 = vmul.f32 0.35355338, %v2887_v39 }
 0xd65   :  { %v7389_v6 = vadd.f32 %v6602_v55, %v3506_v3 }
 0xd66   :  { %v7391_v63 = vadd.f32 %v6602_v55, %v3505_v51 }
 0xd67   :  { %v3540_v40 = vsel %vm979_vm3, %v7389_v6, -inf }
 0xd68   :  { %3541 = vmax.xlane.f32.xlu1 %v3540_v40  ;;  %v3537_v0 = vsel %vm979_vm3, %v7391_v63, -inf }
 0xd69   :  { %3538 = vmax.xlane.f32.xlu0 %v3537_v0 }
 0xd6c   :  { %v5861_v61 = vpop.f32.mrb[28].mxu1 }
 0xd6d   :  { %v3508_v24 = vmul.f32 0.35355338, %v5861_v61  ;;  %v2974_v1 = vpop.f32.mrb[29].mxu1 }
 0xd6e   :  { %v3507_v33 = vmul.f32 0.35355338, %v2974_v1 }
 0xd6f   :  { %v7400_v16 = vadd.f32 %v6603_v11, %v3508_v24 }
 0xd70   :  { %v7402_v25 = vadd.f32 %v6603_v11, %v3507_v33 }
 0xd71   :  { %v3546_v5 = vsel %vm979_vm3, %v7400_v16, -inf }
 0xd72   :  { %3547 = vmax.xlane.f32.xlu0 %v3546_v5  ;;  %v3543_v42 = vsel %vm979_vm3, %v7402_v25, -inf }
 0xd76   :  { %3544 = vmax.xlane.f32.xlu0 %v3543_v42 }
 0xdc3   :  { %v5868_v49 = vpop.f32.mrb[38].mxu0 }
 0xdc4   :  { %v3510_v37 = vmul.f32 0.35355338, %v5868_v49  ;;  %v3061_v31 = vpop.f32.mrb[39].mxu0 }
 0xdc5   :  { %v3509_v54 = vmul.f32 0.35355338, %v3061_v31 }
 0xdc6   :  { %v7408_v59 = vadd.f32 %v6602_v55, %v3510_v37 }
 0xdc7   :  { %v7410_v44 = vadd.f32 %v6602_v55, %v3509_v54 }
 0xdc8   :  { %v3552_v9 = vsel %vm979_vm3, %v7408_v59, -inf }
 0xdc9   :  { %3553 = vmax.xlane.f32.xlu1 %v3552_v9  ;;  %v3549_v34 = vsel %vm979_vm3, %v7410_v44, -inf }
 0xdca   :  { %3550 = vmax.xlane.f32.xlu0 %v3549_v34 }
 0xdcd   :  { %v5875_v46 = vpop.f32.mrb[30].mxu1 }
 0xdce   :  { %v3512_v48 = vmul.f32 0.35355338, %v5875_v46  ;;  %v3148_v53 = vpop.f32.mrb[31].mxu1 }
 0xdcf   :  { %v3511_v60 = vmul.f32 0.35355338, %v3148_v53 }
 0xdd0   :  { %v7416_v57 = vadd.f32 %v6603_v11, %v3512_v48 }
 0xdd1   :  { %v5882_v7 = vpop.f32.mrb[40].mxu0  ;;  %v7418_v12 = vadd.f32 %v6603_v11, %v3511_v60 }
 0xdd2   :  { %v3514_v13 = vmul.f32 0.35355338, %v5882_v7  ;;  %v3235_v14 = vpop.f32.mrb[41].mxu0  ;;  %v3558_v19 = vsel %vm979_vm3, %v7416_v57, -inf }
 0xdd3   :  { %v3513_v15 = vmul.f32 0.35355338, %v3235_v14  ;;  %3559 = vmax.xlane.f32.xlu0 %v3558_v19  ;;  %v3555_v45 = vsel %vm979_vm3, %v7418_v12, -inf }
 0xdd4   :  { %v7422_v30 = vadd.f32 %v6602_v55, %v3514_v13 }
 0xdd5   :  { %v5889_v43 = vpop.f32.mrb[32].mxu1  ;;  %v7424_v47 = vadd.f32 %v6602_v55, %v3513_v15 }
 0xdd6   :  { %v3516_v20 = vmul.f32 0.35355338, %v5889_v43  ;;  %v3322_v32 = vpop.f32.mrb[33].mxu1  ;;  %v3564_v23 = vsel %vm979_vm3, %v7422_v30, -inf }
 0xdd7   :  { %v3515_v27 = vmul.f32 0.35355338, %v3322_v32  ;;  %3556 = vmax.xlane.f32.xlu0 %v3555_v45  ;;  %3565 = vmax.xlane.f32.xlu1 %v3564_v23  ;;  %v3561_v0 = vsel %vm979_vm3, %v7424_v47, -inf }
 0xdd8   :  { %v7430_v28 = vadd.f32 %v6603_v11, %v3516_v20 }
 0xdd9   :  { %v5896_v21 = vpop.f32.mrb[42].mxu0  ;;  %v7432_v3 = vadd.f32 %v6603_v11, %v3515_v27 }
 0xdda   :  { %v3518_v39 = vmul.f32 0.35355338, %v5896_v21  ;;  %v3409_v51 = vpop.f32.mrb[43].mxu0  ;;  %v3570_v40 = vsel %vm979_vm3, %v7430_v28, -inf }
 0xddb   :  { %v3517_v61 = vmul.f32 0.35355338, %v3409_v51  ;;  %3571 = vmax.xlane.f32.xlu0 %v3570_v40  ;;  %3562 = vmax.xlane.f32.xlu1 %v3561_v0  ;;  %v3567_v49 = vsel %vm979_vm3, %v7432_v3, -inf }
 0xddc   :  { %v7438_v24 = vadd.f32 %v6602_v55, %v3518_v39 }
 0xddd   :  { %v5903_v1 = vpop.f32.mrb[34].mxu1  ;;  %v7440_v33 = vadd.f32 %v6602_v55, %v3517_v61 }
 0xdde   :  { %v3520_v5 = vmul.f32 0.35355338, %v5903_v1  ;;  %v3496_v42 = vpop.f32.mrb[35].mxu1  ;;  %v3576_v37 = vsel %vm979_vm3, %v7438_v24, -inf }
 0xddf   :  { %v3519_v31 = vmul.f32 0.35355338, %v3496_v42  ;;  %3568 = vmax.xlane.f32.xlu0 %v3567_v49  ;;  %3577 = vmax.xlane.f32.xlu1 %v3576_v37  ;;  %v3573_v34 = vsel %vm979_vm3, %v7440_v33, -inf }
 0xde0   :  { %v7448_v9 = vadd.f32 %v6603_v11, %v3520_v5 }
 0xde1   :  { %v7446_v54 = vadd.f32 %v6603_v11, %v3519_v31 }
 0xde2   :  { %v3582_v46 = vsel %vm979_vm3, %v7448_v9, -inf }
 0xde3   :  { %3574 = vmax.xlane.f32.xlu1 %v3573_v34  ;;  %v3579_v55 = vsel %vm979_vm3, %v7446_v54, -inf }
 0xde4   :  { %3580 = vmax.xlane.f32.xlu0 %v3579_v55 }
 0xde7   :  { %3583 = vmax.xlane.f32.xlu1 %v3582_v46 }
 0xdf5   :  { %v3542_v53 = vpop.xlane.xlu1 %3541 }
 0xdf6   :  { %v3539_v11 = vpop.xlane.xlu0 %3538  ;;  %v3586_v7 = vsub.f32 %v7389_v6, %v3542_v53 }
 0xdf7   :  { %v3585_v60 = vsub.f32 %v7391_v63, %v3539_v11 }
 0xdf8   :  { %6403 = vrot.lane.b32.xlu1 %v7302_v2, %s6610_s24  ;;  %v3603_v15 = vmul.f32 1.442695, %v3586_v7 }
 0xdf9   :  { %v3601_v13 = vmul.f32 1.442695, %v3585_v60 }
 0xdfa   :  { %6398 = vrot.lane.b32.xlu0 %v7292_v56, %s6610_s24 }
 0xdfb   :  { %6513 = vpow2.f32 %v3601_v13 }
 0xdfc   :  { %6515 = vpow2.f32 %v3603_v15 }
 0xdff   :  { %v3548_v48 = vpop.xlane.xlu0 %3547 }
 0xe00   :  { %v3588_v14 = vsub.f32 %v7400_v16, %v3548_v48 }
 0xe02   :  { %v3607_v43 = vmul.f32 1.442695, %v3588_v14 }
 0xe03   :  { %v3545_v19 = vpop.xlane.xlu0 %3544 }
 0xe04   :  { %v3587_v20 = vsub.f32 %v7402_v25, %v3545_v19  ;;  %6517 = vpow2.f32 %v3607_v43 }
 0xe05   :  { %v7464_v56 = vpop.eup %6513 }
 0xe06   :  { %v3605_v2 = vmul.f32 1.442695, %v3587_v20  ;;  %v7466_v32 = vpop.eup %6515  ;;  %v3633_v6 = vsel %vm979_vm3, %v7464_v56, 0.0 }
 0xe07   :  { %v3636_v16 = vsel %vm979_vm3, %v7466_v32, 0.0 }
 0xe08   :  { %6519 = vpow2.f32 %v3605_v2 }
 0xe0e   :  { %v7470_v63 = vpop.eup %6517 }
 0xe0f   :  { %v3642_v25 = vsel %vm979_vm3, %v7470_v63, 0.0 }
 0xe12   :  { %v7476_v45 = vpop.eup %6519 }
 0xe13   :  { %v3639_v23 = vsel %vm979_vm3, %v7476_v45, 0.0 }
 0xe19   :  { %3634 = vadd.xlane.f32.xlu0 %v3633_v6 }
 0xe1c   :  { %3637 = vadd.xlane.f32.xlu1 %v3636_v16 }
 0xe1d   :  { %3643 = vadd.xlane.f32.xlu0 %v3642_v25 }
 0xe21   :  { %3640 = vadd.xlane.f32.xlu0 %v3639_v23 }
 0xe56   :  { %v3554_v27 = vpop.xlane.xlu1 %3553 }
 0xe57   :  { %v3590_v21 = vsub.f32 %v7408_v59, %v3554_v27  ;;  %v3551_v39 = vpop.xlane.xlu0 %3550 }
 0xe58   :  { %v3589_v51 = vsub.f32 %v7410_v44, %v3551_v39 }
 0xe59   :  { %v3611_v40 = vmul.f32 1.442695, %v3590_v21 }
 0xe5a   :  { %v3609_v0 = vmul.f32 1.442695, %v3589_v51 }
 0xe5b   :  { %6521 = vpow2.f32 %v3611_v40 }
 0xe5c   :  { %6523 = vpow2.f32 %v3609_v0 }
 0xe60   :  { %v3560_v61 = vpop.xlane.xlu0 %3559 }
 0xe61   :  { %v3592_v1 = vsub.f32 %v7416_v57, %v3560_v61 }
 0xe63   :  { %v3615_v5 = vmul.f32 1.442695, %v3592_v1 }
 0xe64   :  { %v3557_v42 = vpop.xlane.xlu0 %3556  ;;  %v3566_v49 = vpop.xlane.xlu1 %3565 }
 0xe65   :  { %v7483_v37 = vpop.eup %6521  ;;  %6525 = vpow2.f32 %v3615_v5  ;;  %v3591_v31 = vsub.f32 %v7418_v12, %v3557_v42  ;;  %v3594_v59 = vsub.f32 %v7422_v30, %v3566_v49 }
 0xe66   :  { %v3648_v44 = vsel %vm979_vm3, %v7483_v37, 0.0  ;;  %v7489_v34 = vpop.eup %6523 }
 0xe67   :  { %v3613_v55 = vmul.f32 1.442695, %v3591_v31  ;;  %v3619_v46 = vmul.f32 1.442695, %v3594_v59  ;;  %3649 = vadd.xlane.f32.xlu1 %v3648_v44  ;;  %v3645_v12 = vsel %vm979_vm3, %v7489_v34, 0.0 }
 0xe68   :  { %v3572_v11 = vpop.xlane.xlu0 %3571  ;;  %v3563_v57 = vpop.xlane.xlu1 %3562 }
 0xe69   :  { %6527 = vpow2.f32 %v3613_v55  ;;  %v3596_v48 = vsub.f32 %v7430_v28, %v3572_v11  ;;  %v3593_v53 = vsub.f32 %v7424_v47, %v3563_v57 }
 0xe6a   :  { %6529 = vpow2.f32 %v3619_v46 }
 0xe6b   :  { %v3623_v30 = vmul.f32 1.442695, %v3596_v48  ;;  %v3617_v60 = vmul.f32 1.442695, %v3593_v53  ;;  %3646 = vadd.xlane.f32.xlu1 %v3645_v12 }
 0xe6c   :  { %v3569_v7 = vpop.xlane.xlu0 %3568  ;;  %v3578_v13 = vpop.xlane.xlu1 %3577 }
 0xe6d   :  { %6531 = vpow2.f32 %v3623_v30  ;;  %v3595_v14 = vsub.f32 %v7432_v3, %v3569_v7  ;;  %v3598_v19 = vsub.f32 %v7438_v24, %v3578_v13 }
 0xe6e   :  { %6533 = vpow2.f32 %v3617_v60 }
 0xe6f   :  { %v7497_v15 = vpop.eup %6525  ;;  %v3621_v28 = vmul.f32 1.442695, %v3595_v14  ;;  %v3627_v43 = vmul.f32 1.442695, %v3598_v19 }
 0xe70   :  { %v3575_v47 = vpop.xlane.xlu1 %3574  ;;  %v3654_v20 = vsel %vm979_vm3, %v7497_v15, 0.0 }
 0xe71   :  { %6535 = vpow2.f32 %v3621_v28  ;;  %v3597_v2 = vsub.f32 %v7440_v33, %v3575_v47  ;;  %3655 = vadd.xlane.f32.xlu0 %v3654_v20  ;;  %v3581_v6 = vpop.xlane.xlu0 %3580 }
 0xe72   :  { %6537 = vpow2.f32 %v3627_v43  ;;  %v3599_v16 = vsub.f32 %v7446_v54, %v3581_v6 }
 0xe73   :  { %v7503_v3 = vpop.eup %6527  ;;  %v3625_v24 = vmul.f32 1.442695, %v3597_v2 }
 0xe74   :  { %v7505_v25 = vpop.eup %6529  ;;  %v3629_v23 = vmul.f32 1.442695, %v3599_v16  ;;  %v3584_v27 = vpop.xlane.xlu1 %3583  ;;  %v3651_v21 = vsel %vm979_vm3, %v7503_v3, 0.0 }
 0xe75   :  { %6539 = vpow2.f32 %v3625_v24  ;;  %v3600_v39 = vsub.f32 %v7448_v9, %v3584_v27  ;;  %3652 = vadd.xlane.f32.xlu0 %v3651_v21  ;;  %v3660_v33 = vsel %vm979_vm3, %v7505_v25, 0.0  ;;  %v6399_v11 = vpop.permute.xlu0 %6398 }
 0xe76   :  { %6541 = vpow2.f32 %v3629_v23  ;;  %3661 = vadd.xlane.f32.xlu1 %v3660_v33  ;;  %v6401_v13 = vunpack.i.h.bf16 %v6399_v11  ;;  %v6400_v14 = vunpack.i.l.bf16 %v6399_v11 }
 0xe77   :  { %v7512_v54 = vpop.eup %6531  ;;  %v3631_v51 = vmul.f32 1.442695, %v3600_v39 }
 0xe78   :  { %v7514_v40 = vpop.eup %6533  ;;  %v3666_v0 = vsel %vm979_vm3, %v7512_v54, 0.0  ;;  %v6404_v57 = vpop.permute.xlu1 %6403 }
 0xe79   :  { %6543 = vpow2.f32 %v3631_v51  ;;  %3667 = vadd.xlane.f32.xlu0 %v3666_v0  ;;  %v3657_v61 = vsel %vm979_vm3, %v7514_v40, 0.0  ;;  %v6406_v47 = vunpack.i.h.bf16 %v6404_v57  ;;  %v6405_v20 = vunpack.i.l.bf16 %v6404_v57 }
 0xe7a   :  { %3658 = vadd.xlane.f32.xlu1 %v3657_v61 }
 0xe7b   :  { %v7520_v9 = vpop.eup %6535  ;;  %v6216_v6 = vpack.c.bf16 %v6406_v47, %v6405_v20 }
 0xe7c   :  { %v7522_v1 = vpop.eup %6537  ;;  %v3663_v5 = vsel %vm979_vm3, %v7520_v9, 0.0 }
 0xe7d   :  { %3664 = vadd.xlane.f32.xlu0 %v3663_v5  ;;  %v3672_v42 = vsel %vm979_vm3, %v7522_v1, 0.0 }
 0xe7e   :  { %3673 = vadd.xlane.f32.xlu1 %v3672_v42 }
 0xe7f   :  { %v7528_v49 = vpop.eup %6539 }
 0xe80   :  { %v7530_v31 = vpop.eup %6541  ;;  %v3669_v59 = vsel %vm979_vm3, %v7528_v49, 0.0 }
 0xe81   :  { %v3675_v44 = vsel %vm979_vm3, %v7530_v31, 0.0 }
 0xe82   :  { %3670 = vadd.xlane.f32.xlu1 %v3669_v59  ;;  %3676 = vadd.xlane.f32.xlu0 %v3675_v44 }
 0xe83   :  { %v7536_v55 = vpop.eup %6543 }
 0xe84   :  { %v3678_v46 = vsel %vm979_vm3, %v7536_v55, 0.0 }
 0xe86   :  { %3679 = vadd.xlane.f32.xlu1 %v3678_v46 }
 0xe97   :  { %6413 = vrot.lane.b32.xlu1 %v7322_v50, %s6610_s24  ;;  %v6212_v50 = vpack.c.bf16 %v6401_v13, %v6400_v14 }
 0xe98   :  { %6408 = vrot.lane.b32.xlu0 %v7310_v58, %s6610_s24 }
 0xea6   :  { %v3635_v48 = vpop.xlane.xlu0 %3634 }
 0xea7   :  { %6545 = vrcp.f32 %v3635_v48 }
 0xea9   :  { %v3638_v53 = vpop.xlane.xlu1 %3637 }
 0xeaa   :  { %6547 = vrcp.f32 %v3638_v53  ;;  %v3644_v12 = vpop.xlane.xlu0 %3643 }
 0xeab   :  { %6549 = vrcp.f32 %v3644_v12 }
 0xeae   :  { %v3641_v30 = vpop.xlane.xlu0 %3640 }
 0xeaf   :  { %6551 = vrcp.f32 %v3641_v30 }
 0xeb1   :  { %v6546_v60 = vpop.eup %6545 }
 0xeb2   :  { %v3697_v7 = vmul.f32 %v6546_v60, %v7464_v56 }
 0xeb4   :  { %v6548_v19 = vpop.eup %6547  ;;  %5908 = vmatprep.mubr.msk.f32.mxu0 %vm979_vm3, %v3697_v7 }
 0xeb5   :  { %v3698_v58 = vmul.f32 %v6548_v19, %v7466_v32  ;;  %v6550_v28 = vpop.eup %6549 }
 0xeb6   :  { %v3700_v56 = vmul.f32 %v6550_v28, %v7470_v63 }
 0xeb7   :  { %5909 = vmatmul.mubr.msk.f32.vlgmr.msra.gmra.mrb[44].mxu0 %vm979_vm3, %v3698_v58 }
 0xeb8   :  { %6207 = vmatpush3.bf16.msra.mxu0 %v7378_v22 }
 0xeb9   :  { %v6552_v43 = vpop.eup %6551  ;;  %6213 = vmatprep.subr.bf16.mxu0 %v6212_v50 }
 0xeba   :  { %v3699_v2 = vmul.f32 %v6552_v43, %v7476_v45 }
 0xebc   :  { %5915 = vmatprep.mubr.msk.f32.mxu1 %vm979_vm3, %v3699_v2 }
 0xebd   :  { %5916 = vmatmul.mubr.msk.f32.vlgmr.msra.gmra.mrb[36].mxu1 %vm979_vm3, %v3700_v56 }
 0xebe   :  { %6211 = vmatpush3.bf16.msra.mxu1 %v7383_v41 }
 0xebf   :  { %6217 = vmatprep.subr.bf16.mxu1 %v6216_v6 }
 0xef4   :  { %v3650_v32 = vpop.xlane.xlu1 %3649 }
 0xef5   :  { %6553 = vrcp.f32 %v3650_v32 }
 0xef8   :  { %v3647_v16 = vpop.xlane.xlu1 %3646 }
 0xef9   :  { %6555 = vrcp.f32 %v3647_v16 }
 0xefe   :  { %v3656_v22 = vpop.xlane.xlu0 %3655 }
 0xeff   :  { %v6554_v24 = vpop.eup %6553  ;;  %6557 = vrcp.f32 %v3656_v22 }
 0xf00   :  { %v3702_v21 = vmul.f32 %v6554_v24, %v7483_v37 }
 0xf02   :  { %v3653_v23 = vpop.xlane.xlu0 %3652 }
 0xf03   :  { %v6556_v27 = vpop.eup %6555  ;;  %6559 = vrcp.f32 %v3653_v23  ;;  %v3662_v45 = vpop.xlane.xlu1 %3661 }
 0xf04   :  { %v3701_v63 = vmul.f32 %v6556_v27, %v7489_v34  ;;  %6561 = vrcp.f32 %v3662_v45 }
 0xf06   :  { %v3668_v39 = vpop.xlane.xlu0 %3667  ;;  %5922 = vmatprep.mubr.msk.f32.mxu0 %vm979_vm3, %v3701_v63 }
 0xf07   :  { %v3659_v41 = vpop.xlane.xlu1 %3658  ;;  %5923 = vmatmul.mubr.msk.f32.vlgmr.msra.gmra.mrb[46].mxu0 %vm979_vm3, %v3702_v21 }
 0xf08   :  { %6563 = vrcp.f32 %v3659_v41  ;;  %6215 = vmatpush3.bf16.msra.mxu0 %v6212_v50 }
 0xf09   :  { %6565 = vrcp.f32 %v3668_v39  ;;  %v6558_v0 = vpop.eup %6557 }
 0xf0a   :  { %v3665_v33 = vpop.xlane.xlu0 %3664  ;;  %v3704_v34 = vmul.f32 %v6558_v0, %v7497_v15 }
 0xf0b   :  { %6567 = vrcp.f32 %v3665_v33  ;;  %v3674_v51 = vpop.xlane.xlu1 %3673 }
 0xf0c   :  { %6569 = vrcp.f32 %v3674_v51 }
 0xf0d   :  { %v6560_v61 = vpop.eup %6559 }
 0xf0e   :  { %v3703_v5 = vmul.f32 %v6560_v61, %v7503_v3  ;;  %v6562_v59 = vpop.eup %6561 }
 0xf0f   :  { %v3671_v37 = vpop.xlane.xlu1 %3670  ;;  %v3677_v42 = vpop.xlane.xlu0 %3676  ;;  %v3706_v3 = vmul.f32 %v6562_v59, %v7505_v25 }
 0xf10   :  { %6571 = vrcp.f32 %v3671_v37  ;;  %5929 = vmatprep.mubr.msk.f32.mxu1 %vm979_vm3, %v3703_v5 }
 0xf11   :  { %6573 = vrcp.f32 %v3677_v42  ;;  %5930 = vmatmul.mubr.msk.f32.vlgmr.msra.gmra.mrb[38].mxu1 %vm979_vm3, %v3704_v34 }
 0xf12   :  { %v6564_v44 = vpop.eup %6563  ;;  %6219 = vmatpush3.bf16.msra.mxu1 %v6216_v6 }
 0xf13   :  { %v3680_v46 = vpop.xlane.xlu1 %3679  ;;  %v6409_v11 = vpop.permute.xlu0 %6408  ;;  %v3705_v57 = vmul.f32 %v6564_v44, %v7514_v40  ;;  %v5376_v40 = vld [vmem:[%s7750_s3 + $0x20] sm:$0xff] }
 0xf14   :  { %v6566_v48 = vpop.eup %6565  ;;  %6575 = vrcp.f32 %v3680_v46  ;;  %v6411_v15 = vunpack.i.h.bf16 %v6409_v11  ;;  %v6410_v53 = vunpack.i.l.bf16 %v6409_v11 }
 0xf15   :  { %v6568_v12 = vpop.eup %6567  ;;  %5936 = vmatprep.mubr.msk.f32.mxu0 %vm979_vm3, %v3705_v57  ;;  %v3708_v7 = vmul.f32 %v6566_v48, %v7512_v54 }
 0xf16   :  { %v6220_v30 = vpack.c.bf16 %v6411_v15, %v6410_v53  ;;  %5937 = vmatmul.mubr.msk.f32.vlgmr.msra.gmra.mrb[48].mxu0 %vm979_vm3, %v3706_v3  ;;  %v3707_v60 = vmul.f32 %v6568_v12, %v7520_v9  ;;  %v6570_v19 = vpop.eup %6569 }
 0xf17   :  { %v6414_v13 = vpop.permute.xlu1 %6413  ;;  %v3710_v28 = vmul.f32 %v6570_v19, %v7522_v1  ;;  %v5377_v1 = vld [vmem:[%s7750_s3 + $0x28] sm:$0xff] }
 0xf18   :  { %v6416_v14 = vunpack.i.h.bf16 %v6414_v13  ;;  %v6415_v25 = vunpack.i.l.bf16 %v6414_v13  ;;  %5943 = vmatprep.mubr.msk.f32.mxu1 %vm979_vm3, %v3707_v60  ;;  %6221 = vmatprep.subr.bf16.mxu0 %v6220_v30 }
 0xf19   :  { %5944 = vmatmul.mubr.msk.f32.vlgmr.msra.gmra.mrb[40].mxu1 %vm979_vm3, %v3708_v7  ;;  %6223 = vmatpush3.bf16.msra.mxu0 %v6220_v30 }
 0xf1a   :  { %v6572_v58 = vpop.eup %6571  ;;  %v6224_v50 = vpack.c.bf16 %v6416_v14, %v6415_v25  ;;  %5960 = vmatprep.subr.mxu0 %v5376_v40 }
 0xf1b   :  { %v6574_v9 = vpop.eup %6573  ;;  %v3709_v54 = vmul.f32 %v6572_v58, %v7528_v49  ;;  %v5378_v49 = vld [vmem:[%s7750_s3 + $0x30] sm:$0xff] }
 0xf1c   :  { %6225 = vmatprep.subr.bf16.mxu1 %v6224_v50  ;;  %v3711_v43 = vmul.f32 %v6574_v9, %v7530_v31  ;;  %v5379_v31 = vld [vmem:[%s7750_s3 + $0x38] sm:$0xff] }
 0xf1d   :  { %5950 = vmatprep.mubr.msk.f32.mxu0 %vm979_vm3, %v3709_v54  ;;  %6227 = vmatpush3.bf16.msra.mxu1 %v6224_v50 }
 0xf1e   :  { %v6576_v47 = vpop.eup %6575  ;;  %5951 = vmatmul.mubr.msk.f32.vlgmr.msra.gmra.mrb[50].mxu0 %vm979_vm3, %v3710_v28  ;;  %5957 = vmatprep.mubr.msk.f32.mxu1 %vm979_vm3, %v3711_v43 }
 0xf1f   :  { %v3712_v20 = vmul.f32 %v6576_v47, %v7536_v55  ;;  %5961 = vmatpush3.msra.mxu0 %v5376_v40  ;;  %5968 = vmatprep.subr.mxu1 %v5377_v1 }
 0xf20   :  { %5976 = vmatprep.subr.mxu0 %v5378_v49 }
 0xf21   :  { %5958 = vmatmul.mubr.msk.f32.vlgmr.msra.gmra.mrb[42].mxu1 %vm979_vm3, %v3712_v20 }
 0xf22   :  { %5969 = vmatpush3.msra.mxu1 %v5377_v1  ;;  %v7621_v1 = vld [vmem:[%s7748_s6 + $0x8] sm:$0xff] }
 0xf23   :  { %5984 = vmatprep.subr.mxu1 %v5379_v31 }
 0xf8a   :  { %v5910_v55 = vpop.f32.mrb[44].mxu0 }
 0xf8b   :  { %v3791_v2 = vpop.f32.mrb[45].mxu0 }
 0xf8c   :  { %5962 = vmatprep.mubr.msk.f32.mxu0 %vm242_vm1, %v3791_v2 }
 0xf8d   :  { %5963 = vmatmul.mubr.msk.f32.vlgmr.msra.gmra.mrb[52].mxu0 %vm242_vm1, %v5910_v55 }
 0xf8e   :  { %5977 = vmatpush3.msra.mxu0 %v5378_v49  ;;  %v4833_v49 = vrot.slane %v7621_v1, %v2274_v8 }
 0xf90   :  { %v5917_v56 = vpop.f32.mrb[36].mxu1 }
 0xf91   :  { %v3878_v6 = vpop.f32.mrb[37].mxu1 }
 0xf92   :  { %5965 = vmatprep.mubr.msk.f32.mxu0 %vm242_vm1, %v3878_v6 }
 0xf93   :  { %5966 = vmatmul.mubr.msk.f32.gmra.mrb[54].mxu0 %vm242_vm1, %v5917_v56 }
 0xfda   :  { %v5924_v32 = vpop.f32.mrb[46].mxu0 }
 0xfdb   :  { %v3965_v16 = vpop.f32.mrb[47].mxu0 }
 0xfdc   :  { %5970 = vmatprep.mubr.msk.f32.mxu1 %vm242_vm1, %v3965_v16 }
 0xfdd   :  { %5971 = vmatmul.mubr.msk.f32.vlgmr.msra.gmra.mrb[44].mxu1 %vm242_vm1, %v5924_v32 }
 0xfde   :  { %5985 = vmatpush3.msra.mxu1 %v5379_v31 }
 0xfe4   :  { %v5931_v22 = vpop.f32.mrb[38].mxu1 }
 0xfe5   :  { %v4052_v24 = vpop.f32.mrb[39].mxu1 }
 0xfe6   :  { %5973 = vmatprep.mubr.msk.f32.mxu1 %vm242_vm1, %v4052_v24 }
 0xfe7   :  { %5974 = vmatmul.mubr.msk.f32.gmra.mrb[46].mxu1 %vm242_vm1, %v5931_v22 }
 0xfe9   :  { %v5938_v23 = vpop.f32.mrb[48].mxu0 }
 0xfea   :  { %v4139_v27 = vpop.f32.mrb[49].mxu0 }
 0xfeb   :  { %5978 = vmatprep.mubr.msk.f32.mxu0 %vm242_vm1, %v4139_v27 }
 0xfec   :  { %5979 = vmatmul.mubr.msk.f32.vlgmr.msra.gmra.mrb[56].mxu0 %vm242_vm1, %v5938_v23  ;;  %v5945_v45 = vpop.f32.mrb[40].mxu1 }
 0xfed   :  { %v4226_v63 = vpop.f32.mrb[41].mxu1 }
 0xfee   :  { %5981 = vmatprep.mubr.msk.f32.mxu0 %vm242_vm1, %v4226_v63 }
 0xff0   :  { %5982 = vmatmul.mubr.msk.f32.gmra.mrb[58].mxu0 %vm242_vm1, %v5945_v45 }
 0xff1   :  { %v5952_v21 = vpop.f32.mrb[50].mxu0 }
 0xff2   :  { %v4313_v39 = vpop.f32.mrb[51].mxu0 }
 0xff3   :  { %5986 = vmatprep.mubr.msk.f32.mxu1 %vm242_vm1, %v4313_v39 }
 0xff4   :  { %v5959_v41 = vpop.f32.mrb[42].mxu1  ;;  %5987 = vmatmul.mubr.msk.f32.vlgmr.msra.gmra.mrb[48].mxu1 %vm242_vm1, %v5952_v21 }
 0xff5   :  { %v4400_v33 = vpop.f32.mrb[43].mxu1 }
 0xff6   :  { %5989 = vmatprep.mubr.msk.f32.mxu1 %vm242_vm1, %v4400_v33 }
 0xff8   :  { %5990 = vmatmul.mubr.msk.f32.gmra.mrb[50].mxu1 %vm242_vm1, %v5959_v41 }
0x1060   :  { %v5964_v51 = vpop.f32.mrb[52].mxu0 }
0x1061   :  { %v4492_v0 = vpop.f32.mrb[53].mxu0  ;;  %v4809_v37 = vsel %vm33_vm0, %v5964_v51, 0.0 }
0x1062   :  { %v4802_v44 = vsel %vm33_vm0, %v4492_v0, 0.0 }
0x1066   :  { %v5967_v61 = vpop.f32.mrb[54].mxu0 }
0x1067   :  { %v4502_v5 = vpop.f32.mrb[55].mxu0  ;;  %v4823_v3 = vsel %vm33_vm0, %v5967_v61, 0.0 }
0x1068   :  { %v4816_v12 = vsel %vm33_vm0, %v4502_v5, 0.0 }
0x10b0   :  { %v5972_v34 = vpop.f32.mrb[44].mxu1 }
0x10b1   :  { %v4810_v42 = vsel %vm33_vm0, %v5972_v34, 0.0  ;;  %v4589_v59 = vpop.f32.mrb[45].mxu1 }
0x10b2   :  { %v4811_v46 = vadd.f32 %v4810_v42, %v4809_v37  ;;  %v4803_v11 = vsel %vm33_vm0, %v4589_v59, 0.0 }
0x10b3   :  { %v4804_v57 = vadd.f32 %v4803_v11, %v4802_v44 }
0x10ba   :  { %v5975_v48 = vpop.f32.mrb[46].mxu1 }
0x10bb   :  { %v4824_v15 = vsel %vm33_vm0, %v5975_v48, 0.0  ;;  %v4599_v53 = vpop.f32.mrb[47].mxu1 }
0x10bc   :  { %v4825_v30 = vadd.f32 %v4824_v15, %v4823_v3  ;;  %v4817_v60 = vsel %vm33_vm0, %v4599_v53, 0.0 }
0x10bd   :  { %v4818_v7 = vadd.f32 %v4817_v60, %v4816_v12 }
0x10bf   :  { %v5980_v13 = vpop.f32.mrb[56].mxu0 }
0x10c0   :  { %v4812_v40 = vsel %vm33_vm0, %v5980_v13, 0.0  ;;  %v4686_v14 = vpop.f32.mrb[57].mxu0 }
0x10c1   :  { %v4813_v25 = vadd.f32 %v4812_v40, %v4811_v46  ;;  %v4805_v19 = vsel %vm33_vm0, %v4686_v14, 0.0  ;;  %v5396_v40 = vld [vmem:[%s7751_s4 + $0x20] sm:$0xff]  ;;  %v5397_v14 = vld [vmem:[%s7751_s4 + $0x28] sm:$0xff] }
0x10c2   :  { %v4806_v58 = vadd.f32 %v4805_v19, %v4804_v57  ;;  %v5398_v19 = vld [vmem:[%s7751_s4 + $0x30] sm:$0xff] }
0x10c3   :  { %v5983_v50 = vpop.f32.mrb[58].mxu0 }
0x10c4   :  { %v4826_v9 = vsel %vm33_vm0, %v5983_v50, 0.0  ;;  %v4696_v54 = vpop.f32.mrb[59].mxu0 }
0x10c5   :  { %v4827_v28 = vadd.f32 %v4826_v9, %v4825_v30  ;;  %v4819_v43 = vsel %vm33_vm0, %v4696_v54, 0.0 }
0x10c6   :  { %v4820_v47 = vadd.f32 %v4819_v43, %v4818_v7 }
0x10c7   :  { %v5988_v20 = vpop.f32.mrb[48].mxu1 }
0x10c8   :  { %v4814_v31 = vsel %vm33_vm0, %v5988_v20, 0.0  ;;  %v4783_v55 = vpop.f32.mrb[49].mxu1 }
0x10c9   :  { %v4815_v2 = vadd.f32 %v4814_v31, %v4813_v25  ;;  %v4807_v56 = vsel %vm33_vm0, %v4783_v55, 0.0  ;;  %v6228_v25 = vpack.c.bf16 %v5397_v14, %v5396_v40 }
0x10ca   :  { %v4808_v6 = vadd.f32 %v4807_v56, %v4806_v58  ;;  %v5399_v58 = vld [vmem:[%s7751_s4 + $0x38] sm:$0xff] }
0x10cb   :  { %v4835_v32 = vadd.f32 %v4833_v49, %v4815_v2  ;;  %v5991_v16 = vpop.f32.mrb[50].mxu1  ;;  %6229 = vmatprep.subr.bf16.mxu0 %v6228_v25  ;;  %v6232_v50 = vpack.c.bf16 %v5399_v58, %v5398_v19 }
0x10cc   :  { %v4834_v22 = vadd.f32 %v4833_v49, %v4808_v6  ;;  %v4828_v24 = vsel %vm33_vm0, %v5991_v16, 0.0  ;;  %v4793_v23 = vpop.f32.mrb[51].mxu1  ;;  %6231 = vmatpush3.bf16.msra.mxu0 %v6228_v25 }
0x10cd   :  { %v4829_v27 = vadd.f32 %v4828_v24, %v4827_v28  ;;  %v4821_v45 = vsel %vm33_vm0, %v4793_v23, 0.0  ;;  %v4839_v63 = vadd.f32 %v4835_v32, %v7248_v26  ;;  %6233 = vmatprep.subr.bf16.mxu0 %v6232_v50  ;;  %v4897_v32 = vrot.slane %v7621_v1, %v2338_v10 }
0x10ce   :  { %v4822_v21 = vadd.f32 %v4821_v45, %v4820_v47  ;;  %v4838_v8 = vadd.f32 %v4834_v22, %v7246_v18 }
0x10cf   :  { %v4845_v39 = vsel %vm33_vm0, %v4839_v63, 0.0  ;;  %v4837_v41 = vadd.f32 %v4833_v49, %v4829_v27  ;;  %v4905_v27 = vrot.slane %v7621_v1, %v2346_v29 }
0x10d0   :  { %v4836_v33 = vadd.f32 %v4833_v49, %v4822_v21  ;;  %4846 = vadd.xlane.f32.xlu1 %v4845_v39  ;;  %v4842_v51 = vsel %vm33_vm0, %v4838_v8, 0.0  ;;  %6235 = vmatpush3.bf16.msra.mxu0 %v6232_v50 }
0x10d1   :  { %4843 = vadd.xlane.f32.xlu0 %v4842_v51  ;;  %v4841_v5 = vadd.f32 %v4837_v41, %v7256_v36 }
0x10d2   :  { %v4840_v0 = vadd.f32 %v4836_v33, %v7254_v62 }
0x10d3   :  { %v4851_v26 = vsel %vm33_vm0, %v4841_v5, 0.0 }
0x10d4   :  { %v4848_v61 = vsel %vm33_vm0, %v4840_v0, 0.0 }
0x10d5   :  { %4849 = vadd.xlane.f32.xlu0 %v4848_v61 }
0x10d9   :  { %4852 = vadd.xlane.f32.xlu0 %v4851_v26  ;;  %v5405_v26 = vld [vmem:[%s7752_s5 + $0x48] sm:$0xff] }
0x115d   :  { %v4847_v34 = vpop.xlane.xlu1 %4846 }
0x115e   :  { %v4855_v18 = vmul.f32 0.03125, %v4847_v34  ;;  %v4844_v37 = vpop.xlane.xlu0 %4843 }
0x115f   :  { %v4854_v42 = vmul.f32 0.03125, %v4844_v37  ;;  %v5407_v37 = vld [vmem:[%s7752_s5 + $0x58] sm:$0xff] }
0x1160   :  { %v4859_v59 = vsub.f32 %v4839_v63, %v4855_v18  ;;  %v5406_v18 = vld [vmem:[%s7752_s5 + $0x50] sm:$0xff] }
0x1161   :  { %v4858_v44 = vsub.f32 %v4838_v8, %v4854_v42  ;;  %v6240_v42 = vpack.c.bf16 %v5407_v37, %v5406_v18 }
0x1162   :  { %v4850_v46 = vpop.xlane.xlu0 %4849  ;;  %v4863_v11 = vmul.f32 %v4859_v59, %v4859_v59 }
0x1163   :  { %v4856_v57 = vmul.f32 0.03125, %v4850_v46  ;;  %v4862_v48 = vmul.f32 %v4858_v44, %v4858_v44 }
0x1164   :  { %v4869_v62 = vsel %vm33_vm0, %v4863_v11, 0.0  ;;  %v5410_v11 = vld [vmem:[%s7752_s5 + $0x70] sm:$0xff] }
0x1165   :  { %v4860_v3 = vsub.f32 %v4840_v0, %v4856_v57  ;;  %4870 = vadd.xlane.f32.xlu1 %v4869_v62  ;;  %v4866_v36 = vsel %vm33_vm0, %v4862_v48, 0.0  ;;  %v5411_v57 = vld [vmem:[%s7752_s5 + $0x78] sm:$0xff]  ;;  %v4918_v62 = vrot.slane %v7621_v1, %v2358_v17 }
0x1166   :  { %4867 = vadd.xlane.f32.xlu0 %v4866_v36  ;;  %v4853_v15 = vpop.xlane.xlu0 %4852  ;;  %v6248_v48 = vpack.c.bf16 %v5411_v57, %v5410_v11 }
0x1167   :  { %v4857_v53 = vmul.f32 0.03125, %v4853_v15  ;;  %v4864_v12 = vmul.f32 %v4860_v3, %v4860_v3 }
0x1169   :  { %v4861_v30 = vsub.f32 %v4841_v5, %v4857_v53  ;;  %v4872_v60 = vsel %vm33_vm0, %v4864_v12, 0.0  ;;  %v5404_v5 = vld [vmem:[%s7752_s5 + $0x40] sm:$0xff] }
0x116a   :  { %4873 = vadd.xlane.f32.xlu0 %v4872_v60  ;;  %v6236_v34 = vpack.c.bf16 %v5405_v26, %v5404_v5 }
0x116b   :  { %v4865_v7 = vmul.f32 %v4861_v30, %v4861_v30 }
0x116c   :  { %6237 = vmatprep.subr.bf16.mxu1 %v6236_v34 }
0x116d   :  { %v4875_v13 = vsel %vm33_vm0, %v4865_v7, 0.0  ;;  %6239 = vmatpush3.bf16.msra.mxu1 %v6236_v34  ;;  %v5064_v34 = vrot.slane %v7621_v1, %v2503_v4 }
0x116e   :  { %4876 = vadd.xlane.f32.xlu1 %v4875_v13  ;;  %6241 = vmatprep.subr.bf16.mxu1 %v6240_v42 }
0x1171   :  { %6243 = vmatpush3.bf16.msra.mxu1 %v6240_v42 }
0x11f2   :  { %v4871_v9 = vpop.xlane.xlu1 %4870 }
0x11f3   :  { %v4879_v54 = vmul.f32 0.03125, %v4871_v9  ;;  %v4868_v28 = vpop.xlane.xlu0 %4867 }
0x11f4   :  { %v4878_v43 = vmul.f32 0.03125, %v4868_v28 }
0x11f5   :  { %v4883_v47 = vadd.f32 1e-12, %v4879_v54 }
0x11f6   :  { %v4882_v20 = vadd.f32 1e-12, %v4878_v43 }
0x11f7   :  { %6577 = vrsqrt.f32 %v4883_v47  ;;  %v4874_v49 = vpop.xlane.xlu0 %4873 }
0x11f8   :  { %6579 = vrsqrt.f32 %v4882_v20  ;;  %v4880_v31 = vmul.f32 0.03125, %v4874_v49 }
0x11fa   :  { %v4884_v55 = vadd.f32 1e-12, %v4880_v31 }
0x11fb   :  { %v4877_v2 = vpop.xlane.xlu1 %4876 }
0x11fc   :  { %6581 = vrsqrt.f32 %v4884_v55  ;;  %v4881_v56 = vmul.f32 0.03125, %v4877_v2 }
0x11fe   :  { %v4885_v6 = vadd.f32 1e-12, %v4881_v56 }
0x1200   :  { %6583 = vrsqrt.f32 %v4885_v6 }
0x1201   :  { %v6578_v16 = vpop.eup %6577 }
0x1202   :  { %v6580_v22 = vpop.eup %6579  ;;  %v4891_v24 = vmul.f32 %v6578_v16, %v4859_v59  ;;  %v5408_v59 = vld [vmem:[%s7752_s5 + $0x60] sm:$0xff] }
0x1203   :  { %v4890_v23 = vmul.f32 %v6580_v22, %v4858_v44  ;;  %v5409_v44 = vld [vmem:[%s7752_s5 + $0x68] sm:$0xff] }
0x1204   :  { %v4899_v45 = vmul.f32 %v4897_v32, %v4891_v24  ;;  %v6244_v46 = vpack.c.bf16 %v5409_v44, %v5408_v59 }
0x1205   :  { %v4898_v63 = vmul.f32 %v4897_v32, %v4890_v23 }
0x1206   :  { %v6582_v21 = vpop.eup %6581  ;;  %v7662_v41 = vadd.f32 %v4905_v27, %v4899_v45  ;;  %6245 = vmatprep.subr.bf16.mxu1 %v6244_v46 }
0x1207   :  { %v7660_v8 = vadd.f32 %v4905_v27, %v4898_v63  ;;  %v4892_v39 = vmul.f32 %v6582_v21, %v4860_v3  ;;  %6247 = vmatpush3.bf16.msra.mxu1 %v6244_v46 }
0x1208   :  { %6249 = vmatprep.subr.bf16.mxu1 %v6248_v48 }
0x1209   :  { %6000 = vmatprep.mubr.msk.f32.mxu0 %vm33_vm0, %v7660_v8  ;;  %v4900_v10 = vmul.f32 %v4897_v32, %v4892_v39 }
0x120a   :  { %v6584_v33 = vpop.eup %6583  ;;  %6001 = vmatmul.mubr.msk.f32.vlgmr.msra.gmra.mrb[60].mxu0 %vm33_vm0, %v7662_v41 }
0x120b   :  { %v7668_v51 = vadd.f32 %v4905_v27, %v4900_v10  ;;  %v4893_v0 = vmul.f32 %v6584_v33, %v4861_v30  ;;  %6251 = vmatpush3.bf16.msra.mxu1 %v6248_v48 }
0x120d   :  { %6003 = vmatprep.mubr.msk.f32.mxu0 %vm33_vm0, %v7668_v51  ;;  %v4901_v29 = vmul.f32 %v4897_v32, %v4893_v0 }
0x120f   :  { %v7672_v61 = vadd.f32 %v4905_v27, %v4901_v29 }
0x1211   :  { %6004 = vmatmul.mubr.msk.f32.gmra.mrb[62].mxu0 %vm33_vm0, %v7672_v61 }
0x12dd   :  { %v6002_v3 = vpop.f32.mrb[60].mxu0 }
0x12de   :  { %v5003_v36 = vadd.f32 %v6002_v3, %v4918_v62  ;;  %v4997_v15 = vpop.f32.mrb[61].mxu0 }
0x12df   :  { %v4998_v53 = vadd.f32 %v4997_v15, %v4918_v62 }
0x12e0   :  { %v5021_v12 = vmul.f32 0.044715, %v5003_v36  ;;  %v5017_v27 = vmul.f32 0.5, %v5003_v36 }
0x12e1   :  { %v5020_v30 = vmul.f32 0.044715, %v4998_v53  ;;  %v5016_v24 = vmul.f32 0.5, %v4998_v53 }
0x12e2   :  { %v5025_v60 = vmul.f32 %v5021_v12, %v5003_v36 }
0x12e3   :  { %v5024_v7 = vmul.f32 %v5020_v30, %v4998_v53 }
0x12e4   :  { %v5029_v13 = vmul.f32 %v5025_v60, %v5003_v36  ;;  %v6005_v40 = vpop.f32.mrb[62].mxu0 }
0x12e5   :  { %v5028_v14 = vmul.f32 %v5024_v7, %v4998_v53  ;;  %v5013_v25 = vadd.f32 %v6005_v40, %v4918_v62  ;;  %v5007_v19 = vpop.f32.mrb[63].mxu0 }
0x12e6   :  { %v5033_v58 = vadd.f32 %v5029_v13, %v5003_v36  ;;  %v5008_v50 = vadd.f32 %v5007_v19, %v4918_v62 }
0x12e7   :  { %v5032_v9 = vadd.f32 %v5028_v14, %v4998_v53  ;;  %v5023_v54 = vmul.f32 0.044715, %v5013_v25  ;;  %v5019_v29 = vmul.f32 0.5, %v5013_v25 }
0x12e8   :  { %v5037_v28 = vmul.f32 0.7978846, %v5033_v58  ;;  %v5022_v43 = vmul.f32 0.044715, %v5008_v50  ;;  %v5018_v33 = vmul.f32 0.5, %v5008_v50 }
0x12e9   :  { %v5027_v17 = vmul.f32 %v5023_v54, %v5013_v25  ;;  %v5036_v47 = vmul.f32 0.7978846, %v5032_v9 }
0x12ea   :  { %6585 = vtanh.f32 %v5037_v28  ;;  %v5026_v20 = vmul.f32 %v5022_v43, %v5008_v50 }
0x12eb   :  { %v5031_v49 = vmul.f32 %v5027_v17, %v5013_v25  ;;  %6587 = vtanh.f32 %v5036_v47 }
0x12ec   :  { %v5030_v31 = vmul.f32 %v5026_v20, %v5008_v50 }
0x12ed   :  { %v5035_v55 = vadd.f32 %v5031_v49, %v5013_v25 }
0x12ee   :  { %v5034_v2 = vadd.f32 %v5030_v31, %v5008_v50 }
0x12ef   :  { %v5039_v56 = vmul.f32 0.7978846, %v5035_v55 }
0x12f0   :  { %v5038_v6 = vmul.f32 0.7978846, %v5034_v2 }
0x12f1   :  { %6589 = vtanh.f32 %v5039_v56 }
0x12f2   :  { %6591 = vtanh.f32 %v5038_v6 }
0x12f4   :  { %v6586_v32 = vpop.eup %6585 }
0x12f5   :  { %v6588_v16 = vpop.eup %6587  ;;  %v5045_v22 = vadd.f32 1.0, %v6586_v32 }
0x12f6   :  { %v5044_v23 = vadd.f32 1.0, %v6588_v16 }
0x12f7   :  { %v5049_v63 = vmul.f32 %v5045_v22, %v5017_v27  ;;  %v6605_v27 = vld [vmem:[%s7748_s6 + $0x10] sm:$0x3] }
0x12f8   :  { %v5048_v45 = vmul.f32 %v5044_v23, %v5016_v24 }
0x12fa   :  { %6022 = vmatprep.mubr.msk.f32.mxu1 %vm2505_vm4, %v5048_v45  ;;  %v5229_v45 = vrot.slane %v6605_v27, %v6702_v52 }
0x12fb   :  { %v6590_v21 = vpop.eup %6589  ;;  %6023 = vmatmul.mubr.msk.f32.vlgmr.msra.gmra.mrb[52].mxu1 %vm2505_vm4, %v5049_v63 }
0x12fc   :  { %v6592_v39 = vpop.eup %6591  ;;  %v5047_v10 = vadd.f32 1.0, %v6590_v21 }
0x12fd   :  { %v5046_v0 = vadd.f32 1.0, %v6592_v39 }
0x12fe   :  { %v5051_v26 = vmul.f32 %v5047_v10, %v5019_v29 }
0x12ff   :  { %v5050_v5 = vmul.f32 %v5046_v0, %v5018_v33 }
0x1301   :  { %6025 = vmatprep.mubr.msk.f32.mxu1 %vm2505_vm4, %v5050_v5 }
0x1302   :  { %6026 = vmatmul.mubr.msk.f32.gmra.mrb[54].mxu1 %vm2505_vm4, %v5051_v26 }
0x13ce   :  { %v6024_v18 = vpop.f32.mrb[52].mxu1 }
0x13cf   :  { %v5149_v37 = vadd.f32 %v6024_v18, %v5064_v34  ;;  %v5143_v42 = vpop.f32.mrb[53].mxu1 }
0x13d0   :  { %v5144_v59 = vadd.f32 %v5143_v42, %v5064_v34 }
0x13d1   :  { %v5163_v44 = vadd.f32 %v5149_v37, %v7662_v41 }
0x13d2   :  { %v5162_v46 = vadd.f32 %v5144_v59, %v7660_v8 }
0x13d3   :  { %v5169_v11 = vsel %vm33_vm0, %v5163_v44, 0.0 }
0x13d4   :  { %5170 = vadd.xlane.f32.xlu1 %v5169_v11  ;;  %v5166_v57 = vsel %vm33_vm0, %v5162_v46, 0.0 }
0x13d5   :  { %5167 = vadd.xlane.f32.xlu0 %v5166_v57  ;;  %v6027_v48 = vpop.f32.mrb[54].mxu1 }
0x13d6   :  { %v5159_v62 = vadd.f32 %v6027_v48, %v5064_v34  ;;  %v5153_v3 = vpop.f32.mrb[55].mxu1 }
0x13d7   :  { %v5154_v35 = vadd.f32 %v5153_v3, %v5064_v34 }
0x13d8   :  { %v5165_v4 = vadd.f32 %v5159_v62, %v7672_v61 }
0x13d9   :  { %v5164_v1 = vadd.f32 %v5154_v35, %v7668_v51 }
0x13da   :  { %v5175_v36 = vsel %vm33_vm0, %v5165_v4, 0.0 }
0x13db   :  { %5176 = vadd.xlane.f32.xlu1 %v5175_v36  ;;  %v5172_v41 = vsel %vm33_vm0, %v5164_v1, 0.0 }
0x13dc   :  { %5173 = vadd.xlane.f32.xlu0 %v5172_v41 }
0x1461   :  { %v5171_v8 = vpop.xlane.xlu1 %5170 }
0x1462   :  { %v5179_v15 = vmul.f32 0.03125, %v5171_v8  ;;  %v5168_v53 = vpop.xlane.xlu0 %5167 }
0x1463   :  { %v5178_v12 = vmul.f32 0.03125, %v5168_v53 }
0x1464   :  { %v5183_v30 = vsub.f32 %v5163_v44, %v5179_v15 }
0x1465   :  { %v5182_v60 = vsub.f32 %v5162_v46, %v5178_v12 }
0x1466   :  { %v5187_v7 = vmul.f32 %v5183_v30, %v5183_v30 }
0x1467   :  { %v5186_v13 = vmul.f32 %v5182_v60, %v5182_v60 }
0x1468   :  { %v5177_v40 = vpop.xlane.xlu1 %5176  ;;  %v5193_v14 = vsel %vm33_vm0, %v5187_v7, 0.0 }
0x1469   :  { %v5181_v61 = vmul.f32 0.03125, %v5177_v40  ;;  %5194 = vadd.xlane.f32.xlu1 %v5193_v14  ;;  %v5174_v51 = vpop.xlane.xlu0 %5173  ;;  %v5190_v25 = vsel %vm33_vm0, %v5186_v13, 0.0 }
0x146a   :  { %v5180_v19 = vmul.f32 0.03125, %v5174_v51  ;;  %5191 = vadd.xlane.f32.xlu0 %v5190_v25 }
0x146b   :  { %v5185_v58 = vsub.f32 %v5165_v4, %v5181_v61 }
0x146c   :  { %v5184_v50 = vsub.f32 %v5164_v1, %v5180_v19 }
0x146d   :  { %v5189_v9 = vmul.f32 %v5185_v58, %v5185_v58 }
0x146e   :  { %v5188_v54 = vmul.f32 %v5184_v50, %v5184_v50 }
0x146f   :  { %v5199_v28 = vsel %vm33_vm0, %v5189_v9, 0.0 }
0x1470   :  { %5200 = vadd.xlane.f32.xlu1 %v5199_v28  ;;  %v5196_v43 = vsel %vm33_vm0, %v5188_v54, 0.0 }
0x1471   :  { %5197 = vadd.xlane.f32.xlu0 %v5196_v43 }
0x14f6   :  { %v5195_v17 = vpop.xlane.xlu1 %5194 }
0x14f7   :  { %v5203_v47 = vmul.f32 0.03125, %v5195_v17  ;;  %v5192_v20 = vpop.xlane.xlu0 %5191 }
0x14f8   :  { %v5202_v49 = vmul.f32 0.03125, %v5192_v20 }
0x14f9   :  { %v5207_v31 = vadd.f32 1e-12, %v5203_v47 }
0x14fa   :  { %v5206_v55 = vadd.f32 1e-12, %v5202_v49 }
0x14fb   :  { %6593 = vrsqrt.f32 %v5207_v31 }
0x14fc   :  { %6595 = vrsqrt.f32 %v5206_v55 }
0x14fd   :  { %v5201_v2 = vpop.xlane.xlu1 %5200 }
0x14fe   :  { %v5205_v56 = vmul.f32 0.03125, %v5201_v2  ;;  %v5198_v6 = vpop.xlane.xlu0 %5197 }
0x14ff   :  { %v5204_v32 = vmul.f32 0.03125, %v5198_v6 }
0x1500   :  { %v5209_v16 = vadd.f32 1e-12, %v5205_v56 }
0x1501   :  { %v5208_v22 = vadd.f32 1e-12, %v5204_v32 }
0x1502   :  { %6597 = vrsqrt.f32 %v5209_v16 }
0x1503   :  { %6599 = vrsqrt.f32 %v5208_v22 }
0x1505   :  { %v6594_v24 = vpop.eup %6593 }
0x1506   :  { %v6596_v23 = vpop.eup %6595  ;;  %v5215_v63 = vmul.f32 %v6594_v24, %v5183_v30 }
0x1507   :  { %v5214_v21 = vmul.f32 %v6596_v23, %v5182_v60 }
0x1508   :  { %v5223_v39 = vmul.f32 %v6696_v38, %v5215_v63 }
0x1509   :  { %v5222_v10 = vmul.f32 %v6696_v38, %v5214_v21 }
0x150a   :  { %v5231_v33 = vadd.f32 %v5229_v45, %v5223_v39 }
0x150b   :  { %v5230_v0 = vadd.f32 %v5229_v45, %v5222_v10 }
0x150c   :  { %v6598_v29 = vpop.eup %6597  ;;  %5235 = vst.msk [vmem:[%s7753_s7 + $0x8] sm:$0xff] %vm33_vm0, %v5231_v33 }
0x150d   :  { %v6600_v5 = vpop.eup %6599  ;;  %5234 = vst.msk [vmem:[%s7753_s7] sm:$0xff] %vm33_vm0, %v5230_v0  ;;  %v5217_v52 = vmul.f32 %v6598_v29, %v5185_v58 }
0x150e   :  { %v5216_v26 = vmul.f32 %v6600_v5, %v5184_v50 }
0x150f   :  { %v5225_v34 = vmul.f32 %v6696_v38, %v5217_v52 }
0x1510   :  { %v5224_v18 = vmul.f32 %v6696_v38, %v5216_v26 }
0x1511   :  { %v5233_v37 = vadd.f32 %v5229_v45, %v5225_v34 }
0x1512   :  { %v5232_v42 = vadd.f32 %v5229_v45, %v5224_v18 }
0x1513   :  { %5237 = vst.msk [vmem:[%s7753_s7 + $0x18] sm:$0xff] %vm33_vm0, %v5233_v37 }
0x1514   :  { %5236 = vst.msk [vmem:[%s7753_s7 + $0x10] sm:$0xff] %vm33_vm0, %v5232_v42 }

</bundles_post_ra>
